<compile_context>
chip_gen: v5e
topology: v5e:2x2
jax: 0.10.0
libtpu: 0.0.40
codegen_flags: <defaults>
</compile_context>

<pallas_src>
import jax
import jax.numpy as jnp
from jax.experimental import pallas as pl
from jax.experimental.pallas import tpu as pltpu

HIDDEN_SIZE = 32
NUM_LAYERS = 2
OUTPUT_SIZE = 1

GATE_PAD = 128       # each gate gets its own 128-lane group
SUBLANE = 8          # f32 sublane tile


# --------------------------------------------------------------------------
# Kernel
# --------------------------------------------------------------------------
def gru_fc_kernel(x_ref,        # (T*BP, I)   time-major, batch-padded input
                  wih0_ref,     # (I, 3*HP)   layer-0 input weights (gate-padded)
                  whh0_ref,     # (HP, 3*HP)  layer-0 hidden weights
                  bi0_ref,      # (1, 3*HP)   [b_ir+b_hr | b_iz+b_hz | b_in]
                  bhn0_ref,     # (1, HP)     b_hn (layer 0)
                  wih1_ref,     # (HP, 3*HP)  layer-1 input weights
                  whh1_ref,     # (HP, 3*HP)  layer-1 hidden weights
                  bi1_ref,      # (1, 3*HP)   [b_ir+b_hr | b_iz+b_hz | b_in]
                  bhn1_ref,     # (1, HP)     b_hn (layer 1)
                  fcw_ref,      # (HP, O)     fc weight (rows >= H are zero)
                  fcb_ref,      # (1, O)
                  out_ref,      # (BP, O)
                  gi0_scratch): # (T*BP, 3*HP) VMEM scratch
    BP, O = out_ref.shape
    HP = whh0_ref.shape[0]
    TB = x_ref.shape[0]
    T = TB // BP

    # ---- hoisted off the serial chain: layer-0 input projection for all t ----
    # Written to VMEM scratch (not carried as live vregs across the loop).
    gi0_scratch[...] = (jnp.dot(x_ref[...], wih0_ref[...],
                                preferred_element_type=jnp.float32)
                        + jnp.broadcast_to(bi0_ref[...], (TB, 3 * HP)))

    # Small biases pre-broadcast once (5 vregs total) — avoids per-iteration
    # broadcast_in_dim without creating spill pressure.
    bhn0_b = jnp.broadcast_to(bhn0_ref[...], (BP, HP))
    bi1_b = jnp.broadcast_to(bi1_ref[...], (BP, 3 * HP))
    bhn1_b = jnp.broadcast_to(bhn1_ref[...], (BP, HP))

    h0 = jnp.zeros((BP, HP), jnp.float32)
    h1 = jnp.zeros((BP, HP), jnp.float32)

    # Fully unrolled time loop (T is a small static int).
    for t in range(T):
        # ---- layer-1 hidden projection: depends only on previous-step h1, ----
        # ---- so issue it first; it overlaps all of layer-0's work.         ----
        gh1 = jnp.dot(h1, whh1_ref[...], preferred_element_type=jnp.float32)

        # ---- layer 0 -------------------------------------------------------
        gi0 = gi0_scratch[t * BP:(t + 1) * BP, :]                  # (BP, 3*HP)
        gh0 = jnp.dot(h0, whh0_ref[...], preferred_element_type=jnp.float32)
        r0 = jax.nn.sigmoid(gi0[:, 0 * HP:1 * HP] + gh0[:, 0 * HP:1 * HP])
        z0 = jax.nn.sigmoid(gi0[:, 1 * HP:2 * HP] + gh0[:, 1 * HP:2 * HP])
        n0 = jnp.tanh(gi0[:, 2 * HP:3 * HP]
                      + r0 * (gh0[:, 2 * HP:3 * HP] + bhn0_b))
        h0 = n0 + z0 * (h0 - n0)                                   # FMA form

        # ---- layer 1 input projection (needs the fresh h0) -----------------
        gi1 = (jnp.dot(h0, wih1_ref[...], preferred_element_type=jnp.float32)
               + bi1_b)
        r1 = jax.nn.sigmoid(gi1[:, 0 * HP:1 * HP] + gh1[:, 0 * HP:1 * HP])
        z1 = jax.nn.sigmoid(gi1[:, 1 * HP:2 * HP] + gh1[:, 1 * HP:2 * HP])
        n1 = jnp.tanh(gi1[:, 2 * HP:3 * HP]
                      + r1 * (gh1[:, 2 * HP:3 * HP] + bhn1_b))
        h1 = n1 + z1 * (h1 - n1)                                   # FMA form

    # fc head on last timestep's top-layer hidden state.  Pad lanes of h1 are
    # exactly 0 and fcw rows >= H are zero, so the head is doubly protected.
    out_ref[...] = (jnp.dot(h1, fcw_ref[...], preferred_element_type=jnp.float32)
                    + jnp.broadcast_to(fcb_ref[...], (BP, O))).astype(out_ref.dtype)


# --------------------------------------------------------------------------
# One-time parameter preparation (transpose / gate padding / bias fusion)
# --------------------------------------------------------------------------
def _place_gate_cols(w_t, H, HP):
    """(in, 3H) -> (in, 3*HP); gate g's H cols placed at lane offset g*HP."""
    out = jnp.zeros((w_t.shape[0], 3 * HP), jnp.float32)
    for g in range(3):
        out = out.at[:, g * HP:g * HP + H].set(w_t[:, g * H:(g + 1) * H])
    return out


def _pad_rows(w, rows):
    out = jnp.zeros((rows, w.shape[1]), jnp.float32)
    return out.at[:w.shape[0], :].set(w)


def _gate_bias(bih, bhh, H, HP):
    """Combined [r | z | n_input] bias in gate-padded lanes, plus b_hn row."""
    bi = jnp.zeros((1, 3 * HP), jnp.float32)
    bi = bi.at[0, 0 * HP:0 * HP + H].set(bih[0:H] + bhh[0:H])              # r
    bi = bi.at[0, 1 * HP:1 * HP + H].set(bih[H:2 * H] + bhh[H:2 * H])      # z
    bi = bi.at[0, 2 * HP:2 * HP + H].set(bih[2 * H:3 * H])                 # n (input)
    bhn = jnp.zeros((1, HP), jnp.float32).at[0, :H].set(bhh[2 * H:3 * H])  # n (hidden)
    return bi, bhn


def prepare_params(params):
    """Done once: pre-transpose, pad gates to 128-lane groups, fuse biases."""
    H, HP, O = HIDDEN_SIZE, GATE_PAD, OUTPUT_SIZE

    # layer 0
    wih0 = _place_gate_cols(params["w_ih0"].T.astype(jnp.float32), H, HP)   # (I, 3HP)
    whh0 = _pad_rows(_place_gate_cols(params["w_hh0"].T.astype(jnp.float32), H, HP), HP)
    bi0, bhn0 = _gate_bias(params["b_ih0"], params["b_hh0"], H, HP)

    # layer 1 (split weights — no block-diagonal fusion)
    wih1 = _pad_rows(_place_gate_cols(params["w_ih1"].T.astype(jnp.float32), H, HP), HP)
    whh1 = _pad_rows(_place_gate_cols(params["w_hh1"].T.astype(jnp.float32), H, HP), HP)
    bi1, bhn1 = _gate_bias(params["b_ih1"], params["b_hh1"], H, HP)

    # fc head
    fcw = jnp.zeros((HP, O), jnp.float32).at[:H, :].set(params["fc_w"].T)
    fcb = params["fc_b"].reshape(1, O).astype(jnp.float32)

    return {"wih0": wih0, "whh0": whh0, "bi0": bi0, "bhn0": bhn0,
            "wih1": wih1, "whh1": whh1, "bi1": bi1, "bhn1": bhn1,
            "fcw": fcw, "fcb": fcb}


# --------------------------------------------------------------------------
# Forward wrapper
# --------------------------------------------------------------------------
def gru_model_forward(x, prep):
    """x: (B, T, I) batch-first, like the PyTorch module."""
    B, T, I = x.shape
    HP, O = GATE_PAD, OUTPUT_SIZE
    BP = ((B + SUBLANE - 1) // SUBLANE) * SUBLANE      # batch padded to sublane tile

    x_tm = jnp.transpose(x.astype(jnp.float32), (1, 0, 2))       # (T, B, I)
    if BP != B:
        x_tm = jnp.pad(x_tm, ((0, 0), (0, BP - B), (0, 0)))      # (T, BP, I)
    x_flat = x_tm.reshape(T * BP, I)                             # (T*BP, I)

    flops = (2 * T * BP * I * 3 * HP                 # layer-0 input projection
             + T * 3 * (2 * BP * HP * 3 * HP)        # per-step hh0, hh1, ih1
             + 2 * BP * HP * O)                      # fc head
    transcendentals = T * 2 * 3 * BP * HP
    bytes_accessed = 4 * (T * BP * I + I * 3 * HP + 3 * HP * 3 * HP
                          + 2 * (3 * HP + HP) + HP * O + O + BP * O
                          + 2 * T * BP * 3 * HP)     # scratch write + read

    vmem = pl.BlockSpec(memory_space=pltpu.MemorySpace.VMEM)
    out = pl.pallas_call(
        gru_fc_kernel,
        out_shape=jax.ShapeDtypeStruct((BP, O), jnp.float32),
        in_specs=[vmem] * 10 + [vmem],
        out_specs=vmem,
        scratch_shapes=[pltpu.VMEM((T * BP, 3 * HP), jnp.float32)],
        cost_estimate=pl.CostEstimate(flops=flops,
                                      transcendentals=transcendentals,
                                      bytes_accessed=bytes_accessed),
    )(x_flat, prep["wih0"], prep["whh0"], prep["bi0"], prep["bhn0"],
      prep["wih1"], prep["whh1"], prep["bi1"], prep["bhn1"],
      prep["fcw"], prep["fcb"])
    return out[:B]


# --------------------------------------------------------------------------
# Reference + init (pure JAX, for verification)
# --------------------------------------------------------------------------
def init_params(key, input_size, hidden_size, output_size):
    """Deterministic init mimicking PyTorch's U(-1/sqrt(H), 1/sqrt(H))."""
    k = 1.0 / jnp.sqrt(jnp.float32(hidden_size))
    keys = jax.random.split(key, 11)

    def u(rk, shape):
        return jax.random.uniform(rk, shape, jnp.float32, -k, k)

    return {
        "w_ih0": u(keys[0], (3 * hidden_size, input_size)),
        "w_hh0": u(keys[1], (3 * hidden_size, hidden_size)),
        "b_ih0": u(keys[2], (3 * hidden_size,)),
        "b_hh0": u(keys[3], (3 * hidden_size,)),
        "w_ih1": u(keys[4], (3 * hidden_size, hidden_size)),
        "w_hh1": u(keys[5], (3 * hidden_size, hidden_size)),
        "b_ih1": u(keys[6], (3 * hidden_size,)),
        "b_hh1": u(keys[7], (3 * hidden_size,)),
        "fc_w": u(keys[8], (output_size, hidden_size)),
        "fc_b": u(keys[9], (output_size,)),
    }


def gru_model_reference(x, params):
    B, T, I = x.shape
    H = HIDDEN_SIZE

    def cell(x_t, h_prev, wih, whh, bih, bhh):
        gi = x_t @ wih.T + bih
        gh = h_prev @ whh.T + bhh
        i_r, i_z, i_n = jnp.split(gi, 3, axis=-1)
        h_r, h_z, h_n = jnp.split(gh, 3, axis=-1)
        r = jax.nn.sigmoid(i_r + h_r)
        z = jax.nn.sigmoid(i_z + h_z)
        n = jnp.tanh(i_n + r * h_n)
        return (1.0 - z) * n + z * h_prev

    h0 = jnp.zeros((B, H), jnp.float32)
    h1 = jnp.zeros((B, H), jnp.float32)
    for t in range(T):
        x_t = x[:, t, :]
        h0 = cell(x_t, h0, params["w_ih0"], params["w_hh0"],
                  params["b_ih0"], params["b_hh0"])
        h1 = cell(h0, h1, params["w_ih1"], params["w_hh1"],
                  params["b_ih1"], params["b_hh1"])
    return h1 @ params["fc_w"].T + params["fc_b"]


if __name__ == "__main__":
    key = jax.random.PRNGKey(0)
    k_x, k_p = jax.random.split(key)

    batch, seq_len, input_size = 2, 8, 4
    x = jax.random.normal(k_x, (batch, seq_len, input_size), jnp.float32)
    params = init_params(k_p, input_size, HIDDEN_SIZE, OUTPUT_SIZE)

    prep = prepare_params(params)                 # one-time layout prep
    fwd = jax.jit(gru_model_forward)

    out = jax.block_until_ready(fwd(x, prep))

    ref = gru_model_reference(x, params)
    assert out.shape == (batch, OUTPUT_SIZE)
    assert jnp.allclose(out, ref, atol=1e-5, rtol=1e-5), (out, ref)

    print("KERNEL_OK")
</pallas_src>

<mosaic_0001>
module attributes {stable_mosaic.version = 11 : i64} {
  func.func @gru_fc_kernel(%arg0: memref<64x4xf32, #tpu.memory_space<vmem>>, %arg1: memref<4x384xf32, #tpu.memory_space<vmem>>, %arg2: memref<128x384xf32, #tpu.memory_space<vmem>>, %arg3: memref<1x384xf32, #tpu.memory_space<vmem>>, %arg4: memref<1x128xf32, #tpu.memory_space<vmem>>, %arg5: memref<128x384xf32, #tpu.memory_space<vmem>>, %arg6: memref<128x384xf32, #tpu.memory_space<vmem>>, %arg7: memref<1x384xf32, #tpu.memory_space<vmem>>, %arg8: memref<1x128xf32, #tpu.memory_space<vmem>>, %arg9: memref<128x1xf32, #tpu.memory_space<vmem>>, %arg10: memref<1x1xf32, #tpu.memory_space<vmem>>, %arg11: memref<8x1xf32, #tpu.memory_space<vmem>>, %arg12: memref<64x384xf32, #tpu.memory_space<vmem>>) attributes {dimension_semantics = [], scalar_prefetch = 0 : i64, scratch_operands = 1 : i64, tpu.core_type = #tpu.core_type<tc>} {
    %c0 = arith.constant 0 : index
    %c0_0 = arith.constant 0 : index
    %0 = vector.load %arg0[%c0, %c0_0] : memref<64x4xf32, #tpu.memory_space<vmem>>, vector<64x4xf32>
    %c0_1 = arith.constant 0 : index
    %c0_2 = arith.constant 0 : index
    %1 = vector.load %arg1[%c0_1, %c0_2] : memref<4x384xf32, #tpu.memory_space<vmem>>, vector<4x384xf32>
    %cst = arith.constant dense<0.000000e+00> : vector<64x384xf32>
    %2 = tpu.matmul %0, %1, %cst {dimension_numbers = #tpu.dot_dimension_numbers<[1], [0], [0], [1], [0, 0, 1, 1], [], []>} : vector<64x4xf32>, vector<4x384xf32>, vector<64x384xf32> -> vector<64x384xf32>
    %c0_3 = arith.constant 0 : index
    %c0_4 = arith.constant 0 : index
    %3 = vector.load %arg3[%c0_3, %c0_4] : memref<1x384xf32, #tpu.memory_space<vmem>>, vector<1x384xf32>
    %4 = vector.shape_cast %3 : vector<1x384xf32> to vector<1x384xf32>
    %5 = vector.broadcast %4 : vector<1x384xf32> to vector<64x384xf32>
    %6 = arith.addf %2, %5 : vector<64x384xf32>
    %c0_5 = arith.constant 0 : index
    %c0_6 = arith.constant 0 : index
    %7 = vector.load %arg12[%c0_5, %c0_6] : memref<64x384xf32, #tpu.memory_space<vmem>>, vector<64x384xf32>
    tpu.vector_store %arg12[%c0_5, %c0_6], %6 {strides = array<i32>} : memref<64x384xf32, #tpu.memory_space<vmem>>, vector<64x384xf32>,
    %c0_7 = arith.constant 0 : index
    %c0_8 = arith.constant 0 : index
    %8 = vector.load %arg4[%c0_7, %c0_8] : memref<1x128xf32, #tpu.memory_space<vmem>>, vector<1x128xf32>
    %9 = vector.shape_cast %8 : vector<1x128xf32> to vector<1x128xf32>
    %10 = vector.broadcast %9 : vector<1x128xf32> to vector<8x128xf32>
    %c0_9 = arith.constant 0 : index
    %c0_10 = arith.constant 0 : index
    %11 = vector.load %arg7[%c0_9, %c0_10] : memref<1x384xf32, #tpu.memory_space<vmem>>, vector<1x384xf32>
    %12 = vector.shape_cast %11 : vector<1x384xf32> to vector<1x384xf32>
    %13 = vector.broadcast %12 : vector<1x384xf32> to vector<8x384xf32>
    %c0_11 = arith.constant 0 : index
    %c0_12 = arith.constant 0 : index
    %14 = vector.load %arg8[%c0_11, %c0_12] : memref<1x128xf32, #tpu.memory_space<vmem>>, vector<1x128xf32>
    %15 = vector.shape_cast %14 : vector<1x128xf32> to vector<1x128xf32>
    %16 = vector.broadcast %15 : vector<1x128xf32> to vector<8x128xf32>
    %cst_13 = arith.constant 0.000000e+00 : f32
    %17 = vector.broadcast %cst_13 : f32 to vector<8x128xf32>
    %cst_14 = arith.constant 0.000000e+00 : f32
    %18 = vector.broadcast %cst_14 : f32 to vector<8x128xf32>
    %c0_15 = arith.constant 0 : index
    %c0_16 = arith.constant 0 : index
    %19 = vector.load %arg6[%c0_15, %c0_16] : memref<128x384xf32, #tpu.memory_space<vmem>>, vector<128x384xf32>
    %cst_17 = arith.constant dense<0.000000e+00> : vector<8x384xf32>
    %20 = tpu.matmul %18, %19, %cst_17 {dimension_numbers = #tpu.dot_dimension_numbers<[1], [0], [0], [1], [0, 0, 1, 1], [], []>} : vector<8x128xf32>, vector<128x384xf32>, vector<8x384xf32> -> vector<8x384xf32>
    %c0_18 = arith.constant 0 : index
    %c0_19 = arith.constant 0 : index
    %21 = vector.load %arg12[%c0_18, %c0_19] : memref<64x384xf32, #tpu.memory_space<vmem>>, vector<8x384xf32>
    %c0_20 = arith.constant 0 : index
    %c0_21 = arith.constant 0 : index
    %22 = vector.load %arg2[%c0_20, %c0_21] : memref<128x384xf32, #tpu.memory_space<vmem>>, vector<128x384xf32>
    %cst_22 = arith.constant dense<0.000000e+00> : vector<8x384xf32>
    %23 = tpu.matmul %17, %22, %cst_22 {dimension_numbers = #tpu.dot_dimension_numbers<[1], [0], [0], [1], [0, 0, 1, 1], [], []>} : vector<8x128xf32>, vector<128x384xf32>, vector<8x384xf32> -> vector<8x384xf32>
    %24 = vector.extract_strided_slice %21 {offsets = [0, 0], sizes = [8, 128], strides = [1, 1]} : vector<8x384xf32> to vector<8x128xf32>
    %25 = vector.extract_strided_slice %23 {offsets = [0, 0], sizes = [8, 128], strides = [1, 1]} : vector<8x384xf32> to vector<8x128xf32>
    %26 = arith.addf %24, %25 : vector<8x128xf32>
    %27 = arith.negf %26 : vector<8x128xf32>
    %28 = math.exp %27 : vector<8x128xf32>
    %cst_23 = arith.constant 1.000000e+00 : f32
    %29 = vector.broadcast %cst_23 : f32 to vector<8x128xf32>
    %30 = arith.addf %29, %28 : vector<8x128xf32>
    %31 = arith.divf %29, %30 : vector<8x128xf32>
    %32 = vector.extract_strided_slice %21 {offsets = [0, 128], sizes = [8, 128], strides = [1, 1]} : vector<8x384xf32> to vector<8x128xf32>
    %33 = vector.extract_strided_slice %23 {offsets = [0, 128], sizes = [8, 128], strides = [1, 1]} : vector<8x384xf32> to vector<8x128xf32>
    %34 = arith.addf %32, %33 : vector<8x128xf32>
    %35 = arith.negf %34 : vector<8x128xf32>
    %36 = math.exp %35 : vector<8x128xf32>
    %cst_24 = arith.constant 1.000000e+00 : f32
    %37 = vector.broadcast %cst_24 : f32 to vector<8x128xf32>
    %38 = arith.addf %37, %36 : vector<8x128xf32>
    %39 = arith.divf %37, %38 : vector<8x128xf32>
    %40 = vector.extract_strided_slice %21 {offsets = [0, 256], sizes = [8, 128], strides = [1, 1]} : vector<8x384xf32> to vector<8x128xf32>
    %41 = vector.extract_strided_slice %23 {offsets = [0, 256], sizes = [8, 128], strides = [1, 1]} : vector<8x384xf32> to vector<8x128xf32>
    %42 = arith.addf %41, %10 : vector<8x128xf32>
    %43 = arith.mulf %31, %42 : vector<8x128xf32>
    %44 = arith.addf %40, %43 : vector<8x128xf32>
    %45 = math.tanh %44 : vector<8x128xf32>
    %46 = arith.subf %17, %45 : vector<8x128xf32>
    %47 = arith.mulf %39, %46 : vector<8x128xf32>
    %48 = arith.addf %45, %47 : vector<8x128xf32>
    %c0_25 = arith.constant 0 : index
    %c0_26 = arith.constant 0 : index
    %49 = vector.load %arg5[%c0_25, %c0_26] : memref<128x384xf32, #tpu.memory_space<vmem>>, vector<128x384xf32>
    %cst_27 = arith.constant dense<0.000000e+00> : vector<8x384xf32>
    %50 = tpu.matmul %48, %49, %cst_27 {dimension_numbers = #tpu.dot_dimension_numbers<[1], [0], [0], [1], [0, 0, 1, 1], [], []>} : vector<8x128xf32>, vector<128x384xf32>, vector<8x384xf32> -> vector<8x384xf32>
    %51 = arith.addf %50, %13 : vector<8x384xf32>
    %52 = vector.extract_strided_slice %51 {offsets = [0, 0], sizes = [8, 128], strides = [1, 1]} : vector<8x384xf32> to vector<8x128xf32>
    %53 = vector.extract_strided_slice %20 {offsets = [0, 0], sizes = [8, 128], strides = [1, 1]} : vector<8x384xf32> to vector<8x128xf32>
    %54 = arith.addf %52, %53 : vector<8x128xf32>
    %55 = arith.negf %54 : vector<8x128xf32>
    %56 = math.exp %55 : vector<8x128xf32>
    %cst_28 = arith.constant 1.000000e+00 : f32
    %57 = vector.broadcast %cst_28 : f32 to vector<8x128xf32>
    %58 = arith.addf %57, %56 : vector<8x128xf32>
    %59 = arith.divf %57, %58 : vector<8x128xf32>
    %60 = vector.extract_strided_slice %51 {offsets = [0, 128], sizes = [8, 128], strides = [1, 1]} : vector<8x384xf32> to vector<8x128xf32>
    %61 = vector.extract_strided_slice %20 {offsets = [0, 128], sizes = [8, 128], strides = [1, 1]} : vector<8x384xf32> to vector<8x128xf32>
    %62 = arith.addf %60, %61 : vector<8x128xf32>
    %63 = arith.negf %62 : vector<8x128xf32>
    %64 = math.exp %63 : vector<8x128xf32>
    %cst_29 = arith.constant 1.000000e+00 : f32
    %65 = vector.broadcast %cst_29 : f32 to vector<8x128xf32>
    %66 = arith.addf %65, %64 : vector<8x128xf32>
    %67 = arith.divf %65, %66 : vector<8x128xf32>
    %68 = vector.extract_strided_slice %51 {offsets = [0, 256], sizes = [8, 128], strides = [1, 1]} : vector<8x384xf32> to vector<8x128xf32>
    %69 = vector.extract_strided_slice %20 {offsets = [0, 256], sizes = [8, 128], strides = [1, 1]} : vector<8x384xf32> to vector<8x128xf32>
    %70 = arith.addf %69, %16 : vector<8x128xf32>
    %71 = arith.mulf %59, %70 : vector<8x128xf32>
    %72 = arith.addf %68, %71 : vector<8x128xf32>
    %73 = math.tanh %72 : vector<8x128xf32>
    %74 = arith.subf %18, %73 : vector<8x128xf32>
    %75 = arith.mulf %67, %74 : vector<8x128xf32>
    %76 = arith.addf %73, %75 : vector<8x128xf32>
    %c0_30 = arith.constant 0 : index
    %c0_31 = arith.constant 0 : index
    %77 = vector.load %arg6[%c0_30, %c0_31] : memref<128x384xf32, #tpu.memory_space<vmem>>, vector<128x384xf32>
    %cst_32 = arith.constant dense<0.000000e+00> : vector<8x384xf32>
    %78 = tpu.matmul %76, %77, %cst_32 {dimension_numbers = #tpu.dot_dimension_numbers<[1], [0], [0], [1], [0, 0, 1, 1], [], []>} : vector<8x128xf32>, vector<128x384xf32>, vector<8x384xf32> -> vector<8x384xf32>
    %c8 = arith.constant 8 : index
    %c0_33 = arith.constant 0 : index
    %79 = vector.load %arg12[%c8, %c0_33] : memref<64x384xf32, #tpu.memory_space<vmem>>, vector<8x384xf32>
    %c0_34 = arith.constant 0 : index
    %c0_35 = arith.constant 0 : index
    %80 = vector.load %arg2[%c0_34, %c0_35] : memref<128x384xf32, #tpu.memory_space<vmem>>, vector<128x384xf32>
    %cst_36 = arith.constant dense<0.000000e+00> : vector<8x384xf32>
    %81 = tpu.matmul %48, %80, %cst_36 {dimension_numbers = #tpu.dot_dimension_numbers<[1], [0], [0], [1], [0, 0, 1, 1], [], []>} : vector<8x128xf32>, vector<128x384xf32>, vector<8x384xf32> -> vector<8x384xf32>
    %82 = vector.extract_strided_slice %79 {offsets = [0, 0], sizes = [8, 128], strides = [1, 1]} : vector<8x384xf32> to vector<8x128xf32>
    %83 = vector.extract_strided_slice %81 {offsets = [0, 0], sizes = [8, 128], strides = [1, 1]} : vector<8x384xf32> to vector<8x128xf32>
    %84 = arith.addf %82, %83 : vector<8x128xf32>
    %85 = arith.negf %84 : vector<8x128xf32>
    %86 = math.exp %85 : vector<8x128xf32>
    %cst_37 = arith.constant 1.000000e+00 : f32
    %87 = vector.broadcast %cst_37 : f32 to vector<8x128xf32>
    %88 = arith.addf %87, %86 : vector<8x128xf32>
    %89 = arith.divf %87, %88 : vector<8x128xf32>
    %90 = vector.extract_strided_slice %79 {offsets = [0, 128], sizes = [8, 128], strides = [1, 1]} : vector<8x384xf32> to vector<8x128xf32>
    %91 = vector.extract_strided_slice %81 {offsets = [0, 128], sizes = [8, 128], strides = [1, 1]} : vector<8x384xf32> to vector<8x128xf32>
    %92 = arith.addf %90, %91 : vector<8x128xf32>
    %93 = arith.negf %92 : vector<8x128xf32>
    %94 = math.exp %93 : vector<8x128xf32>
    %cst_38 = arith.constant 1.000000e+00 : f32
    %95 = vector.broadcast %cst_38 : f32 to vector<8x128xf32>
    %96 = arith.addf %95, %94 : vector<8x128xf32>
    %97 = arith.divf %95, %96 : vector<8x128xf32>
    %98 = vector.extract_strided_slice %79 {offsets = [0, 256], sizes = [8, 128], strides = [1, 1]} : vector<8x384xf32> to vector<8x128xf32>
    %99 = vector.extract_strided_slice %81 {offsets = [0, 256], sizes = [8, 128], strides = [1, 1]} : vector<8x384xf32> to vector<8x128xf32>
    %100 = arith.addf %99, %10 : vector<8x128xf32>
    %101 = arith.mulf %89, %100 : vector<8x128xf32>
    %102 = arith.addf %98, %101 : vector<8x128xf32>
    %103 = math.tanh %102 : vector<8x128xf32>
    %104 = arith.subf %48, %103 : vector<8x128xf32>
    %105 = arith.mulf %97, %104 : vector<8x128xf32>
    %106 = arith.addf %103, %105 : vector<8x128xf32>
    %c0_39 = arith.constant 0 : index
    %c0_40 = arith.constant 0 : index
    %107 = vector.load %arg5[%c0_39, %c0_40] : memref<128x384xf32, #tpu.memory_space<vmem>>, vector<128x384xf32>
    %cst_41 = arith.constant dense<0.000000e+00> : vector<8x384xf32>
    %108 = tpu.matmul %106, %107, %cst_41 {dimension_numbers = #tpu.dot_dimension_numbers<[1], [0], [0], [1], [0, 0, 1, 1], [], []>} : vector<8x128xf32>, vector<128x384xf32>, vector<8x384xf32> -> vector<8x384xf32>
    %109 = arith.addf %108, %13 : vector<8x384xf32>
    %110 = vector.extract_strided_slice %109 {offsets = [0, 0], sizes = [8, 128], strides = [1, 1]} : vector<8x384xf32> to vector<8x128xf32>
    %111 = vector.extract_strided_slice %78 {offsets = [0, 0], sizes = [8, 128], strides = [1, 1]} : vector<8x384xf32> to vector<8x128xf32>
    %112 = arith.addf %110, %111 : vector<8x128xf32>
    %113 = arith.negf %112 : vector<8x128xf32>
    %114 = math.exp %113 : vector<8x128xf32>
    %cst_42 = arith.constant 1.000000e+00 : f32
    %115 = vector.broadcast %cst_42 : f32 to vector<8x128xf32>
    %116 = arith.addf %115, %114 : vector<8x128xf32>
    %117 = arith.divf %115, %116 : vector<8x128xf32>
    %118 = vector.extract_strided_slice %109 {offsets = [0, 128], sizes = [8, 128], strides = [1, 1]} : vector<8x384xf32> to vector<8x128xf32>
    %119 = vector.extract_strided_slice %78 {offsets = [0, 128], sizes = [8, 128], strides = [1, 1]} : vector<8x384xf32> to vector<8x128xf32>
    %120 = arith.addf %118, %119 : vector<8x128xf32>
    %121 = arith.negf %120 : vector<8x128xf32>
    %122 = math.exp %121 : vector<8x128xf32>
    %cst_43 = arith.constant 1.000000e+00 : f32
    %123 = vector.broadcast %cst_43 : f32 to vector<8x128xf32>
    %124 = arith.addf %123, %122 : vector<8x128xf32>
    %125 = arith.divf %123, %124 : vector<8x128xf32>
    %126 = vector.extract_strided_slice %109 {offsets = [0, 256], sizes = [8, 128], strides = [1, 1]} : vector<8x384xf32> to vector<8x128xf32>
    %127 = vector.extract_strided_slice %78 {offsets = [0, 256], sizes = [8, 128], strides = [1, 1]} : vector<8x384xf32> to vector<8x128xf32>
    %128 = arith.addf %127, %16 : vector<8x128xf32>
    %129 = arith.mulf %117, %128 : vector<8x128xf32>
    %130 = arith.addf %126, %129 : vector<8x128xf32>
    %131 = math.tanh %130 : vector<8x128xf32>
    %132 = arith.subf %76, %131 : vector<8x128xf32>
    %133 = arith.mulf %125, %132 : vector<8x128xf32>
    %134 = arith.addf %131, %133 : vector<8x128xf32>
    %c0_44 = arith.constant 0 : index
    %c0_45 = arith.constant 0 : index
    %135 = vector.load %arg6[%c0_44, %c0_45] : memref<128x384xf32, #tpu.memory_space<vmem>>, vector<128x384xf32>
    %cst_46 = arith.constant dense<0.000000e+00> : vector<8x384xf32>
    %136 = tpu.matmul %134, %135, %cst_46 {dimension_numbers = #tpu.dot_dimension_numbers<[1], [0], [0], [1], [0, 0, 1, 1], [], []>} : vector<8x128xf32>, vector<128x384xf32>, vector<8x384xf32> -> vector<8x384xf32>
    %c16 = arith.constant 16 : index
    %c0_47 = arith.constant 0 : index
    %137 = vector.load %arg12[%c16, %c0_47] : memref<64x384xf32, #tpu.memory_space<vmem>>, vector<8x384xf32>
    %c0_48 = arith.constant 0 : index
    %c0_49 = arith.constant 0 : index
    %138 = vector.load %arg2[%c0_48, %c0_49] : memref<128x384xf32, #tpu.memory_space<vmem>>, vector<128x384xf32>
    %cst_50 = arith.constant dense<0.000000e+00> : vector<8x384xf32>
    %139 = tpu.matmul %106, %138, %cst_50 {dimension_numbers = #tpu.dot_dimension_numbers<[1], [0], [0], [1], [0, 0, 1, 1], [], []>} : vector<8x128xf32>, vector<128x384xf32>, vector<8x384xf32> -> vector<8x384xf32>
    %140 = vector.extract_strided_slice %137 {offsets = [0, 0], sizes = [8, 128], strides = [1, 1]} : vector<8x384xf32> to vector<8x128xf32>
    %141 = vector.extract_strided_slice %139 {offsets = [0, 0], sizes = [8, 128], strides = [1, 1]} : vector<8x384xf32> to vector<8x128xf32>
    %142 = arith.addf %140, %141 : vector<8x128xf32>
    %143 = arith.negf %142 : vector<8x128xf32>
    %144 = math.exp %143 : vector<8x128xf32>
    %cst_51 = arith.constant 1.000000e+00 : f32
    %145 = vector.broadcast %cst_51 : f32 to vector<8x128xf32>
    %146 = arith.addf %145, %144 : vector<8x128xf32>
    %147 = arith.divf %145, %146 : vector<8x128xf32>
    %148 = vector.extract_strided_slice %137 {offsets = [0, 128], sizes = [8, 128], strides = [1, 1]} : vector<8x384xf32> to vector<8x128xf32>
    %149 = vector.extract_strided_slice %139 {offsets = [0, 128], sizes = [8, 128], strides = [1, 1]} : vector<8x384xf32> to vector<8x128xf32>
    %150 = arith.addf %148, %149 : vector<8x128xf32>
    %151 = arith.negf %150 : vector<8x128xf32>
    %152 = math.exp %151 : vector<8x128xf32>
    %cst_52 = arith.constant 1.000000e+00 : f32
    %153 = vector.broadcast %cst_52 : f32 to vector<8x128xf32>
    %154 = arith.addf %153, %152 : vector<8x128xf32>
    %155 = arith.divf %153, %154 : vector<8x128xf32>
    %156 = vector.extract_strided_slice %137 {offsets = [0, 256], sizes = [8, 128], strides = [1, 1]} : vector<8x384xf32> to vector<8x128xf32>
    %157 = vector.extract_strided_slice %139 {offsets = [0, 256], sizes = [8, 128], strides = [1, 1]} : vector<8x384xf32> to vector<8x128xf32>
    %158 = arith.addf %157, %10 : vector<8x128xf32>
    %159 = arith.mulf %147, %158 : vector<8x128xf32>
    %160 = arith.addf %156, %159 : vector<8x128xf32>
    %161 = math.tanh %160 : vector<8x128xf32>
    %162 = arith.subf %106, %161 : vector<8x128xf32>
    %163 = arith.mulf %155, %162 : vector<8x128xf32>
    %164 = arith.addf %161, %163 : vector<8x128xf32>
    %c0_53 = arith.constant 0 : index
    %c0_54 = arith.constant 0 : index
    %165 = vector.load %arg5[%c0_53, %c0_54] : memref<128x384xf32, #tpu.memory_space<vmem>>, vector<128x384xf32>
    %cst_55 = arith.constant dense<0.000000e+00> : vector<8x384xf32>
    %166 = tpu.matmul %164, %165, %cst_55 {dimension_numbers = #tpu.dot_dimension_numbers<[1], [0], [0], [1], [0, 0, 1, 1], [], []>} : vector<8x128xf32>, vector<128x384xf32>, vector<8x384xf32> -> vector<8x384xf32>
    %167 = arith.addf %166, %13 : vector<8x384xf32>
    %168 = vector.extract_strided_slice %167 {offsets = [0, 0], sizes = [8, 128], strides = [1, 1]} : vector<8x384xf32> to vector<8x128xf32>
    %169 = vector.extract_strided_slice %136 {offsets = [0, 0], sizes = [8, 128], strides = [1, 1]} : vector<8x384xf32> to vector<8x128xf32>
    %170 = arith.addf %168, %169 : vector<8x128xf32>
    %171 = arith.negf %170 : vector<8x128xf32>
    %172 = math.exp %171 : vector<8x128xf32>
    %cst_56 = arith.constant 1.000000e+00 : f32
    %173 = vector.broadcast %cst_56 : f32 to vector<8x128xf32>
    %174 = arith.addf %173, %172 : vector<8x128xf32>
    %175 = arith.divf %173, %174 : vector<8x128xf32>
    %176 = vector.extract_strided_slice %167 {offsets = [0, 128], sizes = [8, 128], strides = [1, 1]} : vector<8x384xf32> to vector<8x128xf32>
    %177 = vector.extract_strided_slice %136 {offsets = [0, 128], sizes = [8, 128], strides = [1, 1]} : vector<8x384xf32> to vector<8x128xf32>
    %178 = arith.addf %176, %177 : vector<8x128xf32>
    %179 = arith.negf %178 : vector<8x128xf32>
    %180 = math.exp %179 : vector<8x128xf32>
    %cst_57 = arith.constant 1.000000e+00 : f32
    %181 = vector.broadcast %cst_57 : f32 to vector<8x128xf32>
    %182 = arith.addf %181, %180 : vector<8x128xf32>
    %183 = arith.divf %181, %182 : vector<8x128xf32>
    %184 = vector.extract_strided_slice %167 {offsets = [0, 256], sizes = [8, 128], strides = [1, 1]} : vector<8x384xf32> to vector<8x128xf32>
    %185 = vector.extract_strided_slice %136 {offsets = [0, 256], sizes = [8, 128], strides = [1, 1]} : vector<8x384xf32> to vector<8x128xf32>
    %186 = arith.addf %185, %16 : vector<8x128xf32>
    %187 = arith.mulf %175, %186 : vector<8x128xf32>
    %188 = arith.addf %184, %187 : vector<8x128xf32>
    %189 = math.tanh %188 : vector<8x128xf32>
    %190 = arith.subf %134, %189 : vector<8x128xf32>
    %191 = arith.mulf %183, %190 : vector<8x128xf32>
    %192 = arith.addf %189, %191 : vector<8x128xf32>
    %c0_58 = arith.constant 0 : index
    %c0_59 = arith.constant 0 : index
    %193 = vector.load %arg6[%c0_58, %c0_59] : memref<128x384xf32, #tpu.memory_space<vmem>>, vector<128x384xf32>
    %cst_60 = arith.constant dense<0.000000e+00> : vector<8x384xf32>
    %194 = tpu.matmul %192, %193, %cst_60 {dimension_numbers = #tpu.dot_dimension_numbers<[1], [0], [0], [1], [0, 0, 1, 1], [], []>} : vector<8x128xf32>, vector<128x384xf32>, vector<8x384xf32> -> vector<8x384xf32>
    %c24 = arith.constant 24 : index
    %c0_61 = arith.constant 0 : index
    %195 = vector.load %arg12[%c24, %c0_61] : memref<64x384xf32, #tpu.memory_space<vmem>>, vector<8x384xf32>
    %c0_62 = arith.constant 0 : index
    %c0_63 = arith.constant 0 : index
    %196 = vector.load %arg2[%c0_62, %c0_63] : memref<128x384xf32, #tpu.memory_space<vmem>>, vector<128x384xf32>
    %cst_64 = arith.constant dense<0.000000e+00> : vector<8x384xf32>
    %197 = tpu.matmul %164, %196, %cst_64 {dimension_numbers = #tpu.dot_dimension_numbers<[1], [0], [0], [1], [0, 0, 1, 1], [], []>} : vector<8x128xf32>, vector<128x384xf32>, vector<8x384xf32> -> vector<8x384xf32>
    %198 = vector.extract_strided_slice %195 {offsets = [0, 0], sizes = [8, 128], strides = [1, 1]} : vector<8x384xf32> to vector<8x128xf32>
    %199 = vector.extract_strided_slice %197 {offsets = [0, 0], sizes = [8, 128], strides = [1, 1]} : vector<8x384xf32> to vector<8x128xf32>
    %200 = arith.addf %198, %199 : vector<8x128xf32>
    %201 = arith.negf %200 : vector<8x128xf32>
    %202 = math.exp %201 : vector<8x128xf32>
    %cst_65 = arith.constant 1.000000e+00 : f32
    %203 = vector.broadcast %cst_65 : f32 to vector<8x128xf32>
    %204 = arith.addf %203, %202 : vector<8x128xf32>
    %205 = arith.divf %203, %204 : vector<8x128xf32>
    %206 = vector.extract_strided_slice %195 {offsets = [0, 128], sizes = [8, 128], strides = [1, 1]} : vector<8x384xf32> to vector<8x128xf32>
    %207 = vector.extract_strided_slice %197 {offsets = [0, 128], sizes = [8, 128], strides = [1, 1]} : vector<8x384xf32> to vector<8x128xf32>
    %208 = arith.addf %206, %207 : vector<8x128xf32>
    %209 = arith.negf %208 : vector<8x128xf32>
    %210 = math.exp %209 : vector<8x128xf32>
    %cst_66 = arith.constant 1.000000e+00 : f32
    %211 = vector.broadcast %cst_66 : f32 to vector<8x128xf32>
    %212 = arith.addf %211, %210 : vector<8x128xf32>
    %213 = arith.divf %211, %212 : vector<8x128xf32>
    %214 = vector.extract_strided_slice %195 {offsets = [0, 256], sizes = [8, 128], strides = [1, 1]} : vector<8x384xf32> to vector<8x128xf32>
    %215 = vector.extract_strided_slice %197 {offsets = [0, 256], sizes = [8, 128], strides = [1, 1]} : vector<8x384xf32> to vector<8x128xf32>
    %216 = arith.addf %215, %10 : vector<8x128xf32>
    %217 = arith.mulf %205, %216 : vector<8x128xf32>
    %218 = arith.addf %214, %217 : vector<8x128xf32>
    %219 = math.tanh %218 : vector<8x128xf32>
    %220 = arith.subf %164, %219 : vector<8x128xf32>
    %221 = arith.mulf %213, %220 : vector<8x128xf32>
    %222 = arith.addf %219, %221 : vector<8x128xf32>
    %c0_67 = arith.constant 0 : index
    %c0_68 = arith.constant 0 : index
    %223 = vector.load %arg5[%c0_67, %c0_68] : memref<128x384xf32, #tpu.memory_space<vmem>>, vector<128x384xf32>
    %cst_69 = arith.constant dense<0.000000e+00> : vector<8x384xf32>
    %224 = tpu.matmul %222, %223, %cst_69 {dimension_numbers = #tpu.dot_dimension_numbers<[1], [0], [0], [1], [0, 0, 1, 1], [], []>} : vector<8x128xf32>, vector<128x384xf32>, vector<8x384xf32> -> vector<8x384xf32>
    %225 = arith.addf %224, %13 : vector<8x384xf32>
    %226 = vector.extract_strided_slice %225 {offsets = [0, 0], sizes = [8, 128], strides = [1, 1]} : vector<8x384xf32> to vector<8x128xf32>
    %227 = vector.extract_strided_slice %194 {offsets = [0, 0], sizes = [8, 128], strides = [1, 1]} : vector<8x384xf32> to vector<8x128xf32>
    %228 = arith.addf %226, %227 : vector<8x128xf32>
    %229 = arith.negf %228 : vector<8x128xf32>
    %230 = math.exp %229 : vector<8x128xf32>
    %cst_70 = arith.constant 1.000000e+00 : f32
    %231 = vector.broadcast %cst_70 : f32 to vector<8x128xf32>
    %232 = arith.addf %231, %230 : vector<8x128xf32>
    %233 = arith.divf %231, %232 : vector<8x128xf32>
    %234 = vector.extract_strided_slice %225 {offsets = [0, 128], sizes = [8, 128], strides = [1, 1]} : vector<8x384xf32> to vector<8x128xf32>
    %235 = vector.extract_strided_slice %194 {offsets = [0, 128], sizes = [8, 128], strides = [1, 1]} : vector<8x384xf32> to vector<8x128xf32>
    %236 = arith.addf %234, %235 : vector<8x128xf32>
    %237 = arith.negf %236 : vector<8x128xf32>
    %238 = math.exp %237 : vector<8x128xf32>
    %cst_71 = arith.constant 1.000000e+00 : f32
    %239 = vector.broadcast %cst_71 : f32 to vector<8x128xf32>
    %240 = arith.addf %239, %238 : vector<8x128xf32>
    %241 = arith.divf %239, %240 : vector<8x128xf32>
    %242 = vector.extract_strided_slice %225 {offsets = [0, 256], sizes = [8, 128], strides = [1, 1]} : vector<8x384xf32> to vector<8x128xf32>
    %243 = vector.extract_strided_slice %194 {offsets = [0, 256], sizes = [8, 128], strides = [1, 1]} : vector<8x384xf32> to vector<8x128xf32>
    %244 = arith.addf %243, %16 : vector<8x128xf32>
    %245 = arith.mulf %233, %244 : vector<8x128xf32>
    %246 = arith.addf %242, %245 : vector<8x128xf32>
    %247 = math.tanh %246 : vector<8x128xf32>
    %248 = arith.subf %192, %247 : vector<8x128xf32>
    %249 = arith.mulf %241, %248 : vector<8x128xf32>
    %250 = arith.addf %247, %249 : vector<8x128xf32>
    %c0_72 = arith.constant 0 : index
    %c0_73 = arith.constant 0 : index
    %251 = vector.load %arg6[%c0_72, %c0_73] : memref<128x384xf32, #tpu.memory_space<vmem>>, vector<128x384xf32>
    %cst_74 = arith.constant dense<0.000000e+00> : vector<8x384xf32>
    %252 = tpu.matmul %250, %251, %cst_74 {dimension_numbers = #tpu.dot_dimension_numbers<[1], [0], [0], [1], [0, 0, 1, 1], [], []>} : vector<8x128xf32>, vector<128x384xf32>, vector<8x384xf32> -> vector<8x384xf32>
    %c32 = arith.constant 32 : index
    %c0_75 = arith.constant 0 : index
    %253 = vector.load %arg12[%c32, %c0_75] : memref<64x384xf32, #tpu.memory_space<vmem>>, vector<8x384xf32>
    %c0_76 = arith.constant 0 : index
    %c0_77 = arith.constant 0 : index
    %254 = vector.load %arg2[%c0_76, %c0_77] : memref<128x384xf32, #tpu.memory_space<vmem>>, vector<128x384xf32>
    %cst_78 = arith.constant dense<0.000000e+00> : vector<8x384xf32>
    %255 = tpu.matmul %222, %254, %cst_78 {dimension_numbers = #tpu.dot_dimension_numbers<[1], [0], [0], [1], [0, 0, 1, 1], [], []>} : vector<8x128xf32>, vector<128x384xf32>, vector<8x384xf32> -> vector<8x384xf32>
    %256 = vector.extract_strided_slice %253 {offsets = [0, 0], sizes = [8, 128], strides = [1, 1]} : vector<8x384xf32> to vector<8x128xf32>
    %257 = vector.extract_strided_slice %255 {offsets = [0, 0], sizes = [8, 128], strides = [1, 1]} : vector<8x384xf32> to vector<8x128xf32>
    %258 = arith.addf %256, %257 : vector<8x128xf32>
    %259 = arith.negf %258 : vector<8x128xf32>
    %260 = math.exp %259 : vector<8x128xf32>
    %cst_79 = arith.constant 1.000000e+00 : f32
    %261 = vector.broadcast %cst_79 : f32 to vector<8x128xf32>
    %262 = arith.addf %261, %260 : vector<8x128xf32>
    %263 = arith.divf %261, %262 : vector<8x128xf32>
    %264 = vector.extract_strided_slice %253 {offsets = [0, 128], sizes = [8, 128], strides = [1, 1]} : vector<8x384xf32> to vector<8x128xf32>
    %265 = vector.extract_strided_slice %255 {offsets = [0, 128], sizes = [8, 128], strides = [1, 1]} : vector<8x384xf32> to vector<8x128xf32>
    %266 = arith.addf %264, %265 : vector<8x128xf32>
    %267 = arith.negf %266 : vector<8x128xf32>
    %268 = math.exp %267 : vector<8x128xf32>
    %cst_80 = arith.constant 1.000000e+00 : f32
    %269 = vector.broadcast %cst_80 : f32 to vector<8x128xf32>
    %270 = arith.addf %269, %268 : vector<8x128xf32>
    %271 = arith.divf %269, %270 : vector<8x128xf32>
    %272 = vector.extract_strided_slice %253 {offsets = [0, 256], sizes = [8, 128], strides = [1, 1]} : vector<8x384xf32> to vector<8x128xf32>
    %273 = vector.extract_strided_slice %255 {offsets = [0, 256], sizes = [8, 128], strides = [1, 1]} : vector<8x384xf32> to vector<8x128xf32>
    %274 = arith.addf %273, %10 : vector<8x128xf32>
    %275 = arith.mulf %263, %274 : vector<8x128xf32>
    %276 = arith.addf %272, %275 : vector<8x128xf32>
    %277 = math.tanh %276 : vector<8x128xf32>
    %278 = arith.subf %222, %277 : vector<8x128xf32>
    %279 = arith.mulf %271, %278 : vector<8x128xf32>
    %280 = arith.addf %277, %279 : vector<8x128xf32>
    %c0_81 = arith.constant 0 : index
    %c0_82 = arith.constant 0 : index
    %281 = vector.load %arg5[%c0_81, %c0_82] : memref<128x384xf32, #tpu.memory_space<vmem>>, vector<128x384xf32>
    %cst_83 = arith.constant dense<0.000000e+00> : vector<8x384xf32>
    %282 = tpu.matmul %280, %281, %cst_83 {dimension_numbers = #tpu.dot_dimension_numbers<[1], [0], [0], [1], [0, 0, 1, 1], [], []>} : vector<8x128xf32>, vector<128x384xf32>, vector<8x384xf32> -> vector<8x384xf32>
    %283 = arith.addf %282, %13 : vector<8x384xf32>
    %284 = vector.extract_strided_slice %283 {offsets = [0, 0], sizes = [8, 128], strides = [1, 1]} : vector<8x384xf32> to vector<8x128xf32>
    %285 = vector.extract_strided_slice %252 {offsets = [0, 0], sizes = [8, 128], strides = [1, 1]} : vector<8x384xf32> to vector<8x128xf32>
    %286 = arith.addf %284, %285 : vector<8x128xf32>
    %287 = arith.negf %286 : vector<8x128xf32>
    %288 = math.exp %287 : vector<8x128xf32>
    %cst_84 = arith.constant 1.000000e+00 : f32
    %289 = vector.broadcast %cst_84 : f32 to vector<8x128xf32>
    %290 = arith.addf %289, %288 : vector<8x128xf32>
    %291 = arith.divf %289, %290 : vector<8x128xf32>
    %292 = vector.extract_strided_slice %283 {offsets = [0, 128], sizes = [8, 128], strides = [1, 1]} : vector<8x384xf32> to vector<8x128xf32>
    %293 = vector.extract_strided_slice %252 {offsets = [0, 128], sizes = [8, 128], strides = [1, 1]} : vector<8x384xf32> to vector<8x128xf32>
    %294 = arith.addf %292, %293 : vector<8x128xf32>
    %295 = arith.negf %294 : vector<8x128xf32>
    %296 = math.exp %295 : vector<8x128xf32>
    %cst_85 = arith.constant 1.000000e+00 : f32
    %297 = vector.broadcast %cst_85 : f32 to vector<8x128xf32>
    %298 = arith.addf %297, %296 : vector<8x128xf32>
    %299 = arith.divf %297, %298 : vector<8x128xf32>
    %300 = vector.extract_strided_slice %283 {offsets = [0, 256], sizes = [8, 128], strides = [1, 1]} : vector<8x384xf32> to vector<8x128xf32>
    %301 = vector.extract_strided_slice %252 {offsets = [0, 256], sizes = [8, 128], strides = [1, 1]} : vector<8x384xf32> to vector<8x128xf32>
    %302 = arith.addf %301, %16 : vector<8x128xf32>
    %303 = arith.mulf %291, %302 : vector<8x128xf32>
    %304 = arith.addf %300, %303 : vector<8x128xf32>
    %305 = math.tanh %304 : vector<8x128xf32>
    %306 = arith.subf %250, %305 : vector<8x128xf32>
    %307 = arith.mulf %299, %306 : vector<8x128xf32>
    %308 = arith.addf %305, %307 : vector<8x128xf32>
    %c0_86 = arith.constant 0 : index
    %c0_87 = arith.constant 0 : index
    %309 = vector.load %arg6[%c0_86, %c0_87] : memref<128x384xf32, #tpu.memory_space<vmem>>, vector<128x384xf32>
    %cst_88 = arith.constant dense<0.000000e+00> : vector<8x384xf32>
    %310 = tpu.matmul %308, %309, %cst_88 {dimension_numbers = #tpu.dot_dimension_numbers<[1], [0], [0], [1], [0, 0, 1, 1], [], []>} : vector<8x128xf32>, vector<128x384xf32>, vector<8x384xf32> -> vector<8x384xf32>
    %c40 = arith.constant 40 : index
    %c0_89 = arith.constant 0 : index
    %311 = vector.load %arg12[%c40, %c0_89] : memref<64x384xf32, #tpu.memory_space<vmem>>, vector<8x384xf32>
    %c0_90 = arith.constant 0 : index
    %c0_91 = arith.constant 0 : index
    %312 = vector.load %arg2[%c0_90, %c0_91] : memref<128x384xf32, #tpu.memory_space<vmem>>, vector<128x384xf32>
    %cst_92 = arith.constant dense<0.000000e+00> : vector<8x384xf32>
    %313 = tpu.matmul %280, %312, %cst_92 {dimension_numbers = #tpu.dot_dimension_numbers<[1], [0], [0], [1], [0, 0, 1, 1], [], []>} : vector<8x128xf32>, vector<128x384xf32>, vector<8x384xf32> -> vector<8x384xf32>
    %314 = vector.extract_strided_slice %311 {offsets = [0, 0], sizes = [8, 128], strides = [1, 1]} : vector<8x384xf32> to vector<8x128xf32>
    %315 = vector.extract_strided_slice %313 {offsets = [0, 0], sizes = [8, 128], strides = [1, 1]} : vector<8x384xf32> to vector<8x128xf32>
    %316 = arith.addf %314, %315 : vector<8x128xf32>
    %317 = arith.negf %316 : vector<8x128xf32>
    %318 = math.exp %317 : vector<8x128xf32>
    %cst_93 = arith.constant 1.000000e+00 : f32
    %319 = vector.broadcast %cst_93 : f32 to vector<8x128xf32>
    %320 = arith.addf %319, %318 : vector<8x128xf32>
    %321 = arith.divf %319, %320 : vector<8x128xf32>
    %322 = vector.extract_strided_slice %311 {offsets = [0, 128], sizes = [8, 128], strides = [1, 1]} : vector<8x384xf32> to vector<8x128xf32>
    %323 = vector.extract_strided_slice %313 {offsets = [0, 128], sizes = [8, 128], strides = [1, 1]} : vector<8x384xf32> to vector<8x128xf32>
    %324 = arith.addf %322, %323 : vector<8x128xf32>
    %325 = arith.negf %324 : vector<8x128xf32>
    %326 = math.exp %325 : vector<8x128xf32>
    %cst_94 = arith.constant 1.000000e+00 : f32
    %327 = vector.broadcast %cst_94 : f32 to vector<8x128xf32>
    %328 = arith.addf %327, %326 : vector<8x128xf32>
    %329 = arith.divf %327, %328 : vector<8x128xf32>
    %330 = vector.extract_strided_slice %311 {offsets = [0, 256], sizes = [8, 128], strides = [1, 1]} : vector<8x384xf32> to vector<8x128xf32>
    %331 = vector.extract_strided_slice %313 {offsets = [0, 256], sizes = [8, 128], strides = [1, 1]} : vector<8x384xf32> to vector<8x128xf32>
    %332 = arith.addf %331, %10 : vector<8x128xf32>
    %333 = arith.mulf %321, %332 : vector<8x128xf32>
    %334 = arith.addf %330, %333 : vector<8x128xf32>
    %335 = math.tanh %334 : vector<8x128xf32>
    %336 = arith.subf %280, %335 : vector<8x128xf32>
    %337 = arith.mulf %329, %336 : vector<8x128xf32>
    %338 = arith.addf %335, %337 : vector<8x128xf32>
    %c0_95 = arith.constant 0 : index
    %c0_96 = arith.constant 0 : index
    %339 = vector.load %arg5[%c0_95, %c0_96] : memref<128x384xf32, #tpu.memory_space<vmem>>, vector<128x384xf32>
    %cst_97 = arith.constant dense<0.000000e+00> : vector<8x384xf32>
    %340 = tpu.matmul %338, %339, %cst_97 {dimension_numbers = #tpu.dot_dimension_numbers<[1], [0], [0], [1], [0, 0, 1, 1], [], []>} : vector<8x128xf32>, vector<128x384xf32>, vector<8x384xf32> -> vector<8x384xf32>
    %341 = arith.addf %340, %13 : vector<8x384xf32>
    %342 = vector.extract_strided_slice %341 {offsets = [0, 0], sizes = [8, 128], strides = [1, 1]} : vector<8x384xf32> to vector<8x128xf32>
    %343 = vector.extract_strided_slice %310 {offsets = [0, 0], sizes = [8, 128], strides = [1, 1]} : vector<8x384xf32> to vector<8x128xf32>
    %344 = arith.addf %342, %343 : vector<8x128xf32>
    %345 = arith.negf %344 : vector<8x128xf32>
    %346 = math.exp %345 : vector<8x128xf32>
    %cst_98 = arith.constant 1.000000e+00 : f32
    %347 = vector.broadcast %cst_98 : f32 to vector<8x128xf32>
    %348 = arith.addf %347, %346 : vector<8x128xf32>
    %349 = arith.divf %347, %348 : vector<8x128xf32>
    %350 = vector.extract_strided_slice %341 {offsets = [0, 128], sizes = [8, 128], strides = [1, 1]} : vector<8x384xf32> to vector<8x128xf32>
    %351 = vector.extract_strided_slice %310 {offsets = [0, 128], sizes = [8, 128], strides = [1, 1]} : vector<8x384xf32> to vector<8x128xf32>
    %352 = arith.addf %350, %351 : vector<8x128xf32>
    %353 = arith.negf %352 : vector<8x128xf32>
    %354 = math.exp %353 : vector<8x128xf32>
    %cst_99 = arith.constant 1.000000e+00 : f32
    %355 = vector.broadcast %cst_99 : f32 to vector<8x128xf32>
    %356 = arith.addf %355, %354 : vector<8x128xf32>
    %357 = arith.divf %355, %356 : vector<8x128xf32>
    %358 = vector.extract_strided_slice %341 {offsets = [0, 256], sizes = [8, 128], strides = [1, 1]} : vector<8x384xf32> to vector<8x128xf32>
    %359 = vector.extract_strided_slice %310 {offsets = [0, 256], sizes = [8, 128], strides = [1, 1]} : vector<8x384xf32> to vector<8x128xf32>
    %360 = arith.addf %359, %16 : vector<8x128xf32>
    %361 = arith.mulf %349, %360 : vector<8x128xf32>
    %362 = arith.addf %358, %361 : vector<8x128xf32>
    %363 = math.tanh %362 : vector<8x128xf32>
    %364 = arith.subf %308, %363 : vector<8x128xf32>
    %365 = arith.mulf %357, %364 : vector<8x128xf32>
    %366 = arith.addf %363, %365 : vector<8x128xf32>
    %c0_100 = arith.constant 0 : index
    %c0_101 = arith.constant 0 : index
    %367 = vector.load %arg6[%c0_100, %c0_101] : memref<128x384xf32, #tpu.memory_space<vmem>>, vector<128x384xf32>
    %cst_102 = arith.constant dense<0.000000e+00> : vector<8x384xf32>
    %368 = tpu.matmul %366, %367, %cst_102 {dimension_numbers = #tpu.dot_dimension_numbers<[1], [0], [0], [1], [0, 0, 1, 1], [], []>} : vector<8x128xf32>, vector<128x384xf32>, vector<8x384xf32> -> vector<8x384xf32>
    %c48 = arith.constant 48 : index
    %c0_103 = arith.constant 0 : index
    %369 = vector.load %arg12[%c48, %c0_103] : memref<64x384xf32, #tpu.memory_space<vmem>>, vector<8x384xf32>
    %c0_104 = arith.constant 0 : index
    %c0_105 = arith.constant 0 : index
    %370 = vector.load %arg2[%c0_104, %c0_105] : memref<128x384xf32, #tpu.memory_space<vmem>>, vector<128x384xf32>
    %cst_106 = arith.constant dense<0.000000e+00> : vector<8x384xf32>
    %371 = tpu.matmul %338, %370, %cst_106 {dimension_numbers = #tpu.dot_dimension_numbers<[1], [0], [0], [1], [0, 0, 1, 1], [], []>} : vector<8x128xf32>, vector<128x384xf32>, vector<8x384xf32> -> vector<8x384xf32>
    %372 = vector.extract_strided_slice %369 {offsets = [0, 0], sizes = [8, 128], strides = [1, 1]} : vector<8x384xf32> to vector<8x128xf32>
    %373 = vector.extract_strided_slice %371 {offsets = [0, 0], sizes = [8, 128], strides = [1, 1]} : vector<8x384xf32> to vector<8x128xf32>
    %374 = arith.addf %372, %373 : vector<8x128xf32>
    %375 = arith.negf %374 : vector<8x128xf32>
    %376 = math.exp %375 : vector<8x128xf32>
    %cst_107 = arith.constant 1.000000e+00 : f32
    %377 = vector.broadcast %cst_107 : f32 to vector<8x128xf32>
    %378 = arith.addf %377, %376 : vector<8x128xf32>
    %379 = arith.divf %377, %378 : vector<8x128xf32>
    %380 = vector.extract_strided_slice %369 {offsets = [0, 128], sizes = [8, 128], strides = [1, 1]} : vector<8x384xf32> to vector<8x128xf32>
    %381 = vector.extract_strided_slice %371 {offsets = [0, 128], sizes = [8, 128], strides = [1, 1]} : vector<8x384xf32> to vector<8x128xf32>
    %382 = arith.addf %380, %381 : vector<8x128xf32>
    %383 = arith.negf %382 : vector<8x128xf32>
    %384 = math.exp %383 : vector<8x128xf32>
    %cst_108 = arith.constant 1.000000e+00 : f32
    %385 = vector.broadcast %cst_108 : f32 to vector<8x128xf32>
    %386 = arith.addf %385, %384 : vector<8x128xf32>
    %387 = arith.divf %385, %386 : vector<8x128xf32>
    %388 = vector.extract_strided_slice %369 {offsets = [0, 256], sizes = [8, 128], strides = [1, 1]} : vector<8x384xf32> to vector<8x128xf32>
    %389 = vector.extract_strided_slice %371 {offsets = [0, 256], sizes = [8, 128], strides = [1, 1]} : vector<8x384xf32> to vector<8x128xf32>
    %390 = arith.addf %389, %10 : vector<8x128xf32>
    %391 = arith.mulf %379, %390 : vector<8x128xf32>
    %392 = arith.addf %388, %391 : vector<8x128xf32>
    %393 = math.tanh %392 : vector<8x128xf32>
    %394 = arith.subf %338, %393 : vector<8x128xf32>
    %395 = arith.mulf %387, %394 : vector<8x128xf32>
    %396 = arith.addf %393, %395 : vector<8x128xf32>
    %c0_109 = arith.constant 0 : index
    %c0_110 = arith.constant 0 : index
    %397 = vector.load %arg5[%c0_109, %c0_110] : memref<128x384xf32, #tpu.memory_space<vmem>>, vector<128x384xf32>
    %cst_111 = arith.constant dense<0.000000e+00> : vector<8x384xf32>
    %398 = tpu.matmul %396, %397, %cst_111 {dimension_numbers = #tpu.dot_dimension_numbers<[1], [0], [0], [1], [0, 0, 1, 1], [], []>} : vector<8x128xf32>, vector<128x384xf32>, vector<8x384xf32> -> vector<8x384xf32>
    %399 = arith.addf %398, %13 : vector<8x384xf32>
    %400 = vector.extract_strided_slice %399 {offsets = [0, 0], sizes = [8, 128], strides = [1, 1]} : vector<8x384xf32> to vector<8x128xf32>
    %401 = vector.extract_strided_slice %368 {offsets = [0, 0], sizes = [8, 128], strides = [1, 1]} : vector<8x384xf32> to vector<8x128xf32>
    %402 = arith.addf %400, %401 : vector<8x128xf32>
    %403 = arith.negf %402 : vector<8x128xf32>
    %404 = math.exp %403 : vector<8x128xf32>
    %cst_112 = arith.constant 1.000000e+00 : f32
    %405 = vector.broadcast %cst_112 : f32 to vector<8x128xf32>
    %406 = arith.addf %405, %404 : vector<8x128xf32>
    %407 = arith.divf %405, %406 : vector<8x128xf32>
    %408 = vector.extract_strided_slice %399 {offsets = [0, 128], sizes = [8, 128], strides = [1, 1]} : vector<8x384xf32> to vector<8x128xf32>
    %409 = vector.extract_strided_slice %368 {offsets = [0, 128], sizes = [8, 128], strides = [1, 1]} : vector<8x384xf32> to vector<8x128xf32>
    %410 = arith.addf %408, %409 : vector<8x128xf32>
    %411 = arith.negf %410 : vector<8x128xf32>
    %412 = math.exp %411 : vector<8x128xf32>
    %cst_113 = arith.constant 1.000000e+00 : f32
    %413 = vector.broadcast %cst_113 : f32 to vector<8x128xf32>
    %414 = arith.addf %413, %412 : vector<8x128xf32>
    %415 = arith.divf %413, %414 : vector<8x128xf32>
    %416 = vector.extract_strided_slice %399 {offsets = [0, 256], sizes = [8, 128], strides = [1, 1]} : vector<8x384xf32> to vector<8x128xf32>
    %417 = vector.extract_strided_slice %368 {offsets = [0, 256], sizes = [8, 128], strides = [1, 1]} : vector<8x384xf32> to vector<8x128xf32>
    %418 = arith.addf %417, %16 : vector<8x128xf32>
    %419 = arith.mulf %407, %418 : vector<8x128xf32>
    %420 = arith.addf %416, %419 : vector<8x128xf32>
    %421 = math.tanh %420 : vector<8x128xf32>
    %422 = arith.subf %366, %421 : vector<8x128xf32>
    %423 = arith.mulf %415, %422 : vector<8x128xf32>
    %424 = arith.addf %421, %423 : vector<8x128xf32>
    %c0_114 = arith.constant 0 : index
    %c0_115 = arith.constant 0 : index
    %425 = vector.load %arg6[%c0_114, %c0_115] : memref<128x384xf32, #tpu.memory_space<vmem>>, vector<128x384xf32>
    %cst_116 = arith.constant dense<0.000000e+00> : vector<8x384xf32>
    %426 = tpu.matmul %424, %425, %cst_116 {dimension_numbers = #tpu.dot_dimension_numbers<[1], [0], [0], [1], [0, 0, 1, 1], [], []>} : vector<8x128xf32>, vector<128x384xf32>, vector<8x384xf32> -> vector<8x384xf32>
    %c56 = arith.constant 56 : index
    %c0_117 = arith.constant 0 : index
    %427 = vector.load %arg12[%c56, %c0_117] : memref<64x384xf32, #tpu.memory_space<vmem>>, vector<8x384xf32>
    %c0_118 = arith.constant 0 : index
    %c0_119 = arith.constant 0 : index
    %428 = vector.load %arg2[%c0_118, %c0_119] : memref<128x384xf32, #tpu.memory_space<vmem>>, vector<128x384xf32>
    %cst_120 = arith.constant dense<0.000000e+00> : vector<8x384xf32>
    %429 = tpu.matmul %396, %428, %cst_120 {dimension_numbers = #tpu.dot_dimension_numbers<[1], [0], [0], [1], [0, 0, 1, 1], [], []>} : vector<8x128xf32>, vector<128x384xf32>, vector<8x384xf32> -> vector<8x384xf32>
    %430 = vector.extract_strided_slice %427 {offsets = [0, 0], sizes = [8, 128], strides = [1, 1]} : vector<8x384xf32> to vector<8x128xf32>
    %431 = vector.extract_strided_slice %429 {offsets = [0, 0], sizes = [8, 128], strides = [1, 1]} : vector<8x384xf32> to vector<8x128xf32>
    %432 = arith.addf %430, %431 : vector<8x128xf32>
    %433 = arith.negf %432 : vector<8x128xf32>
    %434 = math.exp %433 : vector<8x128xf32>
    %cst_121 = arith.constant 1.000000e+00 : f32
    %435 = vector.broadcast %cst_121 : f32 to vector<8x128xf32>
    %436 = arith.addf %435, %434 : vector<8x128xf32>
    %437 = arith.divf %435, %436 : vector<8x128xf32>
    %438 = vector.extract_strided_slice %427 {offsets = [0, 128], sizes = [8, 128], strides = [1, 1]} : vector<8x384xf32> to vector<8x128xf32>
    %439 = vector.extract_strided_slice %429 {offsets = [0, 128], sizes = [8, 128], strides = [1, 1]} : vector<8x384xf32> to vector<8x128xf32>
    %440 = arith.addf %438, %439 : vector<8x128xf32>
    %441 = arith.negf %440 : vector<8x128xf32>
    %442 = math.exp %441 : vector<8x128xf32>
    %cst_122 = arith.constant 1.000000e+00 : f32
    %443 = vector.broadcast %cst_122 : f32 to vector<8x128xf32>
    %444 = arith.addf %443, %442 : vector<8x128xf32>
    %445 = arith.divf %443, %444 : vector<8x128xf32>
    %446 = vector.extract_strided_slice %427 {offsets = [0, 256], sizes = [8, 128], strides = [1, 1]} : vector<8x384xf32> to vector<8x128xf32>
    %447 = vector.extract_strided_slice %429 {offsets = [0, 256], sizes = [8, 128], strides = [1, 1]} : vector<8x384xf32> to vector<8x128xf32>
    %448 = arith.addf %447, %10 : vector<8x128xf32>
    %449 = arith.mulf %437, %448 : vector<8x128xf32>
    %450 = arith.addf %446, %449 : vector<8x128xf32>
    %451 = math.tanh %450 : vector<8x128xf32>
    %452 = arith.subf %396, %451 : vector<8x128xf32>
    %453 = arith.mulf %445, %452 : vector<8x128xf32>
    %454 = arith.addf %451, %453 : vector<8x128xf32>
    %c0_123 = arith.constant 0 : index
    %c0_124 = arith.constant 0 : index
    %455 = vector.load %arg5[%c0_123, %c0_124] : memref<128x384xf32, #tpu.memory_space<vmem>>, vector<128x384xf32>
    %cst_125 = arith.constant dense<0.000000e+00> : vector<8x384xf32>
    %456 = tpu.matmul %454, %455, %cst_125 {dimension_numbers = #tpu.dot_dimension_numbers<[1], [0], [0], [1], [0, 0, 1, 1], [], []>} : vector<8x128xf32>, vector<128x384xf32>, vector<8x384xf32> -> vector<8x384xf32>
    %457 = arith.addf %456, %13 : vector<8x384xf32>
    %458 = vector.extract_strided_slice %457 {offsets = [0, 0], sizes = [8, 128], strides = [1, 1]} : vector<8x384xf32> to vector<8x128xf32>
    %459 = vector.extract_strided_slice %426 {offsets = [0, 0], sizes = [8, 128], strides = [1, 1]} : vector<8x384xf32> to vector<8x128xf32>
    %460 = arith.addf %458, %459 : vector<8x128xf32>
    %461 = arith.negf %460 : vector<8x128xf32>
    %462 = math.exp %461 : vector<8x128xf32>
    %cst_126 = arith.constant 1.000000e+00 : f32
    %463 = vector.broadcast %cst_126 : f32 to vector<8x128xf32>
    %464 = arith.addf %463, %462 : vector<8x128xf32>
    %465 = arith.divf %463, %464 : vector<8x128xf32>
    %466 = vector.extract_strided_slice %457 {offsets = [0, 128], sizes = [8, 128], strides = [1, 1]} : vector<8x384xf32> to vector<8x128xf32>
    %467 = vector.extract_strided_slice %426 {offsets = [0, 128], sizes = [8, 128], strides = [1, 1]} : vector<8x384xf32> to vector<8x128xf32>
    %468 = arith.addf %466, %467 : vector<8x128xf32>
    %469 = arith.negf %468 : vector<8x128xf32>
    %470 = math.exp %469 : vector<8x128xf32>
    %cst_127 = arith.constant 1.000000e+00 : f32
    %471 = vector.broadcast %cst_127 : f32 to vector<8x128xf32>
    %472 = arith.addf %471, %470 : vector<8x128xf32>
    %473 = arith.divf %471, %472 : vector<8x128xf32>
    %474 = vector.extract_strided_slice %457 {offsets = [0, 256], sizes = [8, 128], strides = [1, 1]} : vector<8x384xf32> to vector<8x128xf32>
    %475 = vector.extract_strided_slice %426 {offsets = [0, 256], sizes = [8, 128], strides = [1, 1]} : vector<8x384xf32> to vector<8x128xf32>
    %476 = arith.addf %475, %16 : vector<8x128xf32>
    %477 = arith.mulf %465, %476 : vector<8x128xf32>
    %478 = arith.addf %474, %477 : vector<8x128xf32>
    %479 = math.tanh %478 : vector<8x128xf32>
    %480 = arith.subf %424, %479 : vector<8x128xf32>
    %481 = arith.mulf %473, %480 : vector<8x128xf32>
    %482 = arith.addf %479, %481 : vector<8x128xf32>
    %c0_128 = arith.constant 0 : index
    %c0_129 = arith.constant 0 : index
    %483 = vector.load %arg9[%c0_128, %c0_129] : memref<128x1xf32, #tpu.memory_space<vmem>>, vector<128x1xf32>
    %cst_130 = arith.constant dense<0.000000e+00> : vector<8x1xf32>
    %484 = tpu.matmul %482, %483, %cst_130 {dimension_numbers = #tpu.dot_dimension_numbers<[1], [0], [0], [1], [0, 0, 1, 1], [], []>} : vector<8x128xf32>, vector<128x1xf32>, vector<8x1xf32> -> vector<8x1xf32>
    %c0_131 = arith.constant 0 : index
    %c0_132 = arith.constant 0 : index
    %485 = vector.load %arg10[%c0_131, %c0_132] : memref<1x1xf32, #tpu.memory_space<vmem>>, vector<1x1xf32>
    %486 = vector.shape_cast %485 : vector<1x1xf32> to vector<1x1xf32>
    %487 = vector.broadcast %486 : vector<1x1xf32> to vector<8x1xf32>
    %488 = arith.addf %484, %487 : vector<8x1xf32>
    %c0_133 = arith.constant 0 : index
    %c0_134 = arith.constant 0 : index
    %489 = vector.load %arg11[%c0_133, %c0_134] : memref<8x1xf32, #tpu.memory_space<vmem>>, vector<8x1xf32>
    tpu.vector_store %arg11[%c0_133, %c0_134], %488 {strides = array<i32>} : memref<8x1xf32, #tpu.memory_space<vmem>>, vector<8x1xf32>,
    return
  }
}

</mosaic_0001>

<bundles_post_ra>
// kernel: gru_model_forward.1
= control target key start
LH: loop header
LB: loop body
LE: loop exit
PB: predicated region body
PF: predicated region fallthrough
CT: control target
= control target key end

     0   :  { %s6183_s0 = inlined_call_operand.vmem [shape: f32[64,4], index: 0, kind: input, shape index: {}]   ;;  %s6184_s1 = inlined_call_operand.vmem [shape: f32[4,384], index: 1, kind: input, shape index: {}]   ;;  %s6185_s2 = inlined_call_operand.hbm [shape: f32[128,384], index: 2, kind: input, shape index: {}]   ;;  %s6186_s3 = inlined_call_operand.vmem [shape: f32[1,384], index: 3, kind: input, shape index: {}]   ;;  %s6187_s4 = inlined_call_operand.vmem [shape: f32[1,128], index: 4, kind: input, shape index: {}]   ;;  %s6188_s5 = inlined_call_operand.hbm [shape: f32[128,384], index: 5, kind: input, shape index: {}]   ;;  %s6189_s6 = inlined_call_operand.hbm [shape: f32[128,384], index: 6, kind: input, shape index: {}]   ;;  %s6190_s7 = inlined_call_operand.vmem [shape: f32[1,384], index: 7, kind: input, shape index: {}]   ;;  %s6191_s8 = inlined_call_operand.vmem [shape: f32[1,128], index: 8, kind: input, shape index: {}]   ;;  %s6192_s9 = inlined_call_operand.vmem [shape: f32[128,1], index: 9, kind: input, shape index: {}]   ;;  %s6193_s10 = inlined_call_operand.<no memory space> [shape: f32[1,1], index: 10, kind: input, shape index: {}]   ;;  %s6194_s11 = inlined_call_operand.vmem [shape: f32[8,1], index: 11, kind: output, shape index: {}]  }
   0x1   :  { %v16_v0 = vstv %s6193_s10 }
   0x2   :  { %17 = vst [vmem:[#allocation3] sm:$0x1] %v16_v0 }
   0x3   :  { %18 = vsyncpa [#allocation5], 0 }
   0x4   :  { %19 = vsyncpa [#allocation7], 0  ;;  %s45_s21 = sshll.u32 %s6188_s5, 4  ;;  %s3458_s22 = smov [#allocation6]   ;;  %s46_s21 = int_to_ptr.hbm [resolvable:$true] %s45_s21 }
   0x5   :  { %s47_s23 = sshll.u32 %s3458_s22, 4  ;;  %s28_s26 = sshll.u32 %s6185_s2, 4  ;;  %s48_s23 = int_to_ptr.vmem [resolvable:$true] %s47_s23  ;;  %s29_s26 = int_to_ptr.hbm [resolvable:$true] %s28_s26 }
   0x6   :  { %s3459_s27 = smov 384   ;;  %s3460_s28 = smov 24  }
   0x7   :  { %53 = dma.hbm_to_vmem [thread:$0]  %s46_s21, 6144, %s48_s23, [#allocation7], %s3459_s27, %s3459_s27, %s3460_s28  }
   0x8   :  { %s3461_s10 = smov [#allocation4]   ;;  %s58_s13 = sshll.u32 %s6189_s6, 4  ;;  %s59_s13 = int_to_ptr.hbm [resolvable:$true] %s58_s13 }
   0x9   :  { %s30_s29 = sshll.u32 %s3461_s10, 4  ;;  %s3462_s5 = smov [#allocation8]   ;;  %s31_s29 = int_to_ptr.vmem [resolvable:$true] %s30_s29 }
   0xa   :  { %36 = dma.hbm_to_vmem [thread:$0]  %s29_s26, 6144, %s31_s29, [#allocation5], %s3459_s27, %s3459_s27, %s3460_s28  }
   0xb   :  { %s60_s14 = sshll.u32 %s3462_s5, 4  ;;  %s61_s14 = int_to_ptr.vmem [resolvable:$true] %s60_s14 }
   0xc   :  { %66 = dma.hbm_to_vmem [thread:$0]  %s59_s13, 6144, %s61_s14, [#allocation7], %s3459_s27, %s3459_s27, %s3460_s28  }
   0xd   :  { %3454 = dma.done.wait [#allocation5], 6144  }
   0xe   :  { %3455 = vsyncadd [#allocation5], 4294961152 }
   0xf   :  { %3456 = dma.done.wait [#allocation7], 12288  }
  0x10   :  { %3457 = vsyncadd [#allocation7], 4294955008  ;;  %v3536_v1 = vld [vmem:[#allocation8 + $0x168] sm:$0xff]  ;;  %v3538_v2 = vld [vmem:[#allocation8 + $0x150] sm:$0xff]  ;;  %vm138_vm0 = vcmask 1043456   ;;  %vm113_vm1 = vcmask 31744  }
  0x11   :  { %356 = vmatpush.msra.mxu3 %v3536_v1  ;;  %v95_v3 = vld [vmem:[%s6184_s1] sm:$0xff]  ;;  %v96_v4 = vld [vmem:[%s6184_s1 + $0x8] sm:$0xf]  ;;  %v3553_v7 = vld [vmem:[#allocation8 + $0x108] sm:$0xff]  ;;  %v6195_v62 = vmov 0.0  }
  0x12   :  { %v3547_v5 = vld [vmem:[#allocation8 + $0x138] sm:$0xff]  ;;  %107 = vst [vmem:[#allocation1] ss:$2 sm:$0xff] %v95_v3  ;;  %v3550_v6 = vld [vmem:[#allocation8 + $0x120] sm:$0xff]  ;;  %v3561_v10 = vld [vmem:[#allocation4 + $0x168] sm:$0xff] }
  0x13   :  { %357 = vmatpush.msra.mxu3 %v3538_v2  ;;  %109 = vst [vmem:[#allocation1 + $0x10] ss:$2 sm:$0xff] %v96_v4  ;;  %v3559_v8 = vld [vmem:[%s6183_s0] sm:$0xff]  ;;  %v3586_v18 = vld [vmem:[#allocation8 + $0xc0] sm:$0xff]  ;;  %v3600_v22 = vld [vmem:[#allocation8 + $0xa8] sm:$0xff] }
  0x14   :  { %v3565_v12 = vld [vmem:[#allocation8 + $0xf0] sm:$0xff]  ;;  %v3577_v15 = vld [vmem:[#allocation8 + $0xd8] sm:$0xff]  ;;  %v3588_v19 = vld [vmem:[#allocation4 + $0x140] sm:$0xff] }
  0x15   :  { %358 = vmatpush.msra.mxu3 %v3547_v5  ;;  %v3567_v13 = vld [vmem:[#allocation4 + $0x170] sm:$0xff]  ;;  %v3579_v16 = vld [vmem:[#allocation4 + $0x158] sm:$0xff]  ;;  %v3592_v20 = vld [vmem:[#allocation4 + $0x120] sm:$0xff] }
  0x16   :  { %v3572_v14 = vld [vmem:[#allocation4 + $0x150] sm:$0xff]  ;;  %v3583_v17 = vld [vmem:[#allocation4 + $0x138] sm:$0xff]  ;;  %v3606_v24 = vld [vmem:[#allocation4 + $0x108] sm:$0xff] }
  0x17   :  { %359 = vmatpush.msra.mxu3 %v3550_v6  ;;  %v3597_v21 = vld [vmem:[%s6183_s0 + $0x8] sm:$0xff]  ;;  %v3603_v23 = vld [vmem:[#allocation8 + $0x90] sm:$0xff]  ;;  %v3609_v25 = vld [vmem:[#allocation4 + $0x128] sm:$0xff] }
  0x18   :  { %v3614_v26 = vld [vmem:[#allocation4 + $0xf0] sm:$0xff]  ;;  %v3618_v27 = vld [vmem:[#allocation8 + $0x78] sm:$0xff]  ;;  %v3627_v30 = vld [vmem:[#allocation8 + $0x60] sm:$0xff] }
  0x19   :  { %v111_v9 = vld.sshfl [vmem:[#allocation1 + $0x8] sm:$0xff pattern:$0x75316420]  ;;  %360 = vmatpush.msra.mxu3 %v3553_v7  ;;  %v3621_v28 = vld [vmem:[#allocation4 + $0x110] sm:$0xff]  ;;  %v3639_v33 = vld [vmem:[%s6183_s0 + $0x10] sm:$0xff] }
  0x1a   :  { %2725 = vmatpush.msk.msra.mxu1 %vm138_vm0, %v111_v9  ;;  %v112_v11 = vld.sshfl [vmem:[#allocation1 + $0x10] sm:$0xff pattern:$0x75316420]  ;;  %v3625_v29 = vld [vmem:[#allocation4 + $0xd8] sm:$0xff]  ;;  %v3648_v36 = vld [vmem:[#allocation8 + $0x30] sm:$0xff] }
  0x1b   :  { %2734 = vmatpush.msk.msra.mxu2 %vm138_vm0, %v112_v11  ;;  %2726 = vmatmul.msk.f32.vlgmr.msra.gmra.mxu1 %vm113_vm1, %v3559_v8  ;;  %v3630_v31 = vld [vmem:[#allocation4 + $0xf8] sm:$0xff]  ;;  %v3634_v32 = vld [vmem:[#allocation4 + $0xc0] sm:$0xff]  ;;  %v3641_v34 = vld [vmem:[#allocation8 + $0x48] sm:$0xff] }
  0x1c   :  { %2735 = vmatmul.msk.f32.vlgmr.msra.gmra.mxu2 %vm113_vm1, %v3559_v8  ;;  %467 = vmatpush.msrb.mxu1 %v3561_v10  ;;  %v3646_v35 = vld [vmem:[#allocation4 + $0xa8] sm:$0xff]  ;;  %v3651_v37 = vld [vmem:[#allocation4 + $0xe0] sm:$0xff]  ;;  %v3656_v38 = vld [vmem:[#allocation4 + $0x90] sm:$0xff] }
  0x1d   :  { %361 = vmatpush.msra.mxu3 %v3565_v12  ;;  %487 = vmatpush.msrb.mxu2 %v3567_v13  ;;  %v3660_v39 = vld [vmem:[#allocation8 + $0x18] sm:$0xff]  ;;  %v3663_v40 = vld [vmem:[#allocation4 + $0xc8] sm:$0xff]  ;;  %v3669_v42 = vld [vmem:[#allocation8] sm:$0xff] }
  0x1e   :  { %468 = vmatpush.msrb.mxu1 %v3572_v14  ;;  %v3667_v41 = vld [vmem:[#allocation4 + $0x78] sm:$0xff]  ;;  %v3672_v43 = vld [vmem:[#allocation4 + $0xb0] sm:$0xff]  ;;  %v3678_v45 = vld [vmem:[#allocation4 + $0x60] sm:$0xff] }
  0x1f   :  { %362 = vmatpush.msra.mxu3 %v3577_v15  ;;  %488 = vmatpush.msrb.mxu2 %v3579_v16  ;;  %v3675_v44 = vld [vmem:[#allocation8 + $0x170] sm:$0xff]  ;;  %v3686_v47 = vld [vmem:[#allocation4 + $0x98] sm:$0xff]  ;;  %v3694_v49 = vld [vmem:[#allocation4 + $0x80] sm:$0xff] }
  0x20   :  { %469 = vmatpush.msrb.mxu1 %v3583_v17  ;;  %v3683_v46 = vld [vmem:[%s6183_s0 + $0x18] sm:$0xff]  ;;  %v3689_v48 = vld [vmem:[#allocation8 + $0x158] sm:$0xff]  ;;  %v3700_v51 = vld [vmem:[#allocation8 + $0x140] sm:$0xff] }
  0x21   :  { %363 = vmatpush.msra.mxu3 %v3586_v18  ;;  %489 = vmatpush.msrb.mxu2 %v3588_v19  ;;  %v3696_v50 = vld [vmem:[#allocation4 + $0x48] sm:$0xff]  ;;  %v3708_v53 = vld [vmem:[#allocation4 + $0x30] sm:$0xff]  ;;  %v3722_v58 = vld [vmem:[#allocation4 + $0x18] sm:$0xff] }
  0x22   :  { %470 = vmatpush.msrb.mxu1 %v3592_v20  ;;  %v3706_v52 = vld [vmem:[#allocation4 + $0x68] sm:$0xff]  ;;  %v110_v55 = vld.sshfl [vmem:[#allocation1] sm:$0xff pattern:$0x75316420]  ;;  %v3738_v63 = vld [vmem:[#allocation4] sm:$0xff] }
  0x23   :  { %2727 = vmatmul.msk.f32.gmra.mxu1 %vm113_vm1, %v3597_v21  ;;  %364 = vmatpush.msra.mxu3 %v3600_v22  ;;  %v3710_v54 = vld [vmem:[#allocation8 + $0x128] sm:$0xff]  ;;  %v3715_v56 = vld [vmem:[#allocation4 + $0x50] sm:$0xff]  ;;  %v3728_v60 = vld [vmem:[#allocation4 + $0x38] sm:$0xff] }
  0x24   :  { %2736 = vmatmul.msk.f32.gmra.mxu2 %vm113_vm1, %v3597_v21  ;;  %471 = vmatpush.msrb.mxu1 %v3606_v24  ;;  %v3718_v57 = vld [vmem:[#allocation8 + $0x110] sm:$0xff]  ;;  %v3732_v61 = vld [vmem:[#allocation8 + $0xf8] sm:$0xff]  ;;  %v3740_v0 = vld [vmem:[#allocation4 + $0x20] sm:$0xff] }
  0x25   :  { %365 = vmatpush.msra.mxu3 %v3603_v23  ;;  %490 = vmatpush.msrb.mxu2 %v3609_v25  ;;  %v91_v59 = vld [vmem:[%s6183_s0 + $0x20] sm:$0xff]  ;;  %6460 = vst [vmem:[#allocation11_spill] sm:$0xff] %v3732_v61  ;;  %v3743_v3 = vld [vmem:[#allocation8 + $0xe0] sm:$0xff]  ;;  %v3748_v4 = vld [vmem:[#allocation4 + $0x8] sm:$0xff] }
  0x26   :  { %472 = vmatpush.msrb.mxu1 %v3614_v26  ;;  %2716 = vmatpush.msk.msra.mxu0 %vm138_vm0, %v110_v55  ;;  %6461 = vst [vmem:[#allocation12_spill] sm:$0xff] %v3743_v3  ;;  %v3755_v9 = vld [vmem:[#allocation8 + $0xb0] sm:$0xff]  ;;  %v92_v11 = vld [vmem:[%s6183_s0 + $0x28] sm:$0xff] }
  0x27   :  { %366 = vmatpush.msra.mxu3 %v3618_v27  ;;  %491 = vmatpush.msrb.mxu2 %v3621_v28  ;;  %6463 = vst [vmem:[#allocation14_spill] sm:$0xff] %v3755_v9  ;;  %v3764_v55 = vld [vmem:[#allocation8 + $0x98] sm:$0xff] }
  0x28   :  { %473 = vmatpush.msrb.mxu1 %v3625_v29  ;;  %2717 = vmatmul.msk.f32.vlgmr.msra.gmra.mxu0 %vm113_vm1, %v3559_v8  ;;  %v3750_v8 = vld [vmem:[#allocation8 + $0xc8] sm:$0xff]  ;;  %6464 = vst [vmem:[#allocation15_spill] sm:$0xff] %v3764_v55 }
  0x29   :  { %367 = vmatpush.msra.mxu3 %v3627_v30  ;;  %492 = vmatpush.msrb.mxu2 %v3630_v31  ;;  %6462 = vst [vmem:[#allocation13_spill] sm:$0xff] %v3750_v8 }
  0x2a   :  { %474 = vmatpush.msrb.mxu1 %v3634_v32 }
  0x2b   :  { %2728 = vmatmul.msk.f32.gmra.mxu1 %vm113_vm1, %v3639_v33  ;;  %368 = vmatpush.msra.mxu3 %v3641_v34 }
  0x2c   :  { %2737 = vmatmul.msk.f32.gmra.mxu2 %vm113_vm1, %v3639_v33  ;;  %475 = vmatpush.msrb.mxu1 %v3646_v35 }
  0x2d   :  { %369 = vmatpush.msra.mxu3 %v3648_v36  ;;  %493 = vmatpush.msrb.mxu2 %v3651_v37 }
  0x2e   :  { %476 = vmatpush.msrb.mxu1 %v3656_v38 }
  0x2f   :  { %370 = vmatpush.msra.mxu3 %v3660_v39  ;;  %494 = vmatpush.msrb.mxu2 %v3663_v40 }
  0x30   :  { %477 = vmatpush.msrb.mxu1 %v3667_v41  ;;  %2718 = vmatmul.msk.f32.gmra.mxu0 %vm113_vm1, %v3597_v21  ;;  %v93_v21 = vld [vmem:[%s6183_s0 + $0x30] sm:$0xff] }
  0x31   :  { %371 = vmatpush.msra.mxu3 %v3669_v42  ;;  %495 = vmatpush.msrb.mxu2 %v3672_v43 }
  0x32   :  { %478 = vmatpush.msrb.mxu1 %v3678_v45  ;;  %372 = vmatmul.f32.vlgmr.msra.gmra.mxu3 %v6195_v62  ;;  %v3768_v62 = vld [vmem:[#allocation8 + $0x80] sm:$0xff] }
  0x33   :  { %376 = vmatpush.msrb.mxu3 %v3675_v44  ;;  %2729 = vmatmul.msk.f32.gmra.mxu1 %vm113_vm1, %v3683_v46  ;;  %6465 = vst [vmem:[#allocation16_spill] sm:$0xff] %v3768_v62 }
  0x34   :  { %496 = vmatpush.msrb.mxu2 %v3686_v47  ;;  %479 = vmatpush.msrb.mxu1 %v3696_v50 }
  0x35   :  { %2738 = vmatmul.msk.f32.gmra.mxu2 %vm113_vm1, %v3683_v46  ;;  %377 = vmatpush.msrb.mxu3 %v3689_v48 }
  0x36   :  { %497 = vmatpush.msrb.mxu2 %v3694_v49  ;;  %480 = vmatpush.msrb.mxu1 %v3708_v53 }
  0x37   :  { %378 = vmatpush.msrb.mxu3 %v3700_v51 }
  0x38   :  { %498 = vmatpush.msrb.mxu2 %v3706_v52  ;;  %481 = vmatpush.msrb.mxu1 %v3722_v58 }
  0x39   :  { %379 = vmatpush.msrb.mxu3 %v3710_v54  ;;  %2719 = vmatmul.msk.f32.gmra.mxu0 %vm113_vm1, %v3639_v33  ;;  %v94_v33 = vld [vmem:[%s6183_s0 + $0x38] sm:$0xff] }
  0x3a   :  { %499 = vmatpush.msrb.mxu2 %v3715_v56  ;;  %482 = vmatpush.msrb.mxu1 %v3738_v63 }
  0x3b   :  { %380 = vmatpush.msrb.mxu3 %v3718_v57  ;;  %2730 = vmatmul.msk.f32.gmra.mxu1 %vm113_vm1, %v91_v59 }
  0x3c   :  { %500 = vmatpush.msrb.mxu2 %v3728_v60 }
  0x3d   :  { %2739 = vmatmul.msk.f32.gmra.mxu2 %vm113_vm1, %v91_v59  ;;  %381 = vmatpush.msrb.mxu3 %v3732_v61  ;;  %v6474_v61 = vmov 0.0  }
  0x3e   :  { %501 = vmatpush.msrb.mxu2 %v3740_v0 }
  0x3f   :  { %382 = vmatpush.msrb.mxu3 %v3743_v3  ;;  %v3775_v3 = vld [vmem:[#allocation8 + $0x50] sm:$0xff] }
  0x40   :  { %502 = vmatpush.msrb.mxu2 %v3748_v4  ;;  %6467 = vst [vmem:[#allocation18_spill] sm:$0xff] %v3775_v3 }
  0x41   :  { %383 = vmatpush.msrb.mxu3 %v3750_v8  ;;  %v3772_v8 = vld [vmem:[#allocation8 + $0x68] sm:$0xff]  ;;  %2720 = vmatmul.msk.f32.gmra.mxu0 %vm113_vm1, %v3683_v46  ;;  %v3817_v46 = vld [vmem:[#allocation4 + $0x100] sm:$0xff] }
  0x42   :  { %6466 = vst [vmem:[#allocation17_spill] sm:$0xff] %v3772_v8 }
  0x43   :  { %384 = vmatpush.msrb.mxu3 %v3755_v9  ;;  %2731 = vmatmul.msk.f32.gmra.mxu1 %vm113_vm1, %v92_v11  ;;  %v3783_v9 = vld [vmem:[#allocation8 + $0x38] sm:$0xff]  ;;  %6477 = vst [vmem:[#allocation27_spill] sm:$0xff] %v3817_v46 }
  0x44   :  { %6468 = vst [vmem:[#allocation19_spill] sm:$0xff] %v3783_v9 }
  0x45   :  { %2740 = vmatmul.msk.f32.gmra.mxu2 %vm113_vm1, %v92_v11  ;;  %385 = vmatpush.msrb.mxu3 %v3764_v55  ;;  %v3787_v55 = vld [vmem:[#allocation8 + $0x20] sm:$0xff] }
  0x46   :  { %6469 = vst [vmem:[#allocation20_spill] sm:$0xff] %v3787_v55 }
  0x47   :  { %386 = vmatpush.msrb.mxu3 %v3768_v62  ;;  %v3794_v62 = vld [vmem:[#allocation4 + $0x178] sm:$0xff] }
  0x48   :  { %6471 = vst [vmem:[#allocation22_spill] sm:$0xff] %v3794_v62 }
  0x49   :  { %387 = vmatpush.msrb.mxu3 %v3772_v8  ;;  %v3791_v8 = vld [vmem:[#allocation8 + $0x8] sm:$0xff]  ;;  %2721 = vmatmul.msk.f32.gmra.mxu0 %vm113_vm1, %v91_v59 }
  0x4a   :  { %6470 = vst [vmem:[#allocation21_spill] sm:$0xff] %v3791_v8  ;;  %v3836_v59 = vld [vmem:[#allocation4 + $0x88] sm:$0xff] }
  0x4b   :  { %388 = vmatpush.msrb.mxu3 %v3775_v3  ;;  %2732 = vmatmul.msk.f32.gmra.mxu1 %vm113_vm1, %v93_v21  ;;  %v3800_v3 = vld [vmem:[#allocation4 + $0x160] sm:$0xff]  ;;  %6480 = vst [vmem:[#allocation30_spill] sm:$0xff] %v3836_v59 }
  0x4c   :  { %6472 = vst [vmem:[#allocation23_spill] sm:$0xff] %v3800_v3 }
  0x4d   :  { %2741 = vmatmul.msk.f32.gmra.mxu2 %vm113_vm1, %v93_v21  ;;  %389 = vmatpush.msrb.mxu3 %v3783_v9  ;;  %v3805_v9 = vld [vmem:[#allocation4 + $0x148] sm:$0xff] }
  0x4e   :  { %6473 = vst [vmem:[#allocation24_spill] sm:$0xff] %v3805_v9 }
  0x4f   :  { %390 = vmatpush.msrb.mxu3 %v3787_v55  ;;  %v3814_v55 = vld [vmem:[#allocation4 + $0x118] sm:$0xff] }
  0x50   :  { %6476 = vst [vmem:[#allocation26_spill] sm:$0xff] %v3814_v55 }
  0x51   :  { %391 = vmatpush.msrb.mxu3 %v3791_v8  ;;  %v3811_v8 = vld [vmem:[#allocation4 + $0x130] sm:$0xff]  ;;  %2722 = vmatmul.msk.f32.gmra.mxu0 %vm113_vm1, %v92_v11  ;;  %v3849_v11 = vld [vmem:[#allocation4 + $0x28] sm:$0xff] }
  0x52   :  { %392 = vmatmul.f32.vlgmr.msrb.gmra.mxu3 %v6474_v61  ;;  %6475 = vst [vmem:[#allocation25_spill] sm:$0xff] %v3811_v8 }
  0x53   :  { %507 = vmatpush.msra.mxu3 %v3794_v62  ;;  %2733 = vmatmul.msk.f32.gmra.mxu1 %vm113_vm1, %v94_v33  ;;  %v3821_v62 = vld [vmem:[#allocation4 + $0xe8] sm:$0xff]  ;;  %6484 = vst [vmem:[#allocation34_spill] sm:$0xff] %v3849_v11 }
  0x54   :  { %6478 = vst [vmem:[#allocation28_spill] sm:$0xff] %v3821_v62 }
  0x55   :  { %508 = vmatpush.msra.mxu3 %v3800_v3  ;;  %2742 = vmatmul.msk.f32.gmra.mxu2 %vm113_vm1, %v94_v33  ;;  %v3826_v3 = vld [vmem:[#allocation4 + $0xd0] sm:$0xff] }
  0x57   :  { %509 = vmatpush.msra.mxu3 %v3805_v9  ;;  %v3829_v9 = vld [vmem:[#allocation4 + $0xb8] sm:$0xff] }
  0x58   :  { %6479 = vst [vmem:[#allocation29_spill] sm:$0xff] %v3829_v9 }
  0x59   :  { %510 = vmatpush.msra.mxu3 %v3811_v8  ;;  %v3832_v8 = vld [vmem:[#allocation4 + $0xa0] sm:$0xff]  ;;  %2723 = vmatmul.msk.f32.gmra.mxu0 %vm113_vm1, %v93_v21 }
  0x5a   :  { %v3968_v21 = vld [vmem:[#allocation6 + $0x100] sm:$0xff] }
  0x5b   :  { %511 = vmatpush.msra.mxu3 %v3814_v55  ;;  %483 = vmatmul.f32.vlgmr.msrb.gmra.mxu1 %v6474_v61  ;;  %v3842_v55 = vld [vmem:[#allocation4 + $0x58] sm:$0xff]  ;;  %6503 = vst [vmem:[#allocation53_spill] sm:$0xff] %v3968_v21 }
  0x5c   :  { %6482 = vst [vmem:[#allocation32_spill] sm:$0xff] %v3842_v55 }
  0x5d   :  { %512 = vmatpush.msra.mxu3 %v3817_v46  ;;  %503 = vmatmul.f32.vlgmr.msrb.gmra.mxu2 %v6474_v61  ;;  %v3839_v46 = vld [vmem:[#allocation4 + $0x70] sm:$0xff] }
  0x5e   :  { %6481 = vst [vmem:[#allocation31_spill] sm:$0xff] %v3839_v46 }
  0x5f   :  { %513 = vmatpush.msra.mxu3 %v3821_v62  ;;  %v3845_v62 = vld [vmem:[#allocation4 + $0x40] sm:$0xff] }
  0x60   :  { %6483 = vst [vmem:[#allocation33_spill] sm:$0xff] %v3845_v62 }
  0x61   :  { %514 = vmatpush.msra.mxu3 %v3826_v3  ;;  %2724 = vmatmul.msk.f32.gmra.mxu0 %vm113_vm1, %v94_v33  ;;  %v3972_v33 = vld [vmem:[#allocation8 + $0x88] sm:$0xff] }
  0x63   :  { %515 = vmatpush.msra.mxu3 %v3829_v9  ;;  %v3852_v9 = vld [vmem:[#allocation4 + $0x10] sm:$0xff] }
  0x64   :  { %6485 = vst [vmem:[#allocation35_spill] sm:$0xff] %v3852_v9 }
  0x65   :  { %516 = vmatpush.msra.mxu3 %v3832_v8 }
  0x67   :  { %517 = vmatpush.msra.mxu3 %v3836_v59  ;;  %v4100_v59 = vld [vmem:[#allocation6 + $0xb0] sm:$0xff] }
  0x69   :  { %518 = vmatpush.msra.mxu3 %v3839_v46 }
  0x6b   :  { %519 = vmatpush.msra.mxu3 %v3842_v55  ;;  %v4090_v55 = vld [vmem:[#allocation6 + $0xc8] sm:$0xff] }
  0x6d   :  { %520 = vmatpush.msra.mxu3 %v3845_v62  ;;  %v4088_v62 = vld [vmem:[#allocation6 + $0xc0] sm:$0xff] }
  0x6f   :  { %521 = vmatpush.msra.mxu3 %v3849_v11  ;;  %v4068_v11 = vld [vmem:[#allocation6 + $0x110] sm:$0xff] }
  0x71   :  { %522 = vmatpush.msra.mxu3 %v3852_v9 }
  0x72   :  { %523 = vmatmul.f32.vlgmr.msra.gmra.mxu3 %v6474_v61 }
  0x73   :  { %729 = vmatpush.msrb.mxu3 %v3536_v1 }
  0x75   :  { %730 = vmatpush.msrb.mxu3 %v3538_v2 }
  0x77   :  { %731 = vmatpush.msrb.mxu3 %v3547_v5 }
  0x79   :  { %732 = vmatpush.msrb.mxu3 %v3550_v6  ;;  %v3889_v6 = vld [vmem:[#allocation8 + $0x178] sm:$0xff] }
  0x7a   :  { %396 = vmatpush.msrb.mxu0 %v3889_v6 }
  0x7b   :  { %733 = vmatpush.msrb.mxu3 %v3553_v7  ;;  %v3891_v7 = vld [vmem:[#allocation8 + $0x160] sm:$0xff] }
  0x7c   :  { %6487 = vst [vmem:[#allocation37_spill] sm:$0xff] %v3891_v7  ;;  %397 = vmatpush.msrb.mxu0 %v3891_v7 }
  0x7d   :  { %734 = vmatpush.msrb.mxu3 %v3565_v12  ;;  %v3898_v12 = vld [vmem:[%s6186_s3] sm:$0x7] }
  0x7e   :  { %v4063_v9 = vperm.slane %v3898_v12, 0 }
  0x7f   :  { %735 = vmatpush.msrb.mxu3 %v3577_v15 }
  0x80   :  { %6520 = vst [vmem:[#allocation70_spill] sm:$0xff] %v4063_v9 }
  0x81   :  { %736 = vmatpush.msrb.mxu3 %v3586_v18 }
  0x83   :  { %737 = vmatpush.msrb.mxu3 %v3600_v22  ;;  %v3914_v22 = vld [vmem:[#allocation8 + $0x130] sm:$0xff] }
  0x84   :  { %6492 = vst [vmem:[#allocation42_spill] sm:$0xff] %v3914_v22 }
  0x85   :  { %738 = vmatpush.msrb.mxu3 %v3603_v23  ;;  %v3921_v23 = vperm.slane %v3898_v12, 2 }
  0x87   :  { %739 = vmatpush.msrb.mxu3 %v3618_v27 }
  0x89   :  { %740 = vmatpush.msrb.mxu3 %v3627_v30 }
  0x8b   :  { %741 = vmatpush.msrb.mxu3 %v3641_v34  ;;  %v3932_v34 = vld [vmem:[#allocation6 + $0x178] sm:$0xff] }
  0x8c   :  { %6496 = vst [vmem:[#allocation46_spill] sm:$0xff] %v3932_v34  ;;  %662 = vmatpush.msra.mxu2 %v3932_v34 }
  0x8d   :  { %742 = vmatpush.msrb.mxu3 %v3648_v36  ;;  %v3934_v36 = vld [vmem:[#allocation8 + $0x100] sm:$0xff] }
  0x8f   :  { %743 = vmatpush.msrb.mxu3 %v3660_v39  ;;  %v3942_v39 = vld [vmem:[#allocation8 + $0xe8] sm:$0xff] }
  0x91   :  { %744 = vmatpush.msrb.mxu3 %v3669_v42 }
  0x93   :  { %812 = vmatpush.msra.mxu3 %v3567_v13  ;;  %v3904_v13 = vperm.slane %v3898_v12, 1 }
  0x95   :  { %813 = vmatpush.msra.mxu3 %v3579_v16  ;;  %6488 = vst [vmem:[#allocation38_spill] sm:$0xff] %v3904_v13 }
  0x97   :  { %814 = vmatpush.msra.mxu3 %v3588_v19  ;;  %v3912_v19 = vld [vmem:[#allocation8 + $0x148] sm:$0xff] }
  0x98   :  { %v3878_v1 = vpop.f32.mrf.mxu1  ;;  %6491 = vst [vmem:[#allocation41_spill] sm:$0xff] %v3912_v19  ;;  %398 = vmatpush.msrb.mxu0 %v3912_v19 }
  0x99   :  { %815 = vmatpush.msra.mxu3 %v3609_v25 }
  0x9a   :  { %399 = vmatpush.msrb.mxu0 %v3914_v22 }
  0x9b   :  { %816 = vmatpush.msra.mxu3 %v3621_v28 }
  0x9d   :  { %817 = vmatpush.msra.mxu3 %v3630_v31  ;;  %v3930_v31 = vld [vmem:[#allocation8 + $0x118] sm:$0xff] }
  0x9e   :  { %6495 = vst [vmem:[#allocation45_spill] sm:$0xff] %v3930_v31  ;;  %400 = vmatpush.msrb.mxu0 %v3930_v31 }
  0x9f   :  { %818 = vmatpush.msra.mxu3 %v3651_v37  ;;  %v3884_v2 = vpop.f32.mrf.mxu2  ;;  %v3938_v37 = vld [vmem:[#allocation6 + $0x160] sm:$0xff] }
  0xa0   :  { %v3886_v5 = vpop.f32.mrf.mxu1  ;;  %6497 = vst [vmem:[#allocation47_spill] sm:$0xff] %v3938_v37  ;;  %401 = vmatpush.msrb.mxu0 %v3934_v36  ;;  %663 = vmatpush.msra.mxu2 %v3938_v37  ;;  %v4057_v37 = vld [vmem:[#allocation6 + $0x10] sm:$0xff] }
  0xa1   :  { %819 = vmatpush.msra.mxu3 %v3663_v40  ;;  %6486 = vst [vmem:[#allocation36_spill] sm:$0xff] %v3886_v5  ;;  %v3944_v40 = vld [vmem:[#allocation6 + $0x148] sm:$0xff] }
  0xa2   :  { %6498 = vst [vmem:[#allocation48_spill] sm:$0xff] %v3944_v40  ;;  %402 = vmatpush.msrb.mxu0 %v3942_v39  ;;  %664 = vmatpush.msra.mxu2 %v3944_v40 }
  0xa3   :  { %820 = vmatpush.msra.mxu3 %v3672_v43  ;;  %6518 = vst [vmem:[#allocation68_spill] sm:$0xff] %v4057_v37 }
  0xa5   :  { %821 = vmatpush.msra.mxu3 %v3686_v47 }
  0xa7   :  { %822 = vmatpush.msra.mxu3 %v3694_v49  ;;  %v3906_v15 = vpop.f32.mrf.mxu2  ;;  %v3951_v49 = vld [vmem:[#allocation8 + $0xd0] sm:$0xff] }
  0xa8   :  { %6489 = vst [vmem:[#allocation39_spill] sm:$0xff] %v3906_v15  ;;  %v209_v16 = vpop.f32.mrf.mxu1  ;;  %403 = vmatpush.msrb.mxu0 %v3951_v49 }
  0xa9   :  { %823 = vmatpush.msra.mxu3 %v3706_v52  ;;  %v3910_v18 = vadd.f32 %v209_v16, %v3904_v13  ;;  %v3953_v52 = vld [vmem:[#allocation6 + $0x130] sm:$0xff]  ;;  %v3974_v16 = vld [vmem:[#allocation6 + $0xe8] sm:$0xff] }
  0xaa   :  { %6500 = vst [vmem:[#allocation50_spill] sm:$0xff] %v3953_v52  ;;  %665 = vmatpush.msra.mxu2 %v3953_v52  ;;  %v4050_v52 = vld [vmem:[#allocation6 + $0x128] sm:$0xff] }
  0xab   :  { %824 = vmatpush.msra.mxu3 %v3715_v56  ;;  %6490 = vst [vmem:[#allocation40_spill] sm:$0xff] %v3910_v18 }
  0xac   :  { %6504 = vst [vmem:[#allocation54_spill] sm:$0xff] %v3974_v16 }
  0xad   :  { %825 = vmatpush.msra.mxu3 %v3728_v60  ;;  %v3960_v60 = vld [vmem:[#allocation8 + $0xb8] sm:$0xff] }
  0xae   :  { %404 = vmatpush.msrb.mxu0 %v3960_v60 }
  0xaf   :  { %826 = vmatpush.msra.mxu3 %v3740_v0  ;;  %v250_v25 = vpop.f32.mrf.mxu2  ;;  %v3962_v0 = vld [vmem:[#allocation6 + $0x118] sm:$0xff] }
  0xb0   :  { %v3925_v27 = vadd.f32 %v250_v25, %v3921_v23  ;;  %v212_v28 = vpop.f32.mrf.mxu1  ;;  %6502 = vst [vmem:[#allocation52_spill] sm:$0xff] %v3962_v0  ;;  %666 = vmatpush.msra.mxu2 %v3962_v0 }
  0xb1   :  { %827 = vmatpush.msra.mxu3 %v3748_v4  ;;  %v3928_v30 = vadd.f32 %v212_v28, %v3904_v13  ;;  %v3966_v4 = vld [vmem:[#allocation8 + $0xa0] sm:$0xff] }
  0xb2   :  { %6493 = vst [vmem:[#allocation43_spill] sm:$0xff] %v3925_v27  ;;  %405 = vmatpush.msrb.mxu0 %v3966_v4  ;;  %667 = vmatpush.msra.mxu2 %v3968_v21  ;;  %v3992_v27 = vld [vmem:[#allocation6 + $0xb8] sm:$0xff]  ;;  %v4022_v21 = vld [vmem:[#allocation6 + $0x170] sm:$0xff] }
  0xb3   :  { %6494 = vst [vmem:[#allocation44_spill] sm:$0xff] %v3928_v30  ;;  %v3990_v30 = vld [vmem:[#allocation8 + $0x58] sm:$0xff]  ;;  %642 = vmatpush.msra.mxu1 %v4022_v21 }
  0xb4   :  { %406 = vmatpush.msrb.mxu0 %v3972_v33  ;;  %668 = vmatpush.msra.mxu2 %v3974_v16  ;;  %6508 = vst [vmem:[#allocation58_spill] sm:$0xff] %v3992_v27 }
  0xb8   :  { %v253_v42 = vpop.f32.mrf.mxu2  ;;  %v215_v47 = vpop.f32.mrf.mxu1 }
  0xb9   :  { %v3949_v43 = vadd.f32 %v253_v42, %v3921_v23  ;;  %v3956_v56 = vadd.f32 %v215_v47, %v3904_v13  ;;  %v3981_v47 = vld [vmem:[#allocation8 + $0x70] sm:$0xff] }
  0xba   :  { %407 = vmatpush.msrb.mxu0 %v3981_v47 }
  0xbb   :  { %6499 = vst [vmem:[#allocation49_spill] sm:$0xff] %v3949_v43 }
  0xbc   :  { %6501 = vst [vmem:[#allocation51_spill] sm:$0xff] %v3956_v56  ;;  %v3983_v56 = vld [vmem:[#allocation6 + $0xd0] sm:$0xff]  ;;  %408 = vmatpush.msrb.mxu0 %v3990_v30 }
  0xbd   :  { %6506 = vst [vmem:[#allocation56_spill] sm:$0xff] %v3983_v56  ;;  %669 = vmatpush.msra.mxu2 %v3983_v56  ;;  %v4013_v56 = vld [vmem:[#allocation6 + $0x70] sm:$0xff] }
  0xbe   :  { %6512 = vst [vmem:[#allocation62_spill] sm:$0xff] %v4013_v56 }
  0xbf   :  { %670 = vmatpush.msra.mxu2 %v3992_v27  ;;  %v4011_v27 = vld [vmem:[#allocation8 + $0x10] sm:$0xff] }
  0xc0   :  { %v256_v25 = vpop.f32.mrf.mxu2  ;;  %v218_v42 = vpop.f32.mrf.mxu1 }
  0xc1   :  { %v3979_v28 = vadd.f32 %v256_v25, %v3921_v23  ;;  %v3986_v43 = vadd.f32 %v218_v42, %v3904_v13  ;;  %v3996_v25 = vld [vmem:[#allocation8 + $0x40] sm:$0xff]  ;;  %v4002_v42 = vld [vmem:[#allocation8 + $0x28] sm:$0xff] }
  0xc2   :  { %409 = vmatpush.msrb.mxu0 %v3996_v25 }
  0xc3   :  { %6505 = vst [vmem:[#allocation55_spill] sm:$0xff] %v3979_v28  ;;  %v3998_v28 = vld [vmem:[#allocation6 + $0xa0] sm:$0xff] }
  0xc4   :  { %6507 = vst [vmem:[#allocation57_spill] sm:$0xff] %v3986_v43  ;;  %671 = vmatpush.msra.mxu2 %v3998_v28  ;;  %v4004_v43 = vld [vmem:[#allocation6 + $0x88] sm:$0xff]  ;;  %410 = vmatpush.msrb.mxu0 %v4002_v42 }
  0xc5   :  { %6509 = vst [vmem:[#allocation59_spill] sm:$0xff] %v3998_v28  ;;  %v4020_v28 = vld [vmem:[#allocation6 + $0x168] sm:$0xff] }
  0xc6   :  { %6510 = vst [vmem:[#allocation60_spill] sm:$0xff] %v4004_v43  ;;  %672 = vmatpush.msra.mxu2 %v4004_v43  ;;  %411 = vmatpush.msrb.mxu0 %v4011_v27  ;;  %v4041_v43 = vld [vmem:[#allocation6 + $0x140] sm:$0xff] }
  0xc7   :  { %412 = vmatmul.f32.vlgmr.msrb.gmra.mxu0 %v6474_v61  ;;  %v4048_v61 = vld [vmem:[#allocation6 + $0x120] sm:$0xff] }
  0xc8   :  { %v259_v18 = vpop.f32.mrf.mxu2  ;;  %v221_v5 = vpop.f32.mrf.mxu1  ;;  %673 = vmatpush.msra.mxu2 %v4013_v56  ;;  %622 = vmatpush.msra.mxu0 %v4020_v28  ;;  %v4039_v56 = vld [vmem:[#allocation6 + $0x138] sm:$0xff] }
  0xc9   :  { %v4009_v15 = vadd.f32 %v259_v18, %v3921_v23  ;;  %v4016_v16 = vadd.f32 %v221_v5, %v3904_v13  ;;  %v4026_v18 = vld [vmem:[#allocation6 + $0x58] sm:$0xff] }
  0xca   :  { %6514 = vst [vmem:[#allocation64_spill] sm:$0xff] %v4026_v18  ;;  %674 = vmatpush.msra.mxu2 %v4026_v18  ;;  %v4031_v5 = vld [vmem:[#allocation6 + $0x158] sm:$0xff]  ;;  %v4045_v18 = vld [vmem:[#allocation6 + $0x28] sm:$0xff] }
  0xcb   :  { %6511 = vst [vmem:[#allocation61_spill] sm:$0xff] %v4009_v15  ;;  %v4029_v15 = vld [vmem:[#allocation6 + $0x150] sm:$0xff]  ;;  %643 = vmatpush.msra.mxu1 %v4031_v5 }
  0xcc   :  { %6513 = vst [vmem:[#allocation63_spill] sm:$0xff] %v4016_v16  ;;  %623 = vmatpush.msra.mxu0 %v4029_v15  ;;  %v4036_v16 = vld [vmem:[#allocation6 + $0x40] sm:$0xff] }
  0xcd   :  { %6515 = vst [vmem:[#allocation65_spill] sm:$0xff] %v4036_v16  ;;  %675 = vmatpush.msra.mxu2 %v4036_v16  ;;  %644 = vmatpush.msra.mxu1 %v4041_v43 }
  0xce   :  { %624 = vmatpush.msra.mxu0 %v4039_v56  ;;  %6516 = vst [vmem:[#allocation66_spill] sm:$0xff] %v4045_v18 }
  0xcf   :  { %676 = vmatpush.msra.mxu2 %v4045_v18  ;;  %645 = vmatpush.msra.mxu1 %v4050_v52  ;;  %v4066_v18 = vld [vmem:[#allocation6 + $0x108] sm:$0xff] }
  0xd0   :  { %v262_v0 = vpop.f32.mrf.mxu2  ;;  %v224_v16 = vpop.f32.mrf.mxu1  ;;  %625 = vmatpush.msra.mxu0 %v4048_v61 }
  0xd1   :  { %v4053_v40 = vadd.f32 %v262_v0, %v3921_v23  ;;  %v4060_v34 = vadd.f32 %v224_v16, %v3904_v13  ;;  %677 = vmatpush.msra.mxu2 %v4057_v37  ;;  %v162_v0 = vpop.f32.mrf.mxu0  ;;  %646 = vmatpush.msra.mxu1 %v4068_v11  ;;  %v4075_v16 = vld [vmem:[#allocation6 + $0xf8] sm:$0xff]  ;;  %v4083_v37 = vld [vmem:[#allocation6 + $0xe0] sm:$0xff] }
  0xd2   :  { %626 = vmatpush.msra.mxu0 %v4066_v18  ;;  %v163_v12 = vadd.f32 %v162_v0, %v4063_v9  ;;  %v4098_v9 = vld [vmem:[#allocation6 + $0xa8] sm:$0xff] }
  0xd3   :  { %6517 = vst [vmem:[#allocation67_spill] sm:$0xff] %v4053_v40  ;;  %792 = vmatpush.msrb.mxu2 %v3561_v10  ;;  %v4073_v40 = vld [vmem:[#allocation6 + $0xf0] sm:$0xff]  ;;  %647 = vmatpush.msra.mxu1 %v4075_v16 }
  0xd4   :  { %6519 = vst [vmem:[#allocation69_spill] sm:$0xff] %v4060_v34  ;;  %627 = vmatpush.msra.mxu0 %v4073_v40  ;;  %v4081_v34 = vld [vmem:[#allocation6 + $0xd8] sm:$0xff] }
  0xd5   :  { %793 = vmatpush.msrb.mxu2 %v3572_v14  ;;  %648 = vmatpush.msra.mxu1 %v4083_v37 }
  0xd6   :  { %628 = vmatpush.msra.mxu0 %v4081_v34 }
  0xd7   :  { %794 = vmatpush.msrb.mxu2 %v3583_v17  ;;  %649 = vmatpush.msra.mxu1 %v4090_v55 }
  0xd8   :  { %v265_v10 = vpop.f32.mrf.mxu2  ;;  %v484_v0 = vpop.f32.mrf.mxu1  ;;  %629 = vmatpush.msra.mxu0 %v4088_v62 }
  0xd9   :  { %v4093_v46 = vadd.f32 %v265_v10, %v3921_v23  ;;  %v527_v14 = vadd.f32 %v484_v0, %v163_v12  ;;  %795 = vmatpush.msrb.mxu2 %v3592_v20  ;;  %650 = vmatpush.msra.mxu1 %v4100_v59  ;;  %v4105_v10 = vld [vmem:[#allocation6 + $0x90] sm:$0xff]  ;;  %v4112_v20 = vld [vmem:[#allocation6 + $0x78] sm:$0xff]  ;;  %v4114_v12 = vld [vmem:[#allocation6 + $0x80] sm:$0xff]  ;;  %v204_v0 = vadd.f32 %v3878_v1, %v3904_v13 }
  0xda   :  { %630 = vmatpush.msra.mxu0 %v4098_v9  ;;  %6523 = vst [vmem:[#allocation73_spill] sm:$0xff] %v4114_v12  ;;  %v4130_v1 = vld [vmem:[#allocation6 + $0x48] sm:$0xff]  ;;  %v4132_v13 = vld [vmem:[#allocation6 + $0x50] sm:$0xff] }
  0xdb   :  { %6521 = vst [vmem:[#allocation71_spill] sm:$0xff] %v4093_v46  ;;  %v2743_v17 = vmul.f32 -1.442695, %v527_v14  ;;  %796 = vmatpush.msrb.mxu2 %v3606_v24  ;;  %v4107_v46 = vld [vmem:[#allocation6 + $0x98] sm:$0xff]  ;;  %v4121_v14 = vld [vmem:[#allocation6 + $0x60] sm:$0xff] }
  0xdc   :  { %6522 = vst [vmem:[#allocation72_spill] sm:$0xff] %v4107_v46  ;;  %631 = vmatpush.msra.mxu0 %v4105_v10  ;;  %651 = vmatpush.msra.mxu1 %v4107_v46  ;;  %v4123_v46 = vld [vmem:[#allocation6 + $0x68] sm:$0xff] }
  0xdd   :  { %2784 = vpow2.f32 %v2743_v17  ;;  %797 = vmatpush.msrb.mxu2 %v3614_v26  ;;  %6524 = vst [vmem:[#allocation74_spill] sm:$0xff] %v4123_v46  ;;  %v4127_v26 = vpop.f32.mrf.mxu3 }
  0xde   :  { %632 = vmatpush.msra.mxu0 %v4112_v20  ;;  %652 = vmatpush.msra.mxu1 %v4114_v12  ;;  %6525 = vst [vmem:[#allocation75_spill] sm:$0xff] %v4127_v26 }
  0xdf   :  { %798 = vmatpush.msrb.mxu2 %v3625_v29 }
  0xe0   :  { %v504_v24 = vpop.f32.mrf.mxu2  ;;  %633 = vmatpush.msra.mxu0 %v4121_v14  ;;  %653 = vmatpush.msra.mxu1 %v4123_v46 }
  0xe1   :  { %v547_v17 = vadd.f32 %v504_v24, %v204_v0  ;;  %799 = vmatpush.msrb.mxu2 %v3634_v32  ;;  %v4137_v0 = vld [vmem:[#allocation6 + $0x30] sm:$0xff]  ;;  %v4139_v24 = vld [vmem:[#allocation6 + $0x38] sm:$0xff] }
  0xe2   :  { %634 = vmatpush.msra.mxu0 %v4130_v1  ;;  %654 = vmatpush.msra.mxu1 %v4132_v13  ;;  %v4144_v32 = vld [vmem:[#allocation6 + $0x18] sm:$0xff] }
  0xe3   :  { %v2744_v12 = vmul.f32 -1.442695, %v547_v17  ;;  %v2785_v29 = vpop.eup %2784  ;;  %800 = vmatpush.msrb.mxu2 %v3646_v35  ;;  %v4146_v17 = vld [vmem:[#allocation6 + $0x20] sm:$0xff] }
  0xe4   :  { %v531_v46 = vadd.f32 1.0, %v2785_v29  ;;  %635 = vmatpush.msra.mxu0 %v4137_v0  ;;  %655 = vmatpush.msra.mxu1 %v4139_v24  ;;  %v4151_v35 = vld [vmem:[#allocation6] sm:$0xff] }
  0xe5   :  { %2786 = vpow2.f32 %v2744_v12  ;;  %801 = vmatpush.msrb.mxu2 %v3656_v38  ;;  %v4153_v12 = vld [vmem:[#allocation6 + $0x8] sm:$0xff]  ;;  %v4157_v38 = vpop.f32.mrf.mxu3 }
  0xe6   :  { %2788 = vrcp.f32 %v531_v46  ;;  %636 = vmatpush.msra.mxu0 %v4144_v32  ;;  %656 = vmatpush.msra.mxu1 %v4146_v17  ;;  %6526 = vst [vmem:[#allocation76_spill] sm:$0xff] %v4157_v38  ;;  %vm537_vm3 = vweird.f32 %v531_v46 }
  0xe7   :  { %802 = vmatpush.msrb.mxu2 %v3667_v41 }
  0xe8   :  { %637 = vmatpush.msra.mxu0 %v4151_v35  ;;  %657 = vmatpush.msra.mxu1 %v4153_v12 }
  0xe9   :  { %803 = vmatpush.msrb.mxu2 %v3678_v45 }
  0xea   :  { %749 = vmatpush.msrb.mxu0 %v3675_v44  ;;  %769 = vmatpush.msrb.mxu1 %v3889_v6  ;;  %v4176_v44 = vld [vmem:[%s6187_s4] ss:$0 sm:$0xff] }
  0xeb   :  { %v2787_v29 = vpop.eup %2786  ;;  %804 = vmatpush.msrb.mxu2 %v3696_v50  ;;  %v543_v50 = vand.u32 2147483648, %v531_v46 }
  0xec   :  { %v4162_v26 = vadd.f32 1.0, %v2787_v29  ;;  %750 = vmatpush.msrb.mxu0 %v3689_v48  ;;  %v2789_v41 = vpop.eup %2788  ;;  %770 = vmatpush.msrb.mxu1 %v3891_v7  ;;  %v6527_v29 = vld [vmem:[#allocation11_spill] sm:$0xff]  ;;  %v6529_v7 = vld [vmem:[#allocation13_spill] sm:$0xff] }
  0xed   :  { %805 = vmatpush.msrb.mxu2 %v3708_v53  ;;  %v533_v45 = vmul.f32 %v2789_v41, %v531_v46  ;;  %vm538_vm2 = vweird.f32 %v2789_v41  ;;  %v541_v53 = vand.u32 2147483647, %v531_v46 }
  0xee   :  { %2790 = vrcp.f32 %v4162_v26  ;;  %751 = vmatpush.msrb.mxu0 %v3700_v51  ;;  %771 = vmatpush.msrb.mxu1 %v3912_v19  ;;  %vm539_vm4 = vmor %vm537_vm3, %vm538_vm2  ;;  %vm557_vm7 = vweird.f32 %v4162_v26 }
  0xef   :  { %806 = vmatpush.msrb.mxu2 %v3722_v58  ;;  %v534_v48 = vsub.f32 1.0, %v533_v45  ;;  %vm542_vm5 = vcmp.eq.f32.partialorder %v541_v53, 8.507059e+37  ;;  %v6534_v53 = vld [vmem:[#allocation18_spill] sm:$0xff] }
  0xf0   :  { %752 = vmatpush.msrb.mxu0 %v3710_v54  ;;  %772 = vmatpush.msrb.mxu1 %v3914_v22 }
  0xf1   :  { %807 = vmatpush.msrb.mxu2 %v3738_v63  ;;  %v535_v51 = vmul.f32 %v2789_v41, %v534_v48  ;;  %v544_v63 = vor.u32 1.1754944e-38, %v543_v50 }
  0xf2   :  { %753 = vmatpush.msrb.mxu0 %v3718_v57  ;;  %773 = vmatpush.msrb.mxu1 %v3930_v31  ;;  %v6528_v57 = vld [vmem:[#allocation12_spill] sm:$0xff] }
  0xf3   :  { %v536_v19 = vadd.f32 %v2789_v41, %v535_v51  ;;  %v245_v51 = vadd.f32 %v3884_v2, %v3921_v23  ;;  %v563_v2 = vand.u32 2147483648, %v4162_v26 }
  0xf4   :  { %v2791_v58 = vpop.eup %2790  ;;  %754 = vmatpush.msrb.mxu0 %v6527_v29  ;;  %774 = vmatpush.msrb.mxu1 %v3934_v36  ;;  %v6530_v29 = vld [vmem:[#allocation14_spill] sm:$0xff] }
  0xf5   :  { %v524_v54 = vpop.f32.mrf.mxu3  ;;  %v553_v38 = vmul.f32 %v2791_v58, %v4162_v26  ;;  %v540_v22 = vsel %vm539_vm4, %v2789_v41, %v536_v19  ;;  %vm558_vm6 = vweird.f32 %v2791_v58 }
  0xf6   :  { %v567_v45 = vadd.f32 %v4176_v44, %v524_v54  ;;  %755 = vmatpush.msrb.mxu0 %v6528_v57  ;;  %775 = vmatpush.msrb.mxu1 %v3942_v39  ;;  %v545_v31 = vsel %vm542_vm5, %v544_v63, %v540_v22  ;;  %v561_v22 = vand.u32 2147483647, %v4162_v26  ;;  %vm559_vm8 = vmor %vm557_vm7, %vm558_vm6  ;;  %v564_v63 = vor.u32 1.1754944e-38, %v563_v2  ;;  %v6543_v2 = vld [vmem:[#allocation27_spill] sm:$0xff] }
  0xf7   :  { %v554_v48 = vsub.f32 1.0, %v553_v38  ;;  %v6531_v38 = vld [vmem:[#allocation15_spill] sm:$0xff] }
  0xf8   :  { %756 = vmatpush.msrb.mxu0 %v6529_v7  ;;  %v568_v46 = vmul.f32 %v567_v45, %v545_v31  ;;  %776 = vmatpush.msrb.mxu1 %v3951_v49  ;;  %v6532_v7 = vld [vmem:[#allocation16_spill] sm:$0xff]  ;;  %v6533_v31 = vld [vmem:[#allocation17_spill] sm:$0xff]  ;;  %vm562_vm9 = vcmp.eq.f32.partialorder %v561_v22, 8.507059e+37 }
  0xf9   :  { %v555_v54 = vmul.f32 %v2791_v58, %v554_v48  ;;  %v6535_v48 = vld [vmem:[#allocation19_spill] sm:$0xff]  ;;  %v6544_v22 = vld [vmem:[#allocation28_spill] sm:$0xff] }
  0xfa   :  { %757 = vmatpush.msrb.mxu0 %v6530_v29  ;;  %v569_v50 = vadd.f32 %v568_v46, %v245_v51  ;;  %777 = vmatpush.msrb.mxu1 %v3960_v60  ;;  %v6536_v46 = vld [vmem:[#allocation20_spill] sm:$0xff]  ;;  %v6538_v29 = vld [vmem:[#allocation22_spill] sm:$0xff] }
  0xfb   :  { %v556_v19 = vadd.f32 %v2791_v58, %v555_v54 }
  0xfc   :  { %758 = vmatpush.msrb.mxu0 %v6531_v38  ;;  %2792 = vtanh.f32 %v569_v50  ;;  %778 = vmatpush.msrb.mxu1 %v3966_v4  ;;  %v6539_v50 = vld [vmem:[#allocation23_spill] sm:$0xff]  ;;  %v6540_v38 = vld [vmem:[#allocation24_spill] sm:$0xff] }
  0xfd   :  { %v560_v41 = vsel %vm559_vm8, %v2791_v58, %v556_v19  ;;  %v6537_v58 = vld [vmem:[#allocation21_spill] sm:$0xff] }
  0xfe   :  { %759 = vmatpush.msrb.mxu0 %v6532_v7  ;;  %779 = vmatpush.msrb.mxu1 %v3972_v33  ;;  %v565_v51 = vsel %vm562_vm9, %v564_v63, %v560_v41  ;;  %v6541_v19 = vld [vmem:[#allocation25_spill] sm:$0xff]  ;;  %v6542_v7 = vld [vmem:[#allocation26_spill] sm:$0xff]  ;;  %v6546_v41 = vld [vmem:[#allocation72_spill] sm:$0xff] }
  0xff   :  { %v6550_v63 = vld [vmem:[#allocation74_spill] sm:$0xff] }
 0x100   :  { %760 = vmatpush.msrb.mxu0 %v6533_v31  ;;  %780 = vmatpush.msrb.mxu1 %v3981_v47  ;;  %v6545_v31 = vld [vmem:[#allocation29_spill] sm:$0xff] }
 0x102   :  { %761 = vmatpush.msrb.mxu0 %v6534_v53  ;;  %v2793_v45 = vpop.eup %2792  ;;  %781 = vmatpush.msrb.mxu1 %v3990_v30  ;;  %v6547_v53 = vld [vmem:[#allocation30_spill] sm:$0xff] }
 0x103   :  { %v571_v57 = vsub.f32 0.0, %v2793_v45 }
 0x104   :  { %762 = vmatpush.msrb.mxu0 %v6535_v48  ;;  %782 = vmatpush.msrb.mxu1 %v3996_v25  ;;  %v6553_v48 = vld [vmem:[#allocation34_spill] sm:$0xff] }
 0x105   :  { %v572_v26 = vmul.f32 %v571_v57, %v565_v51  ;;  %v6551_v57 = vld [vmem:[#allocation32_spill] sm:$0xff]  ;;  %v6554_v51 = vld [vmem:[#allocation35_spill] sm:$0xff] }
 0x106   :  { %763 = vmatpush.msrb.mxu0 %v6536_v46  ;;  %783 = vmatpush.msrb.mxu1 %v4002_v42  ;;  %v6556_v46 = vld [vmem:[#allocation41_spill] sm:$0xff] }
 0x107   :  { %v4209_v54 = vadd.f32 %v2793_v45, %v572_v26  ;;  %v6549_v45 = vld [vmem:[#allocation31_spill] sm:$0xff]  ;;  %v6555_v26 = vld [vmem:[#allocation37_spill] sm:$0xff] }
 0x108   :  { %764 = vmatpush.msrb.mxu0 %v6537_v58  ;;  %784 = vmatpush.msrb.mxu1 %v4011_v27  ;;  %v6557_v58 = vld [vmem:[#allocation42_spill] sm:$0xff] }
 0x109   :  { %638 = vmatmul.f32.vlgmr.msra.gmra.mxu0 %v4209_v54  ;;  %658 = vmatmul.f32.vlgmr.msra.gmra.mxu1 %v4209_v54 }
 0x10a   :  { %678 = vmatmul.f32.vlgmr.msra.gmra.mxu2 %v4209_v54  ;;  %832 = vmatpush.msra.mxu0 %v6538_v29  ;;  %v6558_v29 = vld [vmem:[#allocation45_spill] sm:$0xff] }
 0x10b   :  { %899 = vmatpush.msra.mxu1 %v4020_v28  ;;  %919 = vmatpush.msra.mxu2 %v4022_v21 }
 0x10c   :  { %833 = vmatpush.msra.mxu0 %v6539_v50  ;;  %v4271_v50 = vpop.f32.mrf.mxu0 }
 0x10d   :  { %900 = vmatpush.msra.mxu1 %v4029_v15  ;;  %920 = vmatpush.msra.mxu2 %v4031_v5 }
 0x10e   :  { %834 = vmatpush.msra.mxu0 %v6540_v38 }
 0x10f   :  { %901 = vmatpush.msra.mxu1 %v4039_v56  ;;  %921 = vmatpush.msra.mxu2 %v4041_v43 }
 0x110   :  { %835 = vmatpush.msra.mxu0 %v6541_v19 }
 0x111   :  { %902 = vmatpush.msra.mxu1 %v4048_v61  ;;  %922 = vmatpush.msra.mxu2 %v4050_v52 }
 0x112   :  { %808 = vmatmul.f32.vlgmr.msrb.gmra.mxu2 %v4209_v54  ;;  %836 = vmatpush.msra.mxu0 %v6542_v7  ;;  %v6567_v7 = vld [vmem:[#allocation75_spill] sm:$0xff] }
 0x113   :  { %903 = vmatpush.msra.mxu1 %v4066_v18  ;;  %923 = vmatpush.msra.mxu2 %v4068_v11 }
 0x114   :  { %837 = vmatpush.msra.mxu0 %v6543_v2 }
 0x115   :  { %904 = vmatpush.msra.mxu1 %v4073_v40  ;;  %924 = vmatpush.msra.mxu2 %v4075_v16 }
 0x116   :  { %838 = vmatpush.msra.mxu0 %v6544_v22  ;;  %v6568_v22 = vld [vmem:[#allocation76_spill] sm:$0xff] }
 0x117   :  { %905 = vmatpush.msra.mxu1 %v4081_v34  ;;  %925 = vmatpush.msra.mxu2 %v4083_v37 }
 0x118   :  { %839 = vmatpush.msra.mxu0 %v3826_v3  ;;  %v6548_v3 = vld [vmem:[#allocation73_spill] sm:$0xff] }
 0x119   :  { %906 = vmatpush.msra.mxu1 %v4088_v62  ;;  %926 = vmatpush.msra.mxu2 %v4090_v55 }
 0x11a   :  { %840 = vmatpush.msra.mxu0 %v6545_v31 }
 0x11b   :  { %907 = vmatpush.msra.mxu1 %v4098_v9  ;;  %927 = vmatpush.msra.mxu2 %v4100_v59 }
 0x11c   :  { %841 = vmatpush.msra.mxu0 %v3832_v8  ;;  %v6552_v8 = vld [vmem:[#allocation33_spill] sm:$0xff] }
 0x11d   :  { %908 = vmatpush.msra.mxu1 %v4105_v10  ;;  %928 = vmatpush.msra.mxu2 %v6546_v41 }
 0x11e   :  { %842 = vmatpush.msra.mxu0 %v6547_v53 }
 0x11f   :  { %909 = vmatpush.msra.mxu1 %v4112_v20  ;;  %929 = vmatpush.msra.mxu2 %v6548_v3 }
 0x120   :  { %843 = vmatpush.msra.mxu0 %v6549_v45 }
 0x121   :  { %910 = vmatpush.msra.mxu1 %v4121_v14  ;;  %930 = vmatpush.msra.mxu2 %v6550_v63 }
 0x122   :  { %844 = vmatpush.msra.mxu0 %v6551_v57 }
 0x123   :  { %911 = vmatpush.msra.mxu1 %v4130_v1  ;;  %931 = vmatpush.msra.mxu2 %v4132_v13 }
 0x124   :  { %845 = vmatpush.msra.mxu0 %v6552_v8 }
 0x125   :  { %912 = vmatpush.msra.mxu1 %v4137_v0  ;;  %932 = vmatpush.msra.mxu2 %v4139_v24 }
 0x126   :  { %846 = vmatpush.msra.mxu0 %v6553_v48 }
 0x127   :  { %913 = vmatpush.msra.mxu1 %v4144_v32  ;;  %933 = vmatpush.msra.mxu2 %v4146_v17 }
 0x128   :  { %847 = vmatpush.msra.mxu0 %v6554_v51 }
 0x129   :  { %914 = vmatpush.msra.mxu1 %v4151_v35  ;;  %934 = vmatpush.msra.mxu2 %v4153_v12 }
 0x12b   :  { %1046 = vmatpush.msrb.mxu2 %v3889_v6  ;;  %v4278_v6 = vpop.f32.mrf.mxu0 }
 0x12c   :  { %6559 = vst [vmem:[#allocation11_spill] sm:$0xff] %v4278_v6  ;;  %v6598_v6 = vld [vmem:[#allocation62_spill] sm:$0xff] }
 0x12d   :  { %1047 = vmatpush.msrb.mxu2 %v6555_v26 }
 0x12f   :  { %1048 = vmatpush.msrb.mxu2 %v6556_v46 }
 0x131   :  { %1049 = vmatpush.msrb.mxu2 %v6557_v58 }
 0x133   :  { %1050 = vmatpush.msrb.mxu2 %v6558_v29 }
 0x135   :  { %1051 = vmatpush.msrb.mxu2 %v3934_v36  ;;  %v4285_v36 = vpop.f32.mrf.mxu0 }
 0x136   :  { %6560 = vst [vmem:[#allocation12_spill] sm:$0xff] %v4285_v36 }
 0x137   :  { %1052 = vmatpush.msrb.mxu2 %v3942_v39 }
 0x139   :  { %1053 = vmatpush.msrb.mxu2 %v3951_v49 }
 0x13b   :  { %1054 = vmatpush.msrb.mxu2 %v3960_v60 }
 0x13d   :  { %1055 = vmatpush.msrb.mxu2 %v3966_v4  ;;  %v4287_v39 = vpop.f32.mrf.mxu0 }
 0x13e   :  { %6561 = vst [vmem:[#allocation13_spill] sm:$0xff] %v4287_v39 }
 0x13f   :  { %1056 = vmatpush.msrb.mxu2 %v3972_v33 }
 0x141   :  { %1057 = vmatpush.msrb.mxu2 %v3981_v47 }
 0x143   :  { %1058 = vmatpush.msrb.mxu2 %v3990_v30  ;;  %v296_v30 = vld [vmem:[%s6190_s7] sm:$0x7] }
 0x144   :  { %v4298_v47 = vperm.slane %v296_v30, 0 }
 0x145   :  { %1059 = vmatpush.msrb.mxu2 %v3996_v25  ;;  %v4289_v49 = vpop.f32.mrf.mxu0  ;;  %v4300_v25 = vperm.slane %v296_v30, 1 }
 0x146   :  { %6562 = vst [vmem:[#allocation14_spill] sm:$0xff] %v4289_v49 }
 0x147   :  { %1060 = vmatpush.msrb.mxu2 %v4002_v42  ;;  %6565 = vst [vmem:[#allocation17_spill] sm:$0xff] %v4298_v47 }
 0x148   :  { %6566 = vst [vmem:[#allocation18_spill] sm:$0xff] %v4300_v25 }
 0x149   :  { %1061 = vmatpush.msrb.mxu2 %v4011_v27 }
 0x14d   :  { %v4291_v60 = vpop.f32.mrf.mxu0 }
 0x14e   :  { %6563 = vst [vmem:[#allocation15_spill] sm:$0xff] %v4291_v60 }
 0x155   :  { %v4293_v4 = vpop.f32.mrf.mxu0 }
 0x156   :  { %6564 = vst [vmem:[#allocation16_spill] sm:$0xff] %v4293_v4 }
 0x15d   :  { %v413_v33 = vpop.f32.mrf.mxu0 }
 0x186   :  { %v639_v27 = vpop.f32.mrf.mxu0  ;;  %v659_v42 = vpop.f32.mrf.mxu1 }
 0x187   :  { %v640_v38 = vadd.f32 %v639_v27, %v4298_v47  ;;  %v660_v19 = vadd.f32 %v659_v42, %v4300_v25 }
 0x189   :  { %v682_v2 = vadd.f32 %v640_v38, %v6567_v7  ;;  %v702_v31 = vadd.f32 %v660_v19, %v6568_v22  ;;  %v4309_v38 = vld [vmem:[%s6191_s8] ss:$0 sm:$0xff] }
 0x18b   :  { %v2745_v53 = vmul.f32 -1.442695, %v682_v2  ;;  %v2746_v45 = vmul.f32 -1.442695, %v702_v31  ;;  %v4311_v2 = vperm.slane %v296_v30, 2 }
 0x18d   :  { %2794 = vpow2.f32 %v2745_v53  ;;  %v679_v53 = vpop.f32.mrf.mxu2 }
 0x18e   :  { %2796 = vpow2.f32 %v2746_v45  ;;  %v680_v4 = vadd.f32 %v679_v53, %v4311_v2  ;;  %v6576_v53 = vld [vmem:[#allocation50_spill] sm:$0xff] }
 0x193   :  { %v2795_v57 = vpop.eup %2794 }
 0x194   :  { %v2797_v8 = vpop.eup %2796  ;;  %v686_v48 = vadd.f32 1.0, %v2795_v57  ;;  %v722_v57 = vadd.f32 %v4309_v38, %v413_v33 }
 0x195   :  { %v706_v51 = vadd.f32 1.0, %v2797_v8 }
 0x196   :  { %2798 = vrcp.f32 %v686_v48  ;;  %v698_v42 = vand.u32 2147483648, %v686_v48  ;;  %v696_v7 = vand.u32 2147483647, %v686_v48  ;;  %vm692_vm11 = vweird.f32 %v686_v48 }
 0x197   :  { %2800 = vrcp.f32 %v706_v51  ;;  %v718_v30 = vand.u32 2147483648, %v706_v51  ;;  %vm712_vm15 = vweird.f32 %v706_v51 }
 0x198   :  { %v699_v45 = vor.u32 1.1754944e-38, %v698_v42  ;;  %vm697_vm13 = vcmp.eq.f32.partialorder %v696_v7, 8.507059e+37 }
 0x199   :  { %v719_v42 = vor.u32 1.1754944e-38, %v718_v30  ;;  %v4355_v30 = vld [vmem:[#allocation8 + $0x110] sm:$0xff] }
 0x19a   :  { %6582 = vst [vmem:[#allocation26_spill] sm:$0xff] %v4355_v30 }
 0x19c   :  { %v2799_v26 = vpop.eup %2798 }
 0x19d   :  { %v2801_v46 = vpop.eup %2800  ;;  %v688_v58 = vmul.f32 %v2799_v26, %v686_v48  ;;  %vm693_vm10 = vweird.f32 %v2799_v26  ;;  %v716_v48 = vand.u32 2147483647, %v706_v51 }
 0x19e   :  { %v708_v27 = vmul.f32 %v2801_v46, %v706_v51  ;;  %vm694_vm12 = vmor %vm692_vm11, %vm693_vm10  ;;  %vm713_vm14 = vweird.f32 %v2801_v46  ;;  %v4331_v51 = vld [vmem:[#allocation8 + $0x158] sm:$0xff] }
 0x19f   :  { %v689_v29 = vsub.f32 1.0, %v688_v58  ;;  %vm714_vm0 = vmor %vm712_vm15, %vm713_vm14  ;;  %vm717_vm1 = vcmp.eq.f32.partialorder %v716_v48, 8.507059e+37  ;;  %6572 = vst [vmem:[#allocation20_spill] sm:$0xff] %v4331_v51  ;;  %v6583_v48 = vld [vmem:[#allocation54_spill] sm:$0xff] }
 0x1a0   :  { %v709_v31 = vsub.f32 1.0, %v708_v27 }
 0x1a1   :  { %v690_v19 = vmul.f32 %v2799_v26, %v689_v29 }
 0x1a2   :  { %v710_v49 = vmul.f32 %v2801_v46, %v709_v31  ;;  %v4338_v31 = vld [vmem:[#allocation8 + $0x140] sm:$0xff] }
 0x1a3   :  { %v691_v22 = vadd.f32 %v2799_v26, %v690_v19  ;;  %6575 = vst [vmem:[#allocation22_spill] sm:$0xff] %v4338_v31 }
 0x1a4   :  { %v711_v39 = vadd.f32 %v2801_v46, %v710_v49  ;;  %v6569_v49 = vld [vmem:[#allocation46_spill] sm:$0xff] }
 0x1a5   :  { %v695_v8 = vsel %vm694_vm12, %v2799_v26, %v691_v22  ;;  %v4335_v22 = vld [vmem:[#allocation8 + $0x138] sm:$0xff] }
 0x1a6   :  { %v700_v58 = vsel %vm697_vm13, %v699_v45, %v695_v8  ;;  %v715_v27 = vsel %vm714_vm0, %v2801_v46, %v711_v39  ;;  %v4324_v39 = vld [vmem:[#allocation8 + $0x170] sm:$0xff]  ;;  %v6573_v46 = vld [vmem:[#allocation48_spill] sm:$0xff]  ;;  %6574 = vst [vmem:[#allocation21_spill] sm:$0xff] %v4335_v22 }
 0x1a7   :  { %v723_v60 = vmul.f32 %v722_v57, %v700_v58  ;;  %v720_v33 = vsel %vm717_vm1, %v719_v42, %v715_v27  ;;  %v6577_v45 = vld [vmem:[#allocation52_spill] sm:$0xff]  ;;  %v4345_v57 = vld [vmem:[#allocation8 + $0x120] sm:$0xff]  ;;  %v6580_v58 = vld [vmem:[#allocation53_spill] sm:$0xff] }
 0x1a8   :  { %6578 = vst [vmem:[#allocation23_spill] sm:$0xff] %v4345_v57  ;;  %v4348_v8 = vld [vmem:[#allocation8 + $0x128] sm:$0xff]  ;;  %v4359_v27 = vld [vmem:[#allocation8 + $0xf0] sm:$0xff] }
 0x1a9   :  { %v724_v29 = vadd.f32 %v723_v60, %v680_v4  ;;  %v4321_v60 = vld [vmem:[#allocation8 + $0x168] sm:$0xff]  ;;  %v6570_v4 = vld [vmem:[#allocation47_spill] sm:$0xff]  ;;  %6579 = vst [vmem:[#allocation24_spill] sm:$0xff] %v4348_v8 }
 0x1aa   :  { %6584 = vst [vmem:[#allocation27_spill] sm:$0xff] %v4359_v27  ;;  %v6586_v42 = vld [vmem:[#allocation56_spill] sm:$0xff] }
 0x1ab   :  { %2802 = vtanh.f32 %v724_v29  ;;  %v4352_v29 = vld [vmem:[#allocation8 + $0x108] sm:$0xff] }
 0x1ac   :  { %6581 = vst [vmem:[#allocation25_spill] sm:$0xff] %v4352_v29 }
 0x1b1   :  { %v2803_v19 = vpop.eup %2802 }
 0x1b2   :  { %v726_v36 = vsub.f32 0.0, %v2803_v19 }
 0x1b4   :  { %v727_v26 = vmul.f32 %v726_v36, %v720_v33  ;;  %v4328_v36 = vld [vmem:[#allocation8 + $0x150] sm:$0xff]  ;;  %v4366_v33 = vld [vmem:[#allocation8 + $0xd8] sm:$0xff] }
 0x1b5   :  { %6571 = vst [vmem:[#allocation19_spill] sm:$0xff] %v4328_v36 }
 0x1b6   :  { %v4315_v7 = vadd.f32 %v2803_v19, %v727_v26  ;;  %v4362_v19 = vld [vmem:[#allocation8 + $0xf8] sm:$0xff]  ;;  %6587 = vst [vmem:[#allocation29_spill] sm:$0xff] %v4366_v33  ;;  %v4369_v26 = vld [vmem:[#allocation8 + $0xe0] sm:$0xff] }
 0x1b7   :  { %6585 = vst [vmem:[#allocation28_spill] sm:$0xff] %v4362_v19 }
 0x1b8   :  { %745 = vmatmul.f32.vlgmr.msrb.gmra.mxu3 %v4315_v7  ;;  %765 = vmatmul.f32.vlgmr.msrb.gmra.mxu0 %v4315_v7  ;;  %6588 = vst [vmem:[#allocation72_spill] sm:$0xff] %v4369_v26 }
 0x1b9   :  { %785 = vmatmul.f32.vlgmr.msrb.gmra.mxu1 %v4315_v7  ;;  %939 = vmatpush.msrb.mxu3 %v6569_v49  ;;  %v6589_v49 = vld [vmem:[#allocation58_spill] sm:$0xff] }
 0x1ba   :  { %1006 = vmatpush.msrb.mxu0 %v4321_v60  ;;  %1026 = vmatpush.msrb.mxu1 %v4324_v39 }
 0x1bb   :  { %940 = vmatpush.msrb.mxu3 %v6570_v4  ;;  %v4373_v4 = vld [vmem:[#allocation8 + $0xc0] sm:$0xff] }
 0x1bc   :  { %1007 = vmatpush.msrb.mxu0 %v4328_v36  ;;  %1027 = vmatpush.msrb.mxu1 %v4331_v51  ;;  %6590 = vst [vmem:[#allocation30_spill] sm:$0xff] %v4373_v4 }
 0x1bd   :  { %941 = vmatpush.msrb.mxu3 %v6573_v46  ;;  %v4376_v46 = vld [vmem:[#allocation8 + $0xc8] sm:$0xff] }
 0x1be   :  { %1008 = vmatpush.msrb.mxu0 %v4335_v22  ;;  %1028 = vmatpush.msrb.mxu1 %v4338_v31  ;;  %6591 = vst [vmem:[#allocation73_spill] sm:$0xff] %v4376_v46 }
 0x1bf   :  { %942 = vmatpush.msrb.mxu3 %v6576_v53  ;;  %v6592_v53 = vld [vmem:[#allocation59_spill] sm:$0xff] }
 0x1c0   :  { %828 = vmatmul.f32.vlgmr.msra.gmra.mxu3 %v4209_v54  ;;  %848 = vmatmul.f32.vlgmr.msra.gmra.mxu0 %v4209_v54 }
 0x1c1   :  { %943 = vmatpush.msrb.mxu3 %v6577_v45  ;;  %1009 = vmatpush.msrb.mxu0 %v4345_v57  ;;  %v4380_v45 = vld [vmem:[#allocation8 + $0xa8] sm:$0xff] }
 0x1c2   :  { %1029 = vmatpush.msrb.mxu1 %v4348_v8  ;;  %6593 = vst [vmem:[#allocation31_spill] sm:$0xff] %v4380_v45 }
 0x1c3   :  { %944 = vmatpush.msrb.mxu3 %v6580_v58  ;;  %1010 = vmatpush.msrb.mxu0 %v4352_v29  ;;  %v4383_v58 = vld [vmem:[#allocation8 + $0xb0] sm:$0xff]  ;;  %v6649_v29 = vld [vmem:[#allocation36_spill] sm:$0xff] }
 0x1c4   :  { %1030 = vmatpush.msrb.mxu1 %v4355_v30  ;;  %6594 = vst [vmem:[#allocation74_spill] sm:$0xff] %v4383_v58  ;;  %v6648_v30 = vld [vmem:[#allocation38_spill] sm:$0xff] }
 0x1c5   :  { %945 = vmatpush.msrb.mxu3 %v6583_v48  ;;  %1011 = vmatpush.msrb.mxu0 %v4359_v27  ;;  %v6595_v48 = vld [vmem:[#allocation60_spill] sm:$0xff] }
 0x1c6   :  { %1031 = vmatpush.msrb.mxu1 %v4362_v19 }
 0x1c7   :  { %946 = vmatpush.msrb.mxu3 %v6586_v42  ;;  %1012 = vmatpush.msrb.mxu0 %v4366_v33  ;;  %v4387_v42 = vld [vmem:[#allocation8 + $0x90] sm:$0xff] }
 0x1c8   :  { %1032 = vmatpush.msrb.mxu1 %v4369_v26  ;;  %6596 = vst [vmem:[#allocation32_spill] sm:$0xff] %v4387_v42 }
 0x1c9   :  { %947 = vmatpush.msrb.mxu3 %v6589_v49  ;;  %1013 = vmatpush.msrb.mxu0 %v4373_v4  ;;  %v4390_v49 = vld [vmem:[#allocation8 + $0x98] sm:$0xff] }
 0x1ca   :  { %1033 = vmatpush.msrb.mxu1 %v4376_v46  ;;  %6597 = vst [vmem:[#allocation33_spill] sm:$0xff] %v4390_v49 }
 0x1cb   :  { %948 = vmatpush.msrb.mxu3 %v6592_v53  ;;  %1014 = vmatpush.msrb.mxu0 %v4380_v45  ;;  %v4394_v53 = vld [vmem:[#allocation8 + $0x78] sm:$0xff]  ;;  %v4397_v45 = vld [vmem:[#allocation8 + $0x80] sm:$0xff] }
 0x1cc   :  { %1034 = vmatpush.msrb.mxu1 %v4383_v58  ;;  %6599 = vst [vmem:[#allocation34_spill] sm:$0xff] %v4394_v53  ;;  %v6601_v58 = vld [vmem:[#allocation64_spill] sm:$0xff] }
 0x1cd   :  { %949 = vmatpush.msrb.mxu3 %v6595_v48  ;;  %1015 = vmatpush.msrb.mxu0 %v4387_v42  ;;  %6600 = vst [vmem:[#allocation35_spill] sm:$0xff] %v4397_v45  ;;  %v4401_v48 = vld [vmem:[#allocation8 + $0x60] sm:$0xff]  ;;  %v4404_v42 = vld [vmem:[#allocation8 + $0x68] sm:$0xff] }
 0x1ce   :  { %1035 = vmatpush.msrb.mxu1 %v4390_v49  ;;  %6602 = vst [vmem:[#allocation37_spill] sm:$0xff] %v4401_v48  ;;  %v6604_v49 = vld [vmem:[#allocation65_spill] sm:$0xff] }
 0x1cf   :  { %950 = vmatpush.msrb.mxu3 %v6598_v6  ;;  %1016 = vmatpush.msrb.mxu0 %v4394_v53  ;;  %6603 = vst [vmem:[#allocation41_spill] sm:$0xff] %v4404_v42  ;;  %v4408_v6 = vld [vmem:[#allocation8 + $0x48] sm:$0xff]  ;;  %v4411_v53 = vld [vmem:[#allocation8 + $0x50] sm:$0xff] }
 0x1d0   :  { %1036 = vmatpush.msrb.mxu1 %v4397_v45  ;;  %6605 = vst [vmem:[#allocation42_spill] sm:$0xff] %v4408_v6  ;;  %v6607_v45 = vld [vmem:[#allocation66_spill] sm:$0xff] }
 0x1d1   :  { %951 = vmatpush.msrb.mxu3 %v6601_v58  ;;  %1017 = vmatpush.msrb.mxu0 %v4401_v48  ;;  %6606 = vst [vmem:[#allocation45_spill] sm:$0xff] %v4411_v53  ;;  %v4415_v58 = vld [vmem:[#allocation8 + $0x30] sm:$0xff]  ;;  %v4418_v48 = vld [vmem:[#allocation8 + $0x38] sm:$0xff] }
 0x1d2   :  { %1037 = vmatpush.msrb.mxu1 %v4404_v42  ;;  %6608 = vst [vmem:[#allocation75_spill] sm:$0xff] %v4415_v58  ;;  %v6610_v42 = vld [vmem:[#allocation68_spill] sm:$0xff] }
 0x1d3   :  { %952 = vmatpush.msrb.mxu3 %v6604_v49  ;;  %1018 = vmatpush.msrb.mxu0 %v4408_v6  ;;  %6609 = vst [vmem:[#allocation76_spill] sm:$0xff] %v4418_v48  ;;  %v4422_v49 = vld [vmem:[#allocation8 + $0x18] sm:$0xff]  ;;  %v4425_v6 = vld [vmem:[#allocation4 + $0x168] sm:$0xff] }
 0x1d4   :  { %1038 = vmatpush.msrb.mxu1 %v4411_v53  ;;  %6611 = vst [vmem:[#allocation46_spill] sm:$0xff] %v4422_v49  ;;  %v4428_v53 = vld [vmem:[#allocation8 + $0x20] sm:$0xff] }
 0x1d5   :  { %953 = vmatpush.msrb.mxu3 %v6607_v45  ;;  %1019 = vmatpush.msrb.mxu0 %v4415_v58  ;;  %6612 = vst [vmem:[#allocation47_spill] sm:$0xff] %v4425_v6  ;;  %v4431_v45 = vld [vmem:[#allocation8] sm:$0xff]  ;;  %v4434_v58 = vld [vmem:[#allocation4 + $0x150] sm:$0xff] }
 0x1d6   :  { %1039 = vmatpush.msrb.mxu1 %v4418_v48  ;;  %6613 = vst [vmem:[#allocation48_spill] sm:$0xff] %v4428_v53  ;;  %v6647_v48 = vld [vmem:[#allocation70_spill] sm:$0xff] }
 0x1d7   :  { %954 = vmatpush.msrb.mxu3 %v6610_v42  ;;  %1020 = vmatpush.msrb.mxu0 %v4422_v49  ;;  %6614 = vst [vmem:[#allocation50_spill] sm:$0xff] %v4431_v45  ;;  %v4437_v42 = vld [vmem:[#allocation8 + $0x8] sm:$0xff]  ;;  %v4440_v49 = vld [vmem:[#allocation4 + $0x170] sm:$0xff] }
 0x1d8   :  { %1040 = vmatpush.msrb.mxu1 %v4428_v53  ;;  %6615 = vst [vmem:[#allocation52_spill] sm:$0xff] %v4434_v58  ;;  %v4446_v53 = vld [vmem:[#allocation4 + $0x158] sm:$0xff] }
 0x1d9   :  { %1069 = vmatpush.msra.mxu3 %v4425_v6  ;;  %1021 = vmatpush.msrb.mxu0 %v4431_v45  ;;  %6616 = vst [vmem:[#allocation53_spill] sm:$0xff] %v4437_v42  ;;  %v4443_v6 = vld [vmem:[#allocation4 + $0x138] sm:$0xff]  ;;  %v4449_v45 = vld [vmem:[#allocation4 + $0x120] sm:$0xff] }
 0x1da   :  { %1041 = vmatpush.msrb.mxu1 %v4437_v42  ;;  %6617 = vst [vmem:[#allocation54_spill] sm:$0xff] %v4440_v49  ;;  %v4455_v42 = vld [vmem:[#allocation4 + $0x108] sm:$0xff] }
 0x1db   :  { %1070 = vmatpush.msra.mxu3 %v4434_v58  ;;  %1089 = vmatpush.msra.mxu0 %v4440_v49  ;;  %6618 = vst [vmem:[#allocation56_spill] sm:$0xff] %v4443_v6  ;;  %v4452_v58 = vld [vmem:[#allocation4 + $0x140] sm:$0xff]  ;;  %v4458_v49 = vld [vmem:[#allocation4 + $0x128] sm:$0xff] }
 0x1dc   :  { %6619 = vst [vmem:[#allocation58_spill] sm:$0xff] %v4446_v53 }
 0x1dd   :  { %1071 = vmatpush.msra.mxu3 %v4443_v6  ;;  %1090 = vmatpush.msra.mxu0 %v4446_v53  ;;  %6620 = vst [vmem:[#allocation59_spill] sm:$0xff] %v4449_v45  ;;  %v4461_v6 = vld [vmem:[#allocation4 + $0xf0] sm:$0xff] }
 0x1de   :  { %6621 = vst [vmem:[#allocation60_spill] sm:$0xff] %v4452_v58  ;;  %v4464_v53 = vld [vmem:[#allocation4 + $0x110] sm:$0xff] }
 0x1df   :  { %1072 = vmatpush.msra.mxu3 %v4449_v45  ;;  %1091 = vmatpush.msra.mxu0 %v4452_v58  ;;  %6622 = vst [vmem:[#allocation62_spill] sm:$0xff] %v4455_v42  ;;  %v4467_v45 = vld [vmem:[#allocation4 + $0xd8] sm:$0xff] }
 0x1e0   :  { %6623 = vst [vmem:[#allocation64_spill] sm:$0xff] %v4458_v49  ;;  %v4470_v58 = vld [vmem:[#allocation4 + $0xf8] sm:$0xff] }
 0x1e1   :  { %1073 = vmatpush.msra.mxu3 %v4455_v42  ;;  %1092 = vmatpush.msra.mxu0 %v4458_v49  ;;  %6624 = vst [vmem:[#allocation65_spill] sm:$0xff] %v4461_v6  ;;  %v4473_v42 = vld [vmem:[#allocation4 + $0xc0] sm:$0xff] }
 0x1e2   :  { %6625 = vst [vmem:[#allocation66_spill] sm:$0xff] %v4464_v53  ;;  %v4476_v49 = vld [vmem:[#allocation4 + $0xe0] sm:$0xff] }
 0x1e3   :  { %1074 = vmatpush.msra.mxu3 %v4461_v6  ;;  %1093 = vmatpush.msra.mxu0 %v4464_v53  ;;  %6626 = vst [vmem:[#allocation68_spill] sm:$0xff] %v4467_v45  ;;  %v4479_v6 = vld [vmem:[#allocation4 + $0xa8] sm:$0xff] }
 0x1e4   :  { %6627 = vst [vmem:[#allocation77_spill] sm:$0xff] %v4470_v58  ;;  %v4482_v53 = vld [vmem:[#allocation4 + $0xc8] sm:$0xff] }
 0x1e5   :  { %1075 = vmatpush.msra.mxu3 %v4467_v45  ;;  %1094 = vmatpush.msra.mxu0 %v4470_v58  ;;  %6628 = vst [vmem:[#allocation78_spill] sm:$0xff] %v4473_v42  ;;  %v4485_v45 = vld [vmem:[#allocation4 + $0x90] sm:$0xff] }
 0x1e6   :  { %6629 = vst [vmem:[#allocation79_spill] sm:$0xff] %v4476_v49  ;;  %v4488_v58 = vld [vmem:[#allocation4 + $0xb0] sm:$0xff] }
 0x1e7   :  { %1076 = vmatpush.msra.mxu3 %v4473_v42  ;;  %1095 = vmatpush.msra.mxu0 %v4476_v49  ;;  %6630 = vst [vmem:[#allocation80_spill] sm:$0xff] %v4479_v6  ;;  %v4491_v42 = vld [vmem:[#allocation4 + $0x78] sm:$0xff] }
 0x1e8   :  { %6631 = vst [vmem:[#allocation81_spill] sm:$0xff] %v4482_v53  ;;  %v4494_v49 = vld [vmem:[#allocation4 + $0x98] sm:$0xff] }
 0x1e9   :  { %1077 = vmatpush.msra.mxu3 %v4479_v6  ;;  %1096 = vmatpush.msra.mxu0 %v4482_v53  ;;  %6632 = vst [vmem:[#allocation82_spill] sm:$0xff] %v4485_v45  ;;  %v4497_v6 = vld [vmem:[#allocation4 + $0x60] sm:$0xff] }
 0x1ea   :  { %6633 = vst [vmem:[#allocation83_spill] sm:$0xff] %v4488_v58  ;;  %v4500_v53 = vld [vmem:[#allocation4 + $0x80] sm:$0xff] }
 0x1eb   :  { %1078 = vmatpush.msra.mxu3 %v4485_v45  ;;  %1097 = vmatpush.msra.mxu0 %v4488_v58  ;;  %6634 = vst [vmem:[#allocation84_spill] sm:$0xff] %v4491_v42  ;;  %v4503_v45 = vld [vmem:[#allocation4 + $0x48] sm:$0xff] }
 0x1ec   :  { %6635 = vst [vmem:[#allocation85_spill] sm:$0xff] %v4494_v49  ;;  %v4506_v58 = vld [vmem:[#allocation4 + $0x68] sm:$0xff] }
 0x1ed   :  { %1079 = vmatpush.msra.mxu3 %v4491_v42  ;;  %1098 = vmatpush.msra.mxu0 %v4494_v49  ;;  %6636 = vst [vmem:[#allocation86_spill] sm:$0xff] %v4497_v6  ;;  %v4509_v42 = vld [vmem:[#allocation4 + $0x30] sm:$0xff] }
 0x1ee   :  { %6637 = vst [vmem:[#allocation87_spill] sm:$0xff] %v4500_v53  ;;  %v4512_v49 = vld [vmem:[#allocation4 + $0x50] sm:$0xff] }
 0x1ef   :  { %1080 = vmatpush.msra.mxu3 %v4497_v6  ;;  %1099 = vmatpush.msra.mxu0 %v4500_v53  ;;  %6638 = vst [vmem:[#allocation88_spill] sm:$0xff] %v4503_v45  ;;  %v4515_v6 = vld [vmem:[#allocation4 + $0x18] sm:$0xff] }
 0x1f0   :  { %6639 = vst [vmem:[#allocation89_spill] sm:$0xff] %v4506_v58  ;;  %v4518_v53 = vld [vmem:[#allocation4 + $0x38] sm:$0xff] }
 0x1f1   :  { %1081 = vmatpush.msra.mxu3 %v4503_v45  ;;  %1100 = vmatpush.msra.mxu0 %v4506_v58  ;;  %6640 = vst [vmem:[#allocation90_spill] sm:$0xff] %v4509_v42  ;;  %v4521_v45 = vld [vmem:[#allocation4] sm:$0xff] }
 0x1f2   :  { %6641 = vst [vmem:[#allocation91_spill] sm:$0xff] %v4512_v49  ;;  %v4524_v58 = vld [vmem:[#allocation4 + $0x20] sm:$0xff] }
 0x1f3   :  { %1082 = vmatpush.msra.mxu3 %v4509_v42  ;;  %1101 = vmatpush.msra.mxu0 %v4512_v49  ;;  %6642 = vst [vmem:[#allocation92_spill] sm:$0xff] %v4515_v6  ;;  %v4527_v42 = vld [vmem:[#allocation4 + $0x8] sm:$0xff]  ;;  %v809_v49 = vpop.f32.mrf.mxu2 }
 0x1f4   :  { %6643 = vst [vmem:[#allocation93_spill] sm:$0xff] %v4518_v53 }
 0x1f5   :  { %1083 = vmatpush.msra.mxu3 %v4515_v6  ;;  %1102 = vmatpush.msra.mxu0 %v4518_v53  ;;  %6644 = vst [vmem:[#allocation94_spill] sm:$0xff] %v4521_v45  ;;  %v166_v6 = vadd.f32 %v4271_v50, %v6647_v48 }
 0x1f6   :  { %6645 = vst [vmem:[#allocation95_spill] sm:$0xff] %v4524_v58 }
 0x1f7   :  { %1084 = vmatpush.msra.mxu3 %v4521_v45  ;;  %1103 = vmatpush.msra.mxu0 %v4524_v58  ;;  %6646 = vst [vmem:[#allocation96_spill] sm:$0xff] %v4527_v42  ;;  %v852_v46 = vadd.f32 %v809_v49, %v166_v6 }
 0x1f9   :  { %1104 = vmatpush.msra.mxu0 %v4527_v42  ;;  %v2747_v4 = vmul.f32 -1.442695, %v852_v46  ;;  %v207_v42 = vadd.f32 %v6649_v29, %v6648_v30 }
 0x1fb   :  { %2804 = vpow2.f32 %v2747_v4 }
 0x201   :  { %v2805_v53 = vpop.eup %2804 }
 0x202   :  { %v856_v26 = vadd.f32 1.0, %v2805_v53 }
 0x204   :  { %2806 = vrcp.f32 %v856_v26  ;;  %v868_v46 = vand.u32 2147483648, %v856_v26  ;;  %vm862_vm3 = vweird.f32 %v856_v26  ;;  %v866_v53 = vand.u32 2147483647, %v856_v26 }
 0x206   :  { %v869_v22 = vor.u32 1.1754944e-38, %v868_v46  ;;  %vm867_vm5 = vcmp.eq.f32.partialorder %v866_v53, 8.507059e+37  ;;  %v4547_v53 = vld [vmem:[#allocation4 + $0x178] sm:$0xff] }
 0x20a   :  { %v2807_v33 = vpop.eup %2806 }
 0x20b   :  { %v858_v19 = vmul.f32 %v2807_v33, %v856_v26  ;;  %vm863_vm2 = vweird.f32 %v2807_v33 }
 0x20c   :  { %vm864_vm4 = vmor %vm862_vm3, %vm863_vm2 }
 0x20d   :  { %v859_v58 = vsub.f32 1.0, %v858_v19 }
 0x20f   :  { %v860_v8 = vmul.f32 %v2807_v33, %v859_v58 }
 0x211   :  { %v861_v6 = vadd.f32 %v2807_v33, %v860_v8 }
 0x213   :  { %v865_v49 = vsel %vm864_vm4, %v2807_v33, %v861_v6 }
 0x214   :  { %v870_v51 = vsel %vm867_vm5, %v869_v22, %v865_v49  ;;  %v4562_v49 = vld [vmem:[#allocation4 + $0x130] sm:$0xff] }
 0x235   :  { %v4534_v27 = vpop.f32.mrf.mxu0 }
 0x23b   :  { %v4532_v45 = vpop.f32.mrf.mxu3 }
 0x23d   :  { %v849_v4 = vpop.f32.mrf.mxu0 }
 0x23e   :  { %v892_v48 = vadd.f32 %v4176_v44, %v849_v4 }
 0x240   :  { %v893_v29 = vmul.f32 %v892_v48, %v870_v51 }
 0x243   :  { %v829_v57 = vpop.f32.mrf.mxu3 }
 0x244   :  { %v872_v31 = vadd.f32 %v829_v57, %v207_v42  ;;  %v6650_v57 = vld [vmem:[#allocation39_spill] sm:$0xff] }
 0x246   :  { %v2748_v50 = vmul.f32 -1.442695, %v872_v31  ;;  %v248_v31 = vadd.f32 %v6650_v57, %v3921_v23 }
 0x248   :  { %2808 = vpow2.f32 %v2748_v50  ;;  %v894_v8 = vadd.f32 %v893_v29, %v248_v31 }
 0x24e   :  { %v2809_v19 = vpop.eup %2808 }
 0x24f   :  { %v876_v30 = vadd.f32 1.0, %v2809_v19 }
 0x251   :  { %2810 = vrcp.f32 %v876_v30  ;;  %v888_v26 = vand.u32 2147483648, %v876_v30  ;;  %v886_v33 = vand.u32 2147483647, %v876_v30  ;;  %vm882_vm7 = vweird.f32 %v876_v30 }
 0x252   :  { %2812 = vtanh.f32 %v894_v8 }
 0x253   :  { %v889_v22 = vor.u32 1.1754944e-38, %v888_v26  ;;  %vm887_vm9 = vcmp.eq.f32.partialorder %v886_v33, 8.507059e+37 }
 0x257   :  { %v2811_v58 = vpop.eup %2810 }
 0x258   :  { %v878_v42 = vmul.f32 %v2811_v58, %v876_v30  ;;  %vm883_vm6 = vweird.f32 %v2811_v58  ;;  %v2813_v44 = vpop.eup %2812 }
 0x259   :  { %vm884_vm8 = vmor %vm882_vm7, %vm883_vm6  ;;  %v896_v51 = vsub.f32 %v4209_v54, %v2813_v44  ;;  %v4552_v54 = vld [vmem:[#allocation4 + $0x160] sm:$0xff] }
 0x25a   :  { %v879_v50 = vsub.f32 1.0, %v878_v42 }
 0x25c   :  { %v880_v36 = vmul.f32 %v2811_v58, %v879_v50 }
 0x25e   :  { %v881_v6 = vadd.f32 %v2811_v58, %v880_v36  ;;  %v4557_v36 = vld [vmem:[#allocation4 + $0x148] sm:$0xff] }
 0x260   :  { %v885_v48 = vsel %vm884_vm8, %v2811_v58, %v881_v6 }
 0x261   :  { %v890_v23 = vsel %vm887_vm9, %v889_v22, %v885_v48 }
 0x262   :  { %v897_v4 = vmul.f32 %v896_v51, %v890_v23 }
 0x264   :  { %v4542_v46 = vadd.f32 %v2813_v44, %v897_v4 }
 0x266   :  { %915 = vmatmul.f32.vlgmr.msra.gmra.mxu1 %v4542_v46  ;;  %935 = vmatmul.f32.vlgmr.msra.gmra.mxu2 %v4542_v46 }
 0x267   :  { %955 = vmatmul.f32.vlgmr.msrb.gmra.mxu3 %v4542_v46  ;;  %1109 = vmatpush.msra.mxu1 %v4547_v53 }
 0x268   :  { %1176 = vmatpush.msra.mxu2 %v4020_v28  ;;  %1196 = vmatpush.msrb.mxu3 %v4022_v21  ;;  %v4631_v21 = vld [vmem:[#allocation8 + $0x160] sm:$0xff]  ;;  %v4634_v28 = vld [vmem:[#allocation8 + $0x148] sm:$0xff] }
 0x269   :  { %1110 = vmatpush.msra.mxu1 %v4552_v54 }
 0x26a   :  { %1177 = vmatpush.msra.mxu2 %v4029_v15  ;;  %1197 = vmatpush.msrb.mxu3 %v4031_v5  ;;  %v4568_v15 = vld [vmem:[#allocation4 + $0x118] sm:$0xff] }
 0x26b   :  { %1111 = vmatpush.msra.mxu1 %v4557_v36  ;;  %v4640_v5 = vld [vmem:[#allocation8 + $0x118] sm:$0xff] }
 0x26c   :  { %1178 = vmatpush.msra.mxu2 %v4039_v56  ;;  %1198 = vmatpush.msrb.mxu3 %v4041_v43  ;;  %v4573_v56 = vld [vmem:[#allocation4 + $0x100] sm:$0xff]  ;;  %v4578_v43 = vld [vmem:[#allocation4 + $0xe8] sm:$0xff] }
 0x26d   :  { %1112 = vmatpush.msra.mxu1 %v4562_v49 }
 0x26e   :  { %1179 = vmatpush.msra.mxu2 %v4048_v61  ;;  %1199 = vmatpush.msrb.mxu3 %v4050_v52  ;;  %v4583_v52 = vld [vmem:[#allocation4 + $0xd0] sm:$0xff]  ;;  %v4643_v61 = vld [vmem:[#allocation8 + $0x100] sm:$0xff] }
 0x26f   :  { %1085 = vmatmul.f32.vlgmr.msra.gmra.mxu3 %v4542_v46  ;;  %1113 = vmatpush.msra.mxu1 %v4568_v15 }
 0x270   :  { %1180 = vmatpush.msra.mxu2 %v4066_v18  ;;  %1200 = vmatpush.msrb.mxu3 %v4068_v11  ;;  %v4588_v11 = vld [vmem:[#allocation4 + $0xb8] sm:$0xff]  ;;  %v4637_v18 = vld [vmem:[#allocation8 + $0x130] sm:$0xff] }
 0x271   :  { %1114 = vmatpush.msra.mxu1 %v4573_v56 }
 0x272   :  { %1181 = vmatpush.msra.mxu2 %v4073_v40  ;;  %1201 = vmatpush.msrb.mxu3 %v4075_v16  ;;  %v4593_v40 = vld [vmem:[#allocation4 + $0xa0] sm:$0xff]  ;;  %v4646_v16 = vld [vmem:[#allocation8 + $0xe8] sm:$0xff] }
 0x273   :  { %1115 = vmatpush.msra.mxu1 %v4578_v43 }
 0x274   :  { %1182 = vmatpush.msra.mxu2 %v4081_v34  ;;  %1202 = vmatpush.msrb.mxu3 %v4083_v37  ;;  %v4598_v34 = vld [vmem:[#allocation4 + $0x88] sm:$0xff]  ;;  %v4623_v37 = vld [vmem:[#allocation4 + $0x10] sm:$0xff] }
 0x275   :  { %1116 = vmatpush.msra.mxu1 %v4583_v52 }
 0x276   :  { %1183 = vmatpush.msra.mxu2 %v4088_v62  ;;  %1203 = vmatpush.msrb.mxu3 %v4090_v55  ;;  %v4603_v62 = vld [vmem:[#allocation4 + $0x70] sm:$0xff]  ;;  %v4613_v55 = vld [vmem:[#allocation4 + $0x40] sm:$0xff] }
 0x277   :  { %1117 = vmatpush.msra.mxu1 %v4588_v11 }
 0x278   :  { %1184 = vmatpush.msra.mxu2 %v4098_v9  ;;  %1204 = vmatpush.msrb.mxu3 %v4100_v59  ;;  %v4608_v9 = vld [vmem:[#allocation4 + $0x58] sm:$0xff]  ;;  %v4618_v59 = vld [vmem:[#allocation4 + $0x28] sm:$0xff] }
 0x279   :  { %1118 = vmatpush.msra.mxu1 %v4593_v40 }
 0x27a   :  { %1185 = vmatpush.msra.mxu2 %v4105_v10  ;;  %1205 = vmatpush.msrb.mxu3 %v6546_v41  ;;  %v4649_v10 = vld [vmem:[#allocation8 + $0xd0] sm:$0xff] }
 0x27b   :  { %1119 = vmatpush.msra.mxu1 %v4598_v34 }
 0x27c   :  { %1186 = vmatpush.msra.mxu2 %v4112_v20  ;;  %1206 = vmatpush.msrb.mxu3 %v6548_v3  ;;  %v4652_v20 = vld [vmem:[#allocation8 + $0xb8] sm:$0xff] }
 0x27d   :  { %1120 = vmatpush.msra.mxu1 %v4603_v62 }
 0x27e   :  { %1187 = vmatpush.msra.mxu2 %v4121_v14  ;;  %1207 = vmatpush.msrb.mxu3 %v6550_v63  ;;  %v4655_v14 = vld [vmem:[#allocation8 + $0xa0] sm:$0xff] }
 0x27f   :  { %1121 = vmatpush.msra.mxu1 %v4608_v9 }
 0x280   :  { %1188 = vmatpush.msra.mxu2 %v4130_v1  ;;  %1208 = vmatpush.msrb.mxu3 %v4132_v13  ;;  %v4628_v13 = vld [vmem:[#allocation8 + $0x178] sm:$0xff]  ;;  %v4658_v1 = vld [vmem:[#allocation8 + $0x88] sm:$0xff] }
 0x281   :  { %1122 = vmatpush.msra.mxu1 %v4613_v55 }
 0x282   :  { %1189 = vmatpush.msra.mxu2 %v4137_v0  ;;  %1209 = vmatpush.msrb.mxu3 %v4139_v24  ;;  %v4661_v0 = vld [vmem:[#allocation8 + $0x70] sm:$0xff]  ;;  %v4664_v24 = vld [vmem:[#allocation8 + $0x58] sm:$0xff] }
 0x283   :  { %1123 = vmatpush.msra.mxu1 %v4618_v59 }
 0x284   :  { %1190 = vmatpush.msra.mxu2 %v4144_v32  ;;  %1210 = vmatpush.msrb.mxu3 %v4146_v17  ;;  %v4667_v32 = vld [vmem:[#allocation8 + $0x40] sm:$0xff]  ;;  %v4670_v17 = vld [vmem:[#allocation8 + $0x28] sm:$0xff] }
 0x285   :  { %1124 = vmatpush.msra.mxu1 %v4623_v37 }
 0x286   :  { %1191 = vmatpush.msra.mxu2 %v4151_v35  ;;  %1211 = vmatpush.msrb.mxu3 %v4153_v12  ;;  %v4673_v35 = vld [vmem:[#allocation8 + $0x10] sm:$0xff]  ;;  %v786_v12 = vpop.f32.mrf.mxu1 }
 0x288   :  { %1323 = vmatpush.msra.mxu3 %v4628_v13 }
 0x28a   :  { %1324 = vmatpush.msra.mxu3 %v4631_v21 }
 0x28c   :  { %1325 = vmatpush.msra.mxu3 %v4634_v28 }
 0x28e   :  { %1326 = vmatpush.msra.mxu3 %v4637_v18 }
 0x290   :  { %1327 = vmatpush.msra.mxu3 %v4640_v5 }
 0x292   :  { %1328 = vmatpush.msra.mxu3 %v4643_v61 }
 0x294   :  { %1329 = vmatpush.msra.mxu3 %v4646_v16 }
 0x296   :  { %1330 = vmatpush.msra.mxu3 %v4649_v10 }
 0x298   :  { %1331 = vmatpush.msra.mxu3 %v4652_v20 }
 0x29a   :  { %1332 = vmatpush.msra.mxu3 %v4655_v14 }
 0x29c   :  { %1333 = vmatpush.msra.mxu3 %v4658_v1 }
 0x29e   :  { %1334 = vmatpush.msra.mxu3 %v4661_v0 }
 0x2a0   :  { %1335 = vmatpush.msra.mxu3 %v4664_v24 }
 0x2a2   :  { %1336 = vmatpush.msra.mxu3 %v4667_v32 }
 0x2a4   :  { %1337 = vmatpush.msra.mxu3 %v4670_v17 }
 0x2a6   :  { %1338 = vmatpush.msra.mxu3 %v4673_v35 }
 0x2e3   :  { %v916_v41 = vpop.f32.mrf.mxu1 }
 0x2e4   :  { %v917_v3 = vadd.f32 %v916_v41, %v4298_v47  ;;  %v999_v41 = vadd.f32 %v4309_v38, %v786_v12 }
 0x2e6   :  { %v959_v63 = vadd.f32 %v917_v3, %v4532_v45 }
 0x2e8   :  { %v2749_v19 = vmul.f32 -1.442695, %v959_v63 }
 0x2e9   :  { %v936_v29 = vpop.f32.mrf.mxu2 }
 0x2ea   :  { %2814 = vpow2.f32 %v2749_v19  ;;  %v937_v30 = vadd.f32 %v936_v29, %v4300_v25 }
 0x2ec   :  { %v979_v57 = vadd.f32 %v937_v30, %v4534_v27  ;;  %v956_v27 = vpop.f32.mrf.mxu3 }
 0x2ed   :  { %v957_v29 = vadd.f32 %v956_v27, %v4311_v2  ;;  %v6654_v27 = vld [vmem:[#allocation22_spill] sm:$0xff] }
 0x2ee   :  { %v2750_v31 = vmul.f32 -1.442695, %v979_v57 }
 0x2f0   :  { %v2815_v8 = vpop.eup %2814  ;;  %2816 = vpow2.f32 %v2750_v31 }
 0x2f1   :  { %v963_v58 = vadd.f32 1.0, %v2815_v8 }
 0x2f3   :  { %2818 = vrcp.f32 %v963_v58  ;;  %v975_v6 = vand.u32 2147483648, %v963_v58  ;;  %v973_v22 = vand.u32 2147483647, %v963_v58  ;;  %vm969_vm11 = vweird.f32 %v963_v58 }
 0x2f5   :  { %v976_v4 = vor.u32 1.1754944e-38, %v975_v6  ;;  %vm974_vm13 = vcmp.eq.f32.partialorder %v973_v22, 8.507059e+37  ;;  %v4688_v22 = vld [vmem:[#allocation6 + $0x178] sm:$0xff] }
 0x2f6   :  { %v2817_v42 = vpop.eup %2816 }
 0x2f7   :  { %v983_v50 = vadd.f32 1.0, %v2817_v42 }
 0x2f9   :  { %v2819_v26 = vpop.eup %2818  ;;  %2820 = vrcp.f32 %v983_v50  ;;  %v995_v42 = vand.u32 2147483648, %v983_v50  ;;  %vm989_vm15 = vweird.f32 %v983_v50 }
 0x2fa   :  { %v965_v33 = vmul.f32 %v2819_v26, %v963_v58  ;;  %vm970_vm10 = vweird.f32 %v2819_v26  ;;  %v993_v58 = vand.u32 2147483647, %v983_v50 }
 0x2fb   :  { %vm971_vm12 = vmor %vm969_vm11, %vm970_vm10  ;;  %v996_v6 = vor.u32 1.1754944e-38, %v995_v42  ;;  %v6666_v42 = vld [vmem:[#allocation72_spill] sm:$0xff] }
 0x2fc   :  { %v966_v44 = vsub.f32 1.0, %v965_v33  ;;  %vm994_vm1 = vcmp.eq.f32.partialorder %v993_v58, 8.507059e+37  ;;  %v4728_v58 = vld [vmem:[#allocation6 + $0xb8] sm:$0xff] }
 0x2fe   :  { %v967_v45 = vmul.f32 %v2819_v26, %v966_v44 }
 0x2ff   :  { %v2821_v51 = vpop.eup %2820 }
 0x300   :  { %v985_v48 = vmul.f32 %v2821_v51, %v983_v50  ;;  %v968_v23 = vadd.f32 %v2819_v26, %v967_v45  ;;  %vm990_vm14 = vweird.f32 %v2821_v51  ;;  %v6651_v50 = vld [vmem:[#allocation19_spill] sm:$0xff] }
 0x301   :  { %vm991_vm0 = vmor %vm989_vm15, %vm990_vm14 }
 0x302   :  { %v986_v3 = vsub.f32 1.0, %v985_v48  ;;  %v972_v63 = vsel %vm971_vm12, %v2819_v26, %v968_v23  ;;  %v4698_v48 = vld [vmem:[#allocation6 + $0x148] sm:$0xff]  ;;  %v6653_v23 = vld [vmem:[#allocation21_spill] sm:$0xff] }
 0x303   :  { %v977_v19 = vsel %vm974_vm13, %v976_v4, %v972_v63  ;;  %v4703_v4 = vld [vmem:[#allocation6 + $0x130] sm:$0xff] }
 0x304   :  { %v1000_v30 = vmul.f32 %v999_v41, %v977_v19  ;;  %v987_v57 = vmul.f32 %v2821_v51, %v986_v3  ;;  %v6657_v41 = vld [vmem:[#allocation24_spill] sm:$0xff]  ;;  %v4713_v3 = vld [vmem:[#allocation6 + $0x100] sm:$0xff]  ;;  %v6659_v63 = vld [vmem:[#allocation25_spill] sm:$0xff] }
 0x305   :  { %6658 = vst [vmem:[#allocation36_spill] sm:$0xff] %v4713_v3  ;;  %v6660_v19 = vld [vmem:[#allocation26_spill] sm:$0xff] }
 0x306   :  { %v1001_v31 = vadd.f32 %v1000_v30, %v957_v29  ;;  %v988_v8 = vadd.f32 %v2821_v51, %v987_v57  ;;  %v4718_v29 = vld [vmem:[#allocation6 + $0xe8] sm:$0xff]  ;;  %v6662_v30 = vld [vmem:[#allocation27_spill] sm:$0xff] }
 0x307   :  { %6661 = vst [vmem:[#allocation39_spill] sm:$0xff] %v4718_v29  ;;  %v6663_v57 = vld [vmem:[#allocation28_spill] sm:$0xff] }
 0x308   :  { %2822 = vtanh.f32 %v1001_v31  ;;  %v992_v33 = vsel %vm991_vm0, %v2821_v51, %v988_v8  ;;  %v6652_v51 = vld [vmem:[#allocation20_spill] sm:$0xff]  ;;  %v4723_v31 = vld [vmem:[#allocation6 + $0xd0] sm:$0xff] }
 0x309   :  { %v997_v12 = vsel %vm994_vm1, %v996_v6, %v992_v33  ;;  %6664 = vst [vmem:[#allocation19_spill] sm:$0xff] %v4723_v31  ;;  %v6665_v8 = vld [vmem:[#allocation29_spill] sm:$0xff]  ;;  %v6668_v33 = vld [vmem:[#allocation30_spill] sm:$0xff]  ;;  %v4733_v6 = vld [vmem:[#allocation6 + $0xa0] sm:$0xff] }
 0x30a   :  { %6667 = vst [vmem:[#allocation20_spill] sm:$0xff] %v4728_v58 }
 0x30b   :  { %6670 = vst [vmem:[#allocation21_spill] sm:$0xff] %v4733_v6 }
 0x30e   :  { %v2823_v44 = vpop.eup %2822 }
 0x30f   :  { %v1003_v38 = vsub.f32 %v4315_v7, %v2823_v44  ;;  %v4693_v7 = vld [vmem:[#allocation6 + $0x160] sm:$0xff] }
 0x311   :  { %v1004_v26 = vmul.f32 %v1003_v38, %v997_v12  ;;  %v6671_v38 = vld [vmem:[#allocation31_spill] sm:$0xff]  ;;  %v6672_v12 = vld [vmem:[#allocation74_spill] sm:$0xff] }
 0x313   :  { %v4683_v45 = vadd.f32 %v2823_v44, %v1004_v26  ;;  %v6669_v44 = vld [vmem:[#allocation73_spill] sm:$0xff]  ;;  %v4738_v26 = vld [vmem:[#allocation6 + $0x88] sm:$0xff] }
 0x314   :  { %6673 = vst [vmem:[#allocation22_spill] sm:$0xff] %v4738_v26 }
 0x315   :  { %1022 = vmatmul.f32.vlgmr.msrb.gmra.mxu0 %v4683_v45  ;;  %1042 = vmatmul.f32.vlgmr.msrb.gmra.mxu1 %v4683_v45 }
 0x316   :  { %1062 = vmatmul.f32.vlgmr.msrb.gmra.mxu2 %v4683_v45  ;;  %1216 = vmatpush.msrb.mxu0 %v4688_v22 }
 0x317   :  { %1283 = vmatpush.msrb.mxu1 %v4321_v60  ;;  %1303 = vmatpush.msrb.mxu2 %v4324_v39  ;;  %v4708_v60 = vld [vmem:[#allocation6 + $0x118] sm:$0xff]  ;;  %v6656_v39 = vld [vmem:[#allocation23_spill] sm:$0xff] }
 0x318   :  { %1217 = vmatpush.msrb.mxu0 %v4693_v7  ;;  %6655 = vst [vmem:[#allocation38_spill] sm:$0xff] %v4708_v60 }
 0x319   :  { %1284 = vmatpush.msrb.mxu1 %v6651_v50  ;;  %1304 = vmatpush.msrb.mxu2 %v6652_v51  ;;  %v6674_v50 = vld [vmem:[#allocation32_spill] sm:$0xff]  ;;  %v6675_v51 = vld [vmem:[#allocation33_spill] sm:$0xff] }
 0x31a   :  { %1218 = vmatpush.msrb.mxu0 %v4698_v48 }
 0x31b   :  { %1285 = vmatpush.msrb.mxu1 %v6653_v23  ;;  %1305 = vmatpush.msrb.mxu2 %v6654_v27  ;;  %v4743_v23 = vld [vmem:[#allocation6 + $0x70] sm:$0xff]  ;;  %v6677_v27 = vld [vmem:[#allocation34_spill] sm:$0xff] }
 0x31c   :  { %1219 = vmatpush.msrb.mxu0 %v4703_v4  ;;  %6676 = vst [vmem:[#allocation23_spill] sm:$0xff] %v4743_v23 }
 0x31d   :  { %1105 = vmatmul.f32.vlgmr.msra.gmra.mxu0 %v4542_v46  ;;  %1125 = vmatmul.f32.vlgmr.msra.gmra.mxu1 %v4542_v46 }
 0x31e   :  { %1220 = vmatpush.msrb.mxu0 %v4708_v60  ;;  %1286 = vmatpush.msrb.mxu1 %v6656_v39  ;;  %v6678_v39 = vld [vmem:[#allocation35_spill] sm:$0xff] }
 0x31f   :  { %1306 = vmatpush.msrb.mxu2 %v6657_v41  ;;  %v4748_v41 = vld [vmem:[#allocation6 + $0x58] sm:$0xff] }
 0x320   :  { %1221 = vmatpush.msrb.mxu0 %v4713_v3  ;;  %1287 = vmatpush.msrb.mxu1 %v6659_v63  ;;  %6679 = vst [vmem:[#allocation24_spill] sm:$0xff] %v4748_v41  ;;  %v6680_v63 = vld [vmem:[#allocation37_spill] sm:$0xff] }
 0x321   :  { %1307 = vmatpush.msrb.mxu2 %v6660_v19  ;;  %v6681_v19 = vld [vmem:[#allocation41_spill] sm:$0xff] }
 0x322   :  { %1222 = vmatpush.msrb.mxu0 %v4718_v29  ;;  %1288 = vmatpush.msrb.mxu1 %v6662_v30  ;;  %v4753_v30 = vld [vmem:[#allocation6 + $0x40] sm:$0xff] }
 0x323   :  { %1308 = vmatpush.msrb.mxu2 %v6663_v57  ;;  %6682 = vst [vmem:[#allocation25_spill] sm:$0xff] %v4753_v30  ;;  %v6683_v57 = vld [vmem:[#allocation42_spill] sm:$0xff] }
 0x324   :  { %1223 = vmatpush.msrb.mxu0 %v4723_v31  ;;  %1289 = vmatpush.msrb.mxu1 %v6665_v8  ;;  %v6684_v8 = vld [vmem:[#allocation45_spill] sm:$0xff] }
 0x325   :  { %1309 = vmatpush.msrb.mxu2 %v6666_v42  ;;  %v4758_v42 = vld [vmem:[#allocation6 + $0x28] sm:$0xff] }
 0x326   :  { %1224 = vmatpush.msrb.mxu0 %v4728_v58  ;;  %1290 = vmatpush.msrb.mxu1 %v6668_v33  ;;  %6685 = vst [vmem:[#allocation26_spill] sm:$0xff] %v4758_v42  ;;  %v6686_v33 = vld [vmem:[#allocation75_spill] sm:$0xff] }
 0x327   :  { %1310 = vmatpush.msrb.mxu2 %v6669_v44  ;;  %v6687_v44 = vld [vmem:[#allocation76_spill] sm:$0xff] }
 0x328   :  { %1225 = vmatpush.msrb.mxu0 %v4733_v6  ;;  %1291 = vmatpush.msrb.mxu1 %v6671_v38  ;;  %v4763_v38 = vld [vmem:[#allocation6 + $0x10] sm:$0xff] }
 0x329   :  { %1311 = vmatpush.msrb.mxu2 %v6672_v12  ;;  %6688 = vst [vmem:[#allocation27_spill] sm:$0xff] %v4763_v38  ;;  %v6689_v12 = vld [vmem:[#allocation46_spill] sm:$0xff] }
 0x32a   :  { %1226 = vmatpush.msrb.mxu0 %v4738_v26  ;;  %1292 = vmatpush.msrb.mxu1 %v6674_v50  ;;  %v6690_v50 = vld [vmem:[#allocation47_spill] sm:$0xff] }
 0x32b   :  { %1312 = vmatpush.msrb.mxu2 %v6675_v51  ;;  %v6691_v51 = vld [vmem:[#allocation48_spill] sm:$0xff] }
 0x32c   :  { %1227 = vmatpush.msrb.mxu0 %v4743_v23  ;;  %1293 = vmatpush.msrb.mxu1 %v6677_v27  ;;  %v6692_v27 = vld [vmem:[#allocation50_spill] sm:$0xff] }
 0x32d   :  { %1313 = vmatpush.msrb.mxu2 %v6678_v39  ;;  %v6693_v39 = vld [vmem:[#allocation52_spill] sm:$0xff] }
 0x32e   :  { %1228 = vmatpush.msrb.mxu0 %v4748_v41  ;;  %1294 = vmatpush.msrb.mxu1 %v6680_v63  ;;  %v6694_v63 = vld [vmem:[#allocation53_spill] sm:$0xff] }
 0x32f   :  { %1314 = vmatpush.msrb.mxu2 %v6681_v19  ;;  %v6695_v19 = vld [vmem:[#allocation54_spill] sm:$0xff] }
 0x330   :  { %1229 = vmatpush.msrb.mxu0 %v4753_v30  ;;  %1295 = vmatpush.msrb.mxu1 %v6683_v57  ;;  %v6696_v57 = vld [vmem:[#allocation56_spill] sm:$0xff] }
 0x331   :  { %1315 = vmatpush.msrb.mxu2 %v6684_v8  ;;  %v6697_v8 = vld [vmem:[#allocation58_spill] sm:$0xff] }
 0x332   :  { %1230 = vmatpush.msrb.mxu0 %v4758_v42  ;;  %1296 = vmatpush.msrb.mxu1 %v6686_v33  ;;  %v6698_v33 = vld [vmem:[#allocation59_spill] sm:$0xff] }
 0x333   :  { %1316 = vmatpush.msrb.mxu2 %v6687_v44  ;;  %v6699_v44 = vld [vmem:[#allocation60_spill] sm:$0xff] }
 0x334   :  { %1231 = vmatpush.msrb.mxu0 %v4763_v38  ;;  %1297 = vmatpush.msrb.mxu1 %v6689_v12  ;;  %v6700_v12 = vld [vmem:[#allocation62_spill] sm:$0xff]  ;;  %v6726_v38 = vld [vmem:[#allocation11_spill] sm:$0xff] }
 0x335   :  { %1317 = vmatpush.msrb.mxu2 %v6691_v51  ;;  %v6702_v51 = vld [vmem:[#allocation65_spill] sm:$0xff] }
 0x336   :  { %1346 = vmatpush.msra.mxu0 %v6690_v50  ;;  %1298 = vmatpush.msrb.mxu1 %v6692_v27  ;;  %v6701_v50 = vld [vmem:[#allocation64_spill] sm:$0xff]  ;;  %v6703_v27 = vld [vmem:[#allocation66_spill] sm:$0xff] }
 0x337   :  { %1318 = vmatpush.msrb.mxu2 %v6694_v63  ;;  %v6705_v63 = vld [vmem:[#allocation77_spill] sm:$0xff] }
 0x338   :  { %1347 = vmatpush.msra.mxu0 %v6693_v39  ;;  %1366 = vmatpush.msra.mxu1 %v6695_v19  ;;  %v6704_v39 = vld [vmem:[#allocation68_spill] sm:$0xff]  ;;  %v6706_v19 = vld [vmem:[#allocation78_spill] sm:$0xff] }
 0x33a   :  { %1348 = vmatpush.msra.mxu0 %v6696_v57  ;;  %1367 = vmatpush.msra.mxu1 %v6697_v8  ;;  %v6707_v57 = vld [vmem:[#allocation79_spill] sm:$0xff]  ;;  %v6708_v8 = vld [vmem:[#allocation80_spill] sm:$0xff] }
 0x33c   :  { %1349 = vmatpush.msra.mxu0 %v6698_v33  ;;  %1368 = vmatpush.msra.mxu1 %v6699_v44  ;;  %v6709_v33 = vld [vmem:[#allocation81_spill] sm:$0xff]  ;;  %v6710_v44 = vld [vmem:[#allocation82_spill] sm:$0xff] }
 0x33e   :  { %1350 = vmatpush.msra.mxu0 %v6700_v12  ;;  %1369 = vmatpush.msra.mxu1 %v6701_v50  ;;  %v6711_v12 = vld [vmem:[#allocation83_spill] sm:$0xff]  ;;  %v6712_v50 = vld [vmem:[#allocation84_spill] sm:$0xff] }
 0x340   :  { %1351 = vmatpush.msra.mxu0 %v6702_v51  ;;  %1370 = vmatpush.msra.mxu1 %v6703_v27  ;;  %v6713_v51 = vld [vmem:[#allocation85_spill] sm:$0xff]  ;;  %v6714_v27 = vld [vmem:[#allocation86_spill] sm:$0xff] }
 0x342   :  { %1352 = vmatpush.msra.mxu0 %v6704_v39  ;;  %1371 = vmatpush.msra.mxu1 %v6705_v63  ;;  %v6715_v39 = vld [vmem:[#allocation87_spill] sm:$0xff]  ;;  %v6716_v63 = vld [vmem:[#allocation88_spill] sm:$0xff] }
 0x344   :  { %1353 = vmatpush.msra.mxu0 %v6706_v19  ;;  %1372 = vmatpush.msra.mxu1 %v6707_v57  ;;  %v6717_v19 = vld [vmem:[#allocation89_spill] sm:$0xff]  ;;  %v6718_v57 = vld [vmem:[#allocation90_spill] sm:$0xff] }
 0x346   :  { %1354 = vmatpush.msra.mxu0 %v6708_v8  ;;  %1373 = vmatpush.msra.mxu1 %v6709_v33  ;;  %v6719_v8 = vld [vmem:[#allocation91_spill] sm:$0xff]  ;;  %v6720_v33 = vld [vmem:[#allocation92_spill] sm:$0xff] }
 0x348   :  { %1355 = vmatpush.msra.mxu0 %v6710_v44  ;;  %1374 = vmatpush.msra.mxu1 %v6711_v12  ;;  %v6721_v44 = vld [vmem:[#allocation93_spill] sm:$0xff]  ;;  %v6722_v12 = vld [vmem:[#allocation94_spill] sm:$0xff] }
 0x34a   :  { %1356 = vmatpush.msra.mxu0 %v6712_v50  ;;  %1375 = vmatpush.msra.mxu1 %v6713_v51  ;;  %v6723_v50 = vld [vmem:[#allocation95_spill] sm:$0xff]  ;;  %v6724_v51 = vld [vmem:[#allocation96_spill] sm:$0xff] }
 0x34c   :  { %1357 = vmatpush.msra.mxu0 %v6714_v27  ;;  %1376 = vmatpush.msra.mxu1 %v6715_v39  ;;  %v1086_v27 = vpop.f32.mrf.mxu3  ;;  %v6725_v39 = vld [vmem:[#allocation70_spill] sm:$0xff] }
 0x34e   :  { %1358 = vmatpush.msra.mxu0 %v6716_v63  ;;  %1377 = vmatpush.msra.mxu1 %v6717_v19  ;;  %v169_v63 = vadd.f32 %v6726_v38, %v6725_v39 }
 0x350   :  { %1359 = vmatpush.msra.mxu0 %v6718_v57  ;;  %1378 = vmatpush.msra.mxu1 %v6719_v8  ;;  %v1129_v42 = vadd.f32 %v1086_v27, %v169_v63 }
 0x352   :  { %1360 = vmatpush.msra.mxu0 %v6720_v33  ;;  %1379 = vmatpush.msra.mxu1 %v6721_v44  ;;  %v2751_v19 = vmul.f32 -1.442695, %v1129_v42 }
 0x354   :  { %1361 = vmatpush.msra.mxu0 %v6722_v12  ;;  %1380 = vmatpush.msra.mxu1 %v6723_v50  ;;  %2824 = vpow2.f32 %v2751_v19  ;;  %v6727_v19 = vld [vmem:[#allocation40_spill] sm:$0xff] }
 0x356   :  { %1381 = vmatpush.msra.mxu1 %v6724_v51 }
 0x35a   :  { %v2825_v57 = vpop.eup %2824 }
 0x35b   :  { %v1133_v30 = vadd.f32 1.0, %v2825_v57 }
 0x35d   :  { %2826 = vrcp.f32 %v1133_v30  ;;  %v1145_v51 = vand.u32 2147483648, %v1133_v30  ;;  %vm1139_vm3 = vweird.f32 %v1133_v30  ;;  %v1143_v26 = vand.u32 2147483647, %v1133_v30 }
 0x35f   :  { %v1146_v63 = vor.u32 1.1754944e-38, %v1145_v51  ;;  %vm1144_vm5 = vcmp.eq.f32.partialorder %v1143_v26, 8.507059e+37 }
 0x363   :  { %v2827_v8 = vpop.eup %2826 }
 0x364   :  { %v1135_v33 = vmul.f32 %v2827_v8, %v1133_v30  ;;  %vm1140_vm2 = vweird.f32 %v2827_v8  ;;  %v6728_v30 = vld [vmem:[#allocation43_spill] sm:$0xff] }
 0x365   :  { %vm1141_vm4 = vmor %vm1139_vm3, %vm1140_vm2 }
 0x366   :  { %v1136_v41 = vsub.f32 1.0, %v1135_v33 }
 0x368   :  { %v1137_v44 = vmul.f32 %v2827_v8, %v1136_v41  ;;  %v4812_v41 = vld [vmem:[%s6187_s4] ss:$0 sm:$0xff] }
 0x36a   :  { %v1138_v50 = vadd.f32 %v2827_v8, %v1137_v44 }
 0x36c   :  { %v1142_v38 = vsel %vm1141_vm4, %v2827_v8, %v1138_v50 }
 0x36d   :  { %v1147_v44 = vsel %vm1144_vm5, %v1146_v63, %v1142_v38 }
 0x392   :  { %v4804_v23 = vpop.f32.mrf.mxu0  ;;  %v4806_v12 = vpop.f32.mrf.mxu1 }
 0x39a   :  { %v1106_v42 = vpop.f32.mrf.mxu0  ;;  %v1126_v27 = vpop.f32.mrf.mxu1 }
 0x39b   :  { %v1149_v57 = vadd.f32 %v1106_v42, %v6727_v19  ;;  %v1169_v33 = vadd.f32 %v4812_v41, %v1126_v27 }
 0x39d   :  { %v2752_v39 = vmul.f32 -1.442695, %v1149_v57  ;;  %v1170_v6 = vmul.f32 %v1169_v33, %v1147_v44  ;;  %v4855_v33 = vld [vmem:[#allocation6 + $0x110] sm:$0xff]  ;;  %v4862_v44 = vld [vmem:[#allocation6 + $0xf8] sm:$0xff] }
 0x39f   :  { %2828 = vpow2.f32 %v2752_v39  ;;  %v1171_v58 = vadd.f32 %v1170_v6, %v6728_v30  ;;  %v4869_v30 = vld [vmem:[#allocation6 + $0xe0] sm:$0xff] }
 0x3a5   :  { %v2829_v8 = vpop.eup %2828 }
 0x3a6   :  { %v1153_v50 = vadd.f32 1.0, %v2829_v8  ;;  %v4876_v8 = vld [vmem:[#allocation6 + $0xc8] sm:$0xff] }
 0x3a8   :  { %2830 = vrcp.f32 %v1153_v50  ;;  %v1165_v19 = vand.u32 2147483648, %v1153_v50  ;;  %v1163_v29 = vand.u32 2147483647, %v1153_v50  ;;  %vm1159_vm7 = vweird.f32 %v1153_v50 }
 0x3a9   :  { %2832 = vtanh.f32 %v1171_v58  ;;  %v4847_v58 = vld [vmem:[#allocation6 + $0x128] sm:$0xff] }
 0x3aa   :  { %v1166_v38 = vor.u32 1.1754944e-38, %v1165_v19  ;;  %vm1164_vm9 = vcmp.eq.f32.partialorder %v1163_v29, 8.507059e+37  ;;  %v4826_v29 = vld [vmem:[#allocation6 + $0x170] sm:$0xff] }
 0x3ab   :  { %v4911_v19 = vld [vmem:[#allocation6 + $0x50] sm:$0xff] }
 0x3ae   :  { %v2831_v51 = vpop.eup %2830 }
 0x3af   :  { %v1155_v42 = vmul.f32 %v2831_v51, %v1153_v50  ;;  %vm1160_vm6 = vweird.f32 %v2831_v51  ;;  %v2833_v3 = vpop.eup %2832  ;;  %v4883_v50 = vld [vmem:[#allocation6 + $0xb0] sm:$0xff] }
 0x3b0   :  { %vm1161_vm8 = vmor %vm1159_vm7, %vm1160_vm6  ;;  %v1173_v6 = vsub.f32 %v4542_v46, %v2833_v3  ;;  %v4830_v46 = vld [vmem:[#allocation6 + $0x150] sm:$0xff] }
 0x3b1   :  { %v1156_v26 = vsub.f32 1.0, %v1155_v42  ;;  %v4897_v42 = vld [vmem:[#allocation6 + $0x80] sm:$0xff] }
 0x3b3   :  { %v1157_v31 = vmul.f32 %v2831_v51, %v1156_v26  ;;  %v4904_v26 = vld [vmem:[#allocation6 + $0x68] sm:$0xff] }
 0x3b5   :  { %v1158_v60 = vadd.f32 %v2831_v51, %v1157_v31  ;;  %v4823_v31 = vld [vmem:[#allocation6 + $0x168] sm:$0xff] }
 0x3b7   :  { %v1162_v39 = vsel %vm1161_vm8, %v2831_v51, %v1158_v60  ;;  %v4833_v60 = vld [vmem:[#allocation6 + $0x158] sm:$0xff] }
 0x3b8   :  { %v1167_v27 = vsel %vm1164_vm9, %v1166_v38, %v1162_v39  ;;  %v4890_v51 = vld [vmem:[#allocation6 + $0x98] sm:$0xff]  ;;  %v4925_v39 = vld [vmem:[#allocation6 + $0x20] sm:$0xff] }
 0x3b9   :  { %v1174_v63 = vmul.f32 %v1173_v6, %v1167_v27  ;;  %v4918_v38 = vld [vmem:[#allocation6 + $0x38] sm:$0xff]  ;;  %v4932_v6 = vld [vmem:[#allocation6 + $0x8] sm:$0xff] }
 0x3bb   :  { %v4817_v57 = vadd.f32 %v2833_v3, %v1174_v63  ;;  %v4840_v3 = vld [vmem:[#allocation6 + $0x140] sm:$0xff] }
 0x3bd   :  { %1192 = vmatmul.f32.vlgmr.msra.gmra.mxu2 %v4817_v57  ;;  %1212 = vmatmul.f32.vlgmr.msrb.gmra.mxu3 %v4817_v57 }
 0x3be   :  { %1232 = vmatmul.f32.vlgmr.msrb.gmra.mxu0 %v4817_v57  ;;  %1386 = vmatpush.msra.mxu2 %v4547_v53  ;;  %v4837_v53 = vld [vmem:[#allocation6 + $0x138] sm:$0xff] }
 0x3bf   :  { %1453 = vmatpush.msrb.mxu3 %v4823_v31  ;;  %1473 = vmatpush.msrb.mxu0 %v4826_v29 }
 0x3c0   :  { %1387 = vmatpush.msra.mxu2 %v4552_v54  ;;  %v4844_v54 = vld [vmem:[#allocation6 + $0x120] sm:$0xff] }
 0x3c1   :  { %1454 = vmatpush.msrb.mxu3 %v4830_v46  ;;  %1474 = vmatpush.msrb.mxu0 %v4833_v60 }
 0x3c2   :  { %1388 = vmatpush.msra.mxu2 %v4557_v36  ;;  %v4852_v36 = vld [vmem:[#allocation6 + $0x108] sm:$0xff] }
 0x3c3   :  { %1455 = vmatpush.msrb.mxu3 %v4837_v53  ;;  %1475 = vmatpush.msrb.mxu0 %v4840_v3 }
 0x3c4   :  { %1389 = vmatpush.msra.mxu2 %v4562_v49  ;;  %v4859_v49 = vld [vmem:[#allocation6 + $0xf0] sm:$0xff] }
 0x3c5   :  { %1456 = vmatpush.msrb.mxu3 %v4844_v54  ;;  %1476 = vmatpush.msrb.mxu0 %v4847_v58 }
 0x3c6   :  { %1362 = vmatmul.f32.vlgmr.msra.gmra.mxu0 %v4817_v57  ;;  %1390 = vmatpush.msra.mxu2 %v4568_v15  ;;  %v4866_v15 = vld [vmem:[#allocation6 + $0xd8] sm:$0xff] }
 0x3c7   :  { %1457 = vmatpush.msrb.mxu3 %v4852_v36  ;;  %1477 = vmatpush.msrb.mxu0 %v4855_v33 }
 0x3c8   :  { %1391 = vmatpush.msra.mxu2 %v4573_v56  ;;  %v4873_v56 = vld [vmem:[#allocation6 + $0xc0] sm:$0xff] }
 0x3c9   :  { %1458 = vmatpush.msrb.mxu3 %v4859_v49  ;;  %1478 = vmatpush.msrb.mxu0 %v4862_v44 }
 0x3ca   :  { %1392 = vmatpush.msra.mxu2 %v4578_v43  ;;  %v4880_v43 = vld [vmem:[#allocation6 + $0xa8] sm:$0xff] }
 0x3cb   :  { %1459 = vmatpush.msrb.mxu3 %v4866_v15  ;;  %1479 = vmatpush.msrb.mxu0 %v4869_v30 }
 0x3cc   :  { %1393 = vmatpush.msra.mxu2 %v4583_v52  ;;  %v4887_v52 = vld [vmem:[#allocation6 + $0x90] sm:$0xff] }
 0x3cd   :  { %1460 = vmatpush.msrb.mxu3 %v4873_v56  ;;  %1480 = vmatpush.msrb.mxu0 %v4876_v8 }
 0x3ce   :  { %1394 = vmatpush.msra.mxu2 %v4588_v11  ;;  %v4894_v11 = vld [vmem:[#allocation6 + $0x78] sm:$0xff] }
 0x3cf   :  { %1461 = vmatpush.msrb.mxu3 %v4880_v43  ;;  %1481 = vmatpush.msrb.mxu0 %v4883_v50 }
 0x3d0   :  { %1395 = vmatpush.msra.mxu2 %v4593_v40  ;;  %v4901_v40 = vld [vmem:[#allocation6 + $0x60] sm:$0xff] }
 0x3d1   :  { %1462 = vmatpush.msrb.mxu3 %v4887_v52  ;;  %1482 = vmatpush.msrb.mxu0 %v4890_v51 }
 0x3d2   :  { %1396 = vmatpush.msra.mxu2 %v4598_v34  ;;  %v4908_v34 = vld [vmem:[#allocation6 + $0x48] sm:$0xff] }
 0x3d3   :  { %1463 = vmatpush.msrb.mxu3 %v4894_v11  ;;  %1483 = vmatpush.msrb.mxu0 %v4897_v42 }
 0x3d4   :  { %1397 = vmatpush.msra.mxu2 %v4603_v62  ;;  %v4915_v62 = vld [vmem:[#allocation6 + $0x30] sm:$0xff] }
 0x3d5   :  { %1464 = vmatpush.msrb.mxu3 %v4901_v40  ;;  %1484 = vmatpush.msrb.mxu0 %v4904_v26 }
 0x3d6   :  { %1398 = vmatpush.msra.mxu2 %v4608_v9  ;;  %v4922_v9 = vld [vmem:[#allocation6 + $0x18] sm:$0xff] }
 0x3d7   :  { %1465 = vmatpush.msrb.mxu3 %v4908_v34  ;;  %1485 = vmatpush.msrb.mxu0 %v4911_v19 }
 0x3d8   :  { %1399 = vmatpush.msra.mxu2 %v4613_v55  ;;  %v4929_v55 = vld [vmem:[#allocation6] sm:$0xff] }
 0x3d9   :  { %1466 = vmatpush.msrb.mxu3 %v4915_v62  ;;  %1486 = vmatpush.msrb.mxu0 %v4918_v38 }
 0x3da   :  { %1400 = vmatpush.msra.mxu2 %v4618_v59  ;;  %v1063_v59 = vpop.f32.mrf.mxu2 }
 0x3db   :  { %1467 = vmatpush.msrb.mxu3 %v4922_v9  ;;  %1487 = vmatpush.msrb.mxu0 %v4925_v39 }
 0x3dc   :  { %1401 = vmatpush.msra.mxu2 %v4623_v37 }
 0x3dd   :  { %1468 = vmatpush.msrb.mxu3 %v4929_v55  ;;  %1488 = vmatpush.msrb.mxu0 %v4932_v6 }
 0x3df   :  { %1600 = vmatpush.msra.mxu0 %v4628_v13 }
 0x3e1   :  { %1601 = vmatpush.msra.mxu0 %v4631_v21 }
 0x3e3   :  { %1602 = vmatpush.msra.mxu0 %v4634_v28 }
 0x3e5   :  { %1603 = vmatpush.msra.mxu0 %v4637_v18 }
 0x3e7   :  { %1604 = vmatpush.msra.mxu0 %v4640_v5 }
 0x3e9   :  { %1605 = vmatpush.msra.mxu0 %v4643_v61 }
 0x3eb   :  { %1606 = vmatpush.msra.mxu0 %v4646_v16 }
 0x3ed   :  { %1607 = vmatpush.msra.mxu0 %v4649_v10 }
 0x3ef   :  { %1608 = vmatpush.msra.mxu0 %v4652_v20 }
 0x3f1   :  { %1609 = vmatpush.msra.mxu0 %v4655_v14 }
 0x3f3   :  { %1610 = vmatpush.msra.mxu0 %v4658_v1 }
 0x3f5   :  { %1611 = vmatpush.msra.mxu0 %v4661_v0 }
 0x3f7   :  { %1612 = vmatpush.msra.mxu0 %v4664_v24 }
 0x3f9   :  { %1613 = vmatpush.msra.mxu0 %v4667_v32 }
 0x3fb   :  { %1614 = vmatpush.msra.mxu0 %v4670_v17 }
 0x3fd   :  { %1615 = vmatpush.msra.mxu0 %v4673_v35 }
 0x440   :  { %v1193_v37 = vpop.f32.mrf.mxu2  ;;  %v1213_v13 = vpop.f32.mrf.mxu3 }
 0x441   :  { %v1194_v21 = vadd.f32 %v1193_v37, %v4298_v47  ;;  %v1214_v28 = vadd.f32 %v1213_v13, %v4300_v25  ;;  %v1233_v37 = vpop.f32.mrf.mxu0 }
 0x443   :  { %v1236_v18 = vadd.f32 %v1194_v21, %v4804_v23  ;;  %v1256_v5 = vadd.f32 %v1214_v28, %v4806_v12  ;;  %v4958_v28 = vld [vmem:[%s6191_s8] ss:$0 sm:$0xff] }
 0x445   :  { %v2753_v61 = vmul.f32 -1.442695, %v1236_v18  ;;  %v2754_v16 = vmul.f32 -1.442695, %v1256_v5  ;;  %v1276_v18 = vadd.f32 %v4958_v28, %v1063_v59 }
 0x447   :  { %2834 = vpow2.f32 %v2753_v61 }
 0x448   :  { %2836 = vpow2.f32 %v2754_v16  ;;  %v1234_v16 = vadd.f32 %v1233_v37, %v4311_v2  ;;  %v4986_v37 = vld [vmem:[#allocation8 + $0x140] sm:$0xff] }
 0x449   :  { %6730 = vst [vmem:[#allocation29_spill] sm:$0xff] %v4986_v37 }
 0x44d   :  { %v2835_v10 = vpop.eup %2834 }
 0x44e   :  { %v2837_v20 = vpop.eup %2836  ;;  %v1240_v14 = vadd.f32 1.0, %v2835_v10 }
 0x44f   :  { %v1260_v1 = vadd.f32 1.0, %v2837_v20 }
 0x450   :  { %2838 = vrcp.f32 %v1240_v14  ;;  %v1252_v35 = vand.u32 2147483648, %v1240_v14  ;;  %v1250_v23 = vand.u32 2147483647, %v1240_v14  ;;  %vm1246_vm11 = vweird.f32 %v1240_v14 }
 0x451   :  { %2840 = vrcp.f32 %v1260_v1  ;;  %vm1266_vm15 = vweird.f32 %v1260_v1 }
 0x452   :  { %v1253_v13 = vor.u32 1.1754944e-38, %v1252_v35  ;;  %vm1251_vm13 = vcmp.eq.f32.partialorder %v1250_v23, 8.507059e+37  ;;  %v1270_v35 = vand.u32 2147483647, %v1260_v1 }
 0x454   :  { %vm1271_vm1 = vcmp.eq.f32.partialorder %v1270_v35, 8.507059e+37  ;;  %v5024_v35 = vld [vmem:[#allocation8 + $0xc8] sm:$0xff] }
 0x455   :  { %6745 = vst [vmem:[#allocation37_spill] sm:$0xff] %v5024_v35 }
 0x456   :  { %v2839_v0 = vpop.eup %2838 }
 0x457   :  { %v2841_v24 = vpop.eup %2840  ;;  %v1242_v32 = vmul.f32 %v2839_v0, %v1240_v14  ;;  %vm1247_vm10 = vweird.f32 %v2839_v0 }
 0x458   :  { %v1262_v27 = vmul.f32 %v2841_v24, %v1260_v1  ;;  %vm1248_vm12 = vmor %vm1246_vm11, %vm1247_vm10  ;;  %vm1267_vm14 = vweird.f32 %v2841_v24 }
 0x459   :  { %v1243_v17 = vsub.f32 1.0, %v1242_v32  ;;  %vm1268_vm0 = vmor %vm1266_vm15, %vm1267_vm14 }
 0x45a   :  { %v1263_v21 = vsub.f32 1.0, %v1262_v27 }
 0x45b   :  { %v1244_v63 = vmul.f32 %v2839_v0, %v1243_v17  ;;  %v1272_v17 = vand.u32 2147483648, %v1260_v1  ;;  %v4969_v1 = vld [vmem:[#allocation8 + $0x168] sm:$0xff] }
 0x45c   :  { %v1264_v20 = vmul.f32 %v2841_v24, %v1263_v21  ;;  %v6734_v21 = vld [vmem:[#allocation36_spill] sm:$0xff] }
 0x45d   :  { %v1245_v12 = vadd.f32 %v2839_v0, %v1244_v63  ;;  %v1273_v47 = vor.u32 1.1754944e-38, %v1272_v17  ;;  %v5021_v17 = vld [vmem:[#allocation8 + $0xc0] sm:$0xff] }
 0x45e   :  { %v1265_v14 = vadd.f32 %v2841_v24, %v1264_v20  ;;  %v5014_v20 = vld [vmem:[#allocation8 + $0xd8] sm:$0xff]  ;;  %6744 = vst [vmem:[#allocation35_spill] sm:$0xff] %v5021_v17 }
 0x45f   :  { %v1249_v5 = vsel %vm1248_vm12, %v2839_v0, %v1245_v12  ;;  %6741 = vst [vmem:[#allocation33_spill] sm:$0xff] %v5014_v20 }
 0x460   :  { %v1254_v61 = vsel %vm1251_vm13, %v1253_v13, %v1249_v5  ;;  %v1269_v27 = vsel %vm1268_vm0, %v2841_v24, %v1265_v14  ;;  %v4972_v24 = vld [vmem:[#allocation8 + $0x170] sm:$0xff]  ;;  %v4993_v13 = vld [vmem:[#allocation8 + $0x120] sm:$0xff]  ;;  %v6743_v14 = vld [vmem:[#allocation20_spill] sm:$0xff] }
 0x461   :  { %v1277_v10 = vmul.f32 %v1276_v18, %v1254_v61  ;;  %v1274_v0 = vsel %vm1271_vm1, %v1273_v47, %v1269_v27  ;;  %v4976_v47 = vld [vmem:[#allocation8 + $0x150] sm:$0xff]  ;;  %6732 = vst [vmem:[#allocation72_spill] sm:$0xff] %v4993_v13  ;;  %v5000_v18 = vld [vmem:[#allocation8 + $0x108] sm:$0xff]  ;;  %v6737_v5 = vld [vmem:[#allocation39_spill] sm:$0xff] }
 0x462   :  { %6735 = vst [vmem:[#allocation73_spill] sm:$0xff] %v5000_v18  ;;  %v5007_v61 = vld [vmem:[#allocation8 + $0xf0] sm:$0xff] }
 0x463   :  { %v1278_v32 = vadd.f32 %v1277_v10, %v1234_v16  ;;  %6738 = vst [vmem:[#allocation74_spill] sm:$0xff] %v5007_v61  ;;  %v5010_v16 = vld [vmem:[#allocation8 + $0xf8] sm:$0xff]  ;;  %v6740_v10 = vld [vmem:[#allocation19_spill] sm:$0xff]  ;;  %v6746_v27 = vld [vmem:[#allocation21_spill] sm:$0xff] }
 0x464   :  { %6739 = vst [vmem:[#allocation32_spill] sm:$0xff] %v5010_v16 }
 0x465   :  { %2842 = vtanh.f32 %v1278_v32  ;;  %v5017_v32 = vld [vmem:[#allocation8 + $0xe0] sm:$0xff] }
 0x466   :  { %6742 = vst [vmem:[#allocation34_spill] sm:$0xff] %v5017_v32 }
 0x46b   :  { %v2843_v63 = vpop.eup %2842 }
 0x46c   :  { %v1280_v59 = vsub.f32 %v4683_v45, %v2843_v63  ;;  %v4979_v45 = vld [vmem:[#allocation8 + $0x158] sm:$0xff] }
 0x46e   :  { %v1281_v23 = vmul.f32 %v1280_v59, %v1274_v0  ;;  %v5031_v59 = vld [vmem:[#allocation8 + $0xb0] sm:$0xff]  ;;  %v6749_v0 = vld [vmem:[#allocation22_spill] sm:$0xff] }
 0x46f   :  { %6748 = vst [vmem:[#allocation42_spill] sm:$0xff] %v5031_v59 }
 0x470   :  { %v4963_v12 = vadd.f32 %v2843_v63, %v1281_v23  ;;  %v5028_v63 = vld [vmem:[#allocation8 + $0xa8] sm:$0xff]  ;;  %v5035_v23 = vld [vmem:[#allocation8 + $0x90] sm:$0xff] }
 0x471   :  { %6747 = vst [vmem:[#allocation41_spill] sm:$0xff] %v5028_v63 }
 0x472   :  { %1299 = vmatmul.f32.vlgmr.msrb.gmra.mxu1 %v4963_v12  ;;  %1319 = vmatmul.f32.vlgmr.msrb.gmra.mxu2 %v4963_v12  ;;  %6750 = vst [vmem:[#allocation45_spill] sm:$0xff] %v5035_v23 }
 0x473   :  { %1339 = vmatmul.f32.vlgmr.msra.gmra.mxu3 %v4963_v12  ;;  %1493 = vmatpush.msrb.mxu1 %v4688_v22  ;;  %v4983_v22 = vld [vmem:[#allocation8 + $0x138] sm:$0xff] }
 0x474   :  { %1560 = vmatpush.msrb.mxu2 %v4969_v1  ;;  %1580 = vmatpush.msra.mxu3 %v4972_v24  ;;  %6729 = vst [vmem:[#allocation28_spill] sm:$0xff] %v4983_v22 }
 0x475   :  { %1494 = vmatpush.msrb.mxu1 %v4693_v7  ;;  %v6731_v7 = vld [vmem:[#allocation38_spill] sm:$0xff] }
 0x476   :  { %1561 = vmatpush.msrb.mxu2 %v4976_v47  ;;  %1581 = vmatpush.msra.mxu3 %v4979_v45 }
 0x477   :  { %1495 = vmatpush.msrb.mxu1 %v4698_v48  ;;  %v4996_v48 = vld [vmem:[#allocation8 + $0x128] sm:$0xff] }
 0x478   :  { %1562 = vmatpush.msrb.mxu2 %v4983_v22  ;;  %1582 = vmatpush.msra.mxu3 %v4986_v37  ;;  %6733 = vst [vmem:[#allocation30_spill] sm:$0xff] %v4996_v48 }
 0x479   :  { %1496 = vmatpush.msrb.mxu1 %v4703_v4  ;;  %v5003_v4 = vld [vmem:[#allocation8 + $0x110] sm:$0xff] }
 0x47a   :  { %1382 = vmatmul.f32.vlgmr.msra.gmra.mxu1 %v4817_v57  ;;  %1402 = vmatmul.f32.vlgmr.msra.gmra.mxu2 %v4817_v57  ;;  %6736 = vst [vmem:[#allocation31_spill] sm:$0xff] %v5003_v4 }
 0x47b   :  { %1497 = vmatpush.msrb.mxu1 %v6731_v7  ;;  %1563 = vmatpush.msrb.mxu2 %v4993_v13  ;;  %v5038_v7 = vld [vmem:[#allocation8 + $0x98] sm:$0xff]  ;;  %v6804_v13 = vld [vmem:[#allocation49_spill] sm:$0xff] }
 0x47c   :  { %1583 = vmatpush.msra.mxu3 %v4996_v48  ;;  %6751 = vst [vmem:[#allocation75_spill] sm:$0xff] %v5038_v7 }
 0x47d   :  { %1498 = vmatpush.msrb.mxu1 %v6734_v21  ;;  %1564 = vmatpush.msrb.mxu2 %v5000_v18  ;;  %v6752_v21 = vld [vmem:[#allocation23_spill] sm:$0xff] }
 0x47e   :  { %1584 = vmatpush.msra.mxu3 %v5003_v4 }
 0x47f   :  { %1499 = vmatpush.msrb.mxu1 %v6737_v5  ;;  %1565 = vmatpush.msrb.mxu2 %v5007_v61  ;;  %v5042_v5 = vld [vmem:[#allocation8 + $0x78] sm:$0xff] }
 0x480   :  { %1585 = vmatpush.msra.mxu3 %v5010_v16  ;;  %6753 = vst [vmem:[#allocation76_spill] sm:$0xff] %v5042_v5 }
 0x481   :  { %1500 = vmatpush.msrb.mxu1 %v6740_v10  ;;  %1566 = vmatpush.msrb.mxu2 %v5014_v20  ;;  %v5045_v10 = vld [vmem:[#allocation8 + $0x80] sm:$0xff] }
 0x482   :  { %1586 = vmatpush.msra.mxu3 %v5017_v32  ;;  %6754 = vst [vmem:[#allocation46_spill] sm:$0xff] %v5045_v10 }
 0x483   :  { %1501 = vmatpush.msrb.mxu1 %v6743_v14  ;;  %1567 = vmatpush.msrb.mxu2 %v5021_v17  ;;  %v6755_v14 = vld [vmem:[#allocation24_spill] sm:$0xff] }
 0x484   :  { %1587 = vmatpush.msra.mxu3 %v5024_v35 }
 0x485   :  { %1502 = vmatpush.msrb.mxu1 %v6746_v27  ;;  %1568 = vmatpush.msrb.mxu2 %v5028_v63  ;;  %v5049_v27 = vld [vmem:[#allocation8 + $0x60] sm:$0xff] }
 0x486   :  { %1588 = vmatpush.msra.mxu3 %v5031_v59  ;;  %6756 = vst [vmem:[#allocation47_spill] sm:$0xff] %v5049_v27 }
 0x487   :  { %1503 = vmatpush.msrb.mxu1 %v6749_v0  ;;  %1569 = vmatpush.msrb.mxu2 %v5035_v23  ;;  %v5052_v0 = vld [vmem:[#allocation8 + $0x68] sm:$0xff] }
 0x488   :  { %1589 = vmatpush.msra.mxu3 %v5038_v7  ;;  %6757 = vst [vmem:[#allocation48_spill] sm:$0xff] %v5052_v0  ;;  %v6758_v7 = vld [vmem:[#allocation25_spill] sm:$0xff]  ;;  %v6802_v23 = vld [vmem:[#allocation12_spill] sm:$0xff] }
 0x489   :  { %1504 = vmatpush.msrb.mxu1 %v6752_v21  ;;  %1570 = vmatpush.msrb.mxu2 %v5042_v5  ;;  %v5056_v21 = vld [vmem:[#allocation8 + $0x48] sm:$0xff]  ;;  %v5059_v5 = vld [vmem:[#allocation8 + $0x50] sm:$0xff] }
 0x48a   :  { %1590 = vmatpush.msra.mxu3 %v5045_v10  ;;  %6759 = vst [vmem:[#allocation50_spill] sm:$0xff] %v5056_v21  ;;  %v6761_v10 = vld [vmem:[#allocation26_spill] sm:$0xff] }
 0x48b   :  { %1505 = vmatpush.msrb.mxu1 %v6755_v14  ;;  %1571 = vmatpush.msrb.mxu2 %v5049_v27  ;;  %6760 = vst [vmem:[#allocation52_spill] sm:$0xff] %v5059_v5  ;;  %v5063_v14 = vld [vmem:[#allocation8 + $0x30] sm:$0xff]  ;;  %v5066_v27 = vld [vmem:[#allocation8 + $0x38] sm:$0xff] }
 0x48c   :  { %1591 = vmatpush.msra.mxu3 %v5052_v0  ;;  %6762 = vst [vmem:[#allocation53_spill] sm:$0xff] %v5063_v14  ;;  %v6764_v0 = vld [vmem:[#allocation27_spill] sm:$0xff] }
 0x48d   :  { %1506 = vmatpush.msrb.mxu1 %v6758_v7  ;;  %1572 = vmatpush.msrb.mxu2 %v5056_v21  ;;  %6763 = vst [vmem:[#allocation54_spill] sm:$0xff] %v5066_v27  ;;  %v5070_v7 = vld [vmem:[#allocation8 + $0x18] sm:$0xff]  ;;  %v5073_v21 = vld [vmem:[#allocation4 + $0x168] sm:$0xff] }
 0x48e   :  { %1592 = vmatpush.msra.mxu3 %v5059_v5  ;;  %6765 = vst [vmem:[#allocation56_spill] sm:$0xff] %v5070_v7  ;;  %v5076_v5 = vld [vmem:[#allocation8 + $0x20] sm:$0xff] }
 0x48f   :  { %1507 = vmatpush.msrb.mxu1 %v6761_v10  ;;  %1573 = vmatpush.msrb.mxu2 %v5063_v14  ;;  %6766 = vst [vmem:[#allocation58_spill] sm:$0xff] %v5073_v21  ;;  %v5079_v10 = vld [vmem:[#allocation8] sm:$0xff]  ;;  %v5082_v14 = vld [vmem:[#allocation4 + $0x150] sm:$0xff] }
 0x490   :  { %1593 = vmatpush.msra.mxu3 %v5066_v27  ;;  %6767 = vst [vmem:[#allocation59_spill] sm:$0xff] %v5076_v5  ;;  %v6801_v27 = vld [vmem:[#allocation70_spill] sm:$0xff] }
 0x491   :  { %1508 = vmatpush.msrb.mxu1 %v6764_v0  ;;  %1574 = vmatpush.msrb.mxu2 %v5070_v7  ;;  %6768 = vst [vmem:[#allocation60_spill] sm:$0xff] %v5079_v10  ;;  %v5085_v0 = vld [vmem:[#allocation8 + $0x8] sm:$0xff]  ;;  %v5088_v7 = vld [vmem:[#allocation4 + $0x170] sm:$0xff] }
 0x492   :  { %1594 = vmatpush.msra.mxu3 %v5076_v5  ;;  %6769 = vst [vmem:[#allocation62_spill] sm:$0xff] %v5082_v14  ;;  %v5094_v5 = vld [vmem:[#allocation4 + $0x158] sm:$0xff] }
 0x493   :  { %1623 = vmatpush.msra.mxu1 %v5073_v21  ;;  %1575 = vmatpush.msrb.mxu2 %v5079_v10  ;;  %6770 = vst [vmem:[#allocation64_spill] sm:$0xff] %v5085_v0  ;;  %v5091_v21 = vld [vmem:[#allocation4 + $0x138] sm:$0xff]  ;;  %v5097_v10 = vld [vmem:[#allocation4 + $0x120] sm:$0xff] }
 0x494   :  { %1595 = vmatpush.msra.mxu3 %v5085_v0  ;;  %6771 = vst [vmem:[#allocation65_spill] sm:$0xff] %v5088_v7  ;;  %v5103_v0 = vld [vmem:[#allocation4 + $0x108] sm:$0xff] }
 0x495   :  { %1624 = vmatpush.msra.mxu1 %v5082_v14  ;;  %1643 = vmatpush.msra.mxu2 %v5088_v7  ;;  %6772 = vst [vmem:[#allocation66_spill] sm:$0xff] %v5091_v21  ;;  %v5100_v14 = vld [vmem:[#allocation4 + $0x140] sm:$0xff]  ;;  %v5106_v7 = vld [vmem:[#allocation4 + $0x128] sm:$0xff] }
 0x496   :  { %6773 = vst [vmem:[#allocation68_spill] sm:$0xff] %v5094_v5 }
 0x497   :  { %1625 = vmatpush.msra.mxu1 %v5091_v21  ;;  %1644 = vmatpush.msra.mxu2 %v5094_v5  ;;  %6774 = vst [vmem:[#allocation77_spill] sm:$0xff] %v5097_v10  ;;  %v5109_v21 = vld [vmem:[#allocation4 + $0xf0] sm:$0xff] }
 0x498   :  { %6775 = vst [vmem:[#allocation78_spill] sm:$0xff] %v5100_v14  ;;  %v5112_v5 = vld [vmem:[#allocation4 + $0x110] sm:$0xff] }
 0x499   :  { %1626 = vmatpush.msra.mxu1 %v5097_v10  ;;  %1645 = vmatpush.msra.mxu2 %v5100_v14  ;;  %6776 = vst [vmem:[#allocation79_spill] sm:$0xff] %v5103_v0  ;;  %v5115_v10 = vld [vmem:[#allocation4 + $0xd8] sm:$0xff] }
 0x49a   :  { %6777 = vst [vmem:[#allocation80_spill] sm:$0xff] %v5106_v7  ;;  %v5118_v14 = vld [vmem:[#allocation4 + $0xf8] sm:$0xff] }
 0x49b   :  { %1627 = vmatpush.msra.mxu1 %v5103_v0  ;;  %1646 = vmatpush.msra.mxu2 %v5106_v7  ;;  %6778 = vst [vmem:[#allocation81_spill] sm:$0xff] %v5109_v21  ;;  %v5121_v0 = vld [vmem:[#allocation4 + $0xc0] sm:$0xff] }
 0x49c   :  { %6779 = vst [vmem:[#allocation82_spill] sm:$0xff] %v5112_v5  ;;  %v5124_v7 = vld [vmem:[#allocation4 + $0xe0] sm:$0xff] }
 0x49d   :  { %1628 = vmatpush.msra.mxu1 %v5109_v21  ;;  %1647 = vmatpush.msra.mxu2 %v5112_v5  ;;  %6780 = vst [vmem:[#allocation83_spill] sm:$0xff] %v5115_v10  ;;  %v5127_v21 = vld [vmem:[#allocation4 + $0xa8] sm:$0xff] }
 0x49e   :  { %6781 = vst [vmem:[#allocation84_spill] sm:$0xff] %v5118_v14  ;;  %v5130_v5 = vld [vmem:[#allocation4 + $0xc8] sm:$0xff] }
 0x49f   :  { %1629 = vmatpush.msra.mxu1 %v5115_v10  ;;  %1648 = vmatpush.msra.mxu2 %v5118_v14  ;;  %6782 = vst [vmem:[#allocation85_spill] sm:$0xff] %v5121_v0  ;;  %v5133_v10 = vld [vmem:[#allocation4 + $0x90] sm:$0xff] }
 0x4a0   :  { %6783 = vst [vmem:[#allocation86_spill] sm:$0xff] %v5124_v7  ;;  %v5136_v14 = vld [vmem:[#allocation4 + $0xb0] sm:$0xff] }
 0x4a1   :  { %1630 = vmatpush.msra.mxu1 %v5121_v0  ;;  %1649 = vmatpush.msra.mxu2 %v5124_v7  ;;  %6784 = vst [vmem:[#allocation87_spill] sm:$0xff] %v5127_v21  ;;  %v5139_v0 = vld [vmem:[#allocation4 + $0x78] sm:$0xff] }
 0x4a2   :  { %6785 = vst [vmem:[#allocation88_spill] sm:$0xff] %v5130_v5  ;;  %v5142_v7 = vld [vmem:[#allocation4 + $0x98] sm:$0xff] }
 0x4a3   :  { %1631 = vmatpush.msra.mxu1 %v5127_v21  ;;  %1650 = vmatpush.msra.mxu2 %v5130_v5  ;;  %6786 = vst [vmem:[#allocation89_spill] sm:$0xff] %v5133_v10  ;;  %v5145_v21 = vld [vmem:[#allocation4 + $0x60] sm:$0xff] }
 0x4a4   :  { %6787 = vst [vmem:[#allocation90_spill] sm:$0xff] %v5136_v14  ;;  %v5148_v5 = vld [vmem:[#allocation4 + $0x80] sm:$0xff] }
 0x4a5   :  { %1632 = vmatpush.msra.mxu1 %v5133_v10  ;;  %1651 = vmatpush.msra.mxu2 %v5136_v14  ;;  %6788 = vst [vmem:[#allocation91_spill] sm:$0xff] %v5139_v0  ;;  %v5151_v10 = vld [vmem:[#allocation4 + $0x48] sm:$0xff] }
 0x4a6   :  { %6789 = vst [vmem:[#allocation92_spill] sm:$0xff] %v5142_v7  ;;  %v5154_v14 = vld [vmem:[#allocation4 + $0x68] sm:$0xff] }
 0x4a7   :  { %1633 = vmatpush.msra.mxu1 %v5139_v0  ;;  %1652 = vmatpush.msra.mxu2 %v5142_v7  ;;  %6790 = vst [vmem:[#allocation93_spill] sm:$0xff] %v5145_v21  ;;  %v5157_v0 = vld [vmem:[#allocation4 + $0x30] sm:$0xff] }
 0x4a8   :  { %6791 = vst [vmem:[#allocation94_spill] sm:$0xff] %v5148_v5  ;;  %v5160_v7 = vld [vmem:[#allocation4 + $0x50] sm:$0xff] }
 0x4a9   :  { %1634 = vmatpush.msra.mxu1 %v5145_v21  ;;  %1653 = vmatpush.msra.mxu2 %v5148_v5  ;;  %6792 = vst [vmem:[#allocation95_spill] sm:$0xff] %v5151_v10  ;;  %v5163_v21 = vld [vmem:[#allocation4 + $0x18] sm:$0xff] }
 0x4aa   :  { %6793 = vst [vmem:[#allocation96_spill] sm:$0xff] %v5154_v14  ;;  %v5166_v5 = vld [vmem:[#allocation4 + $0x38] sm:$0xff] }
 0x4ab   :  { %1635 = vmatpush.msra.mxu1 %v5151_v10  ;;  %1654 = vmatpush.msra.mxu2 %v5154_v14  ;;  %6794 = vst [vmem:[#allocation11_spill] sm:$0xff] %v5157_v0  ;;  %v5169_v10 = vld [vmem:[#allocation4] sm:$0xff] }
 0x4ac   :  { %6795 = vst [vmem:[#allocation40_spill] sm:$0xff] %v5160_v7  ;;  %v5172_v14 = vld [vmem:[#allocation4 + $0x20] sm:$0xff] }
 0x4ad   :  { %1636 = vmatpush.msra.mxu1 %v5157_v0  ;;  %1655 = vmatpush.msra.mxu2 %v5160_v7  ;;  %6796 = vst [vmem:[#allocation43_spill] sm:$0xff] %v5163_v21  ;;  %v5175_v0 = vld [vmem:[#allocation4 + $0x8] sm:$0xff]  ;;  %v1363_v7 = vpop.f32.mrf.mxu0 }
 0x4ae   :  { %6797 = vst [vmem:[#allocation38_spill] sm:$0xff] %v5166_v5 }
 0x4af   :  { %1637 = vmatpush.msra.mxu1 %v5163_v21  ;;  %1656 = vmatpush.msra.mxu2 %v5166_v5  ;;  %6798 = vst [vmem:[#allocation36_spill] sm:$0xff] %v5169_v10  ;;  %v172_v21 = vadd.f32 %v6802_v23, %v6801_v27 }
 0x4b0   :  { %6799 = vst [vmem:[#allocation39_spill] sm:$0xff] %v5172_v14 }
 0x4b1   :  { %1638 = vmatpush.msra.mxu1 %v5169_v10  ;;  %1657 = vmatpush.msra.mxu2 %v5172_v14  ;;  %6800 = vst [vmem:[#allocation19_spill] sm:$0xff] %v5175_v0  ;;  %v1406_v59 = vadd.f32 %v1363_v7, %v172_v21 }
 0x4b3   :  { %1658 = vmatpush.msra.mxu2 %v5175_v0  ;;  %v2755_v63 = vmul.f32 -1.442695, %v1406_v59  ;;  %v6803_v0 = vld [vmem:[#allocation44_spill] sm:$0xff] }
 0x4b5   :  { %2844 = vpow2.f32 %v2755_v63 }
 0x4bb   :  { %v2845_v5 = vpop.eup %2844 }
 0x4bc   :  { %v1410_v35 = vadd.f32 1.0, %v2845_v5 }
 0x4be   :  { %2846 = vrcp.f32 %v1410_v35  ;;  %v1422_v23 = vand.u32 2147483648, %v1410_v35  ;;  %vm1416_vm3 = vweird.f32 %v1410_v35  ;;  %v1420_v63 = vand.u32 2147483647, %v1410_v35 }
 0x4c0   :  { %v1423_v7 = vor.u32 1.1754944e-38, %v1422_v23  ;;  %vm1421_vm5 = vcmp.eq.f32.partialorder %v1420_v63, 8.507059e+37 }
 0x4c4   :  { %v2847_v17 = vpop.eup %2846 }
 0x4c5   :  { %v1412_v10 = vmul.f32 %v2847_v17, %v1410_v35  ;;  %vm1417_vm2 = vweird.f32 %v2847_v17 }
 0x4c6   :  { %vm1418_vm4 = vmor %vm1416_vm3, %vm1417_vm2 }
 0x4c7   :  { %v1413_v20 = vsub.f32 1.0, %v1412_v10 }
 0x4c9   :  { %v1414_v14 = vmul.f32 %v2847_v17, %v1413_v20 }
 0x4cb   :  { %v1415_v18 = vadd.f32 %v2847_v17, %v1414_v14 }
 0x4cd   :  { %v1419_v59 = vsel %vm1418_vm4, %v2847_v17, %v1415_v18 }
 0x4ce   :  { %v1424_v20 = vsel %vm1421_vm5, %v1423_v7, %v1419_v59  ;;  %v5208_v59 = vld [vmem:[#allocation4 + $0x130] sm:$0xff] }
 0x4ef   :  { %v5180_v32 = vpop.f32.mrf.mxu1 }
 0x4f5   :  { %v5182_v16 = vpop.f32.mrf.mxu2 }
 0x4f7   :  { %v1383_v61 = vpop.f32.mrf.mxu1 }
 0x4f8   :  { %v1426_v4 = vadd.f32 %v1383_v61, %v6803_v0 }
 0x4fa   :  { %v2756_v21 = vmul.f32 -1.442695, %v1426_v4 }
 0x4fc   :  { %2848 = vpow2.f32 %v2756_v21 }
 0x4fd   :  { %v1403_v5 = vpop.f32.mrf.mxu2 }
 0x4fe   :  { %v1446_v10 = vadd.f32 %v4812_v41, %v1403_v5 }
 0x500   :  { %v1447_v27 = vmul.f32 %v1446_v10, %v1424_v20  ;;  %v6805_v10 = vld [vmem:[#allocation17_spill] sm:$0xff] }
 0x502   :  { %v2849_v48 = vpop.eup %2848  ;;  %v1448_v37 = vadd.f32 %v1447_v27, %v6804_v13 }
 0x503   :  { %v1430_v61 = vadd.f32 1.0, %v2849_v48 }
 0x505   :  { %2850 = vrcp.f32 %v1430_v61  ;;  %v1442_v35 = vand.u32 2147483648, %v1430_v61  ;;  %v1440_v18 = vand.u32 2147483647, %v1430_v61  ;;  %vm1436_vm7 = vweird.f32 %v1430_v61 }
 0x506   :  { %2852 = vtanh.f32 %v1448_v37  ;;  %v5193_v37 = vld [vmem:[#allocation4 + $0x178] sm:$0xff] }
 0x507   :  { %v1443_v41 = vor.u32 1.1754944e-38, %v1442_v35  ;;  %vm1441_vm9 = vcmp.eq.f32.partialorder %v1440_v18, 8.507059e+37 }
 0x50b   :  { %v2851_v14 = vpop.eup %2850 }
 0x50c   :  { %v1432_v4 = vmul.f32 %v2851_v14, %v1430_v61  ;;  %vm1437_vm6 = vweird.f32 %v2851_v14  ;;  %v2853_v17 = vpop.eup %2852 }
 0x50d   :  { %vm1438_vm8 = vmor %vm1436_vm7, %vm1437_vm6  ;;  %v1450_v63 = vsub.f32 %v4817_v57, %v2853_v17  ;;  %v5203_v57 = vld [vmem:[#allocation4 + $0x148] sm:$0xff] }
 0x50e   :  { %v1433_v0 = vsub.f32 1.0, %v1432_v4 }
 0x510   :  { %v1434_v22 = vmul.f32 %v2851_v14, %v1433_v0 }
 0x512   :  { %v1435_v23 = vadd.f32 %v2851_v14, %v1434_v22  ;;  %v5198_v22 = vld [vmem:[#allocation4 + $0x160] sm:$0xff] }
 0x514   :  { %v1439_v21 = vsel %vm1438_vm8, %v2851_v14, %v1435_v23 }
 0x515   :  { %v1444_v13 = vsel %vm1441_vm9, %v1443_v41, %v1439_v21 }
 0x516   :  { %v1451_v48 = vmul.f32 %v1450_v63, %v1444_v13 }
 0x518   :  { %v5188_v27 = vadd.f32 %v2853_v17, %v1451_v48 }
 0x51a   :  { %1469 = vmatmul.f32.vlgmr.msrb.gmra.mxu3 %v5188_v27  ;;  %1489 = vmatmul.f32.vlgmr.msrb.gmra.mxu0 %v5188_v27 }
 0x51b   :  { %1509 = vmatmul.f32.vlgmr.msrb.gmra.mxu1 %v5188_v27  ;;  %1663 = vmatpush.msrb.mxu3 %v5193_v37 }
 0x51c   :  { %1730 = vmatpush.msrb.mxu0 %v4823_v31  ;;  %1750 = vmatpush.msrb.mxu1 %v4826_v29  ;;  %v5214_v31 = vld [vmem:[#allocation4 + $0x118] sm:$0xff]  ;;  %v5219_v29 = vld [vmem:[#allocation4 + $0x100] sm:$0xff] }
 0x51d   :  { %1664 = vmatpush.msrb.mxu3 %v5198_v22 }
 0x51e   :  { %1731 = vmatpush.msrb.mxu0 %v4830_v46  ;;  %1751 = vmatpush.msrb.mxu1 %v4833_v60  ;;  %v5224_v46 = vld [vmem:[#allocation4 + $0xe8] sm:$0xff]  ;;  %v5229_v60 = vld [vmem:[#allocation4 + $0xd0] sm:$0xff] }
 0x51f   :  { %1665 = vmatpush.msrb.mxu3 %v5203_v57 }
 0x520   :  { %1732 = vmatpush.msrb.mxu0 %v4837_v53  ;;  %1752 = vmatpush.msrb.mxu1 %v4840_v3  ;;  %v5234_v53 = vld [vmem:[#allocation4 + $0xb8] sm:$0xff]  ;;  %v5239_v3 = vld [vmem:[#allocation4 + $0xa0] sm:$0xff] }
 0x521   :  { %1666 = vmatpush.msrb.mxu3 %v5208_v59 }
 0x522   :  { %1733 = vmatpush.msrb.mxu0 %v4844_v54  ;;  %1753 = vmatpush.msrb.mxu1 %v4847_v58  ;;  %v5244_v54 = vld [vmem:[#allocation4 + $0x88] sm:$0xff]  ;;  %v5249_v58 = vld [vmem:[#allocation4 + $0x70] sm:$0xff] }
 0x523   :  { %1639 = vmatmul.f32.vlgmr.msra.gmra.mxu1 %v5188_v27  ;;  %1667 = vmatpush.msrb.mxu3 %v5214_v31 }
 0x524   :  { %1734 = vmatpush.msrb.mxu0 %v4852_v36  ;;  %1754 = vmatpush.msrb.mxu1 %v4855_v33  ;;  %v5254_v36 = vld [vmem:[#allocation4 + $0x58] sm:$0xff]  ;;  %v5259_v33 = vld [vmem:[#allocation4 + $0x40] sm:$0xff] }
 0x525   :  { %1668 = vmatpush.msrb.mxu3 %v5219_v29 }
 0x526   :  { %1735 = vmatpush.msrb.mxu0 %v4859_v49  ;;  %1755 = vmatpush.msrb.mxu1 %v4862_v44  ;;  %v5264_v49 = vld [vmem:[#allocation4 + $0x28] sm:$0xff]  ;;  %v5269_v44 = vld [vmem:[#allocation4 + $0x10] sm:$0xff] }
 0x527   :  { %1669 = vmatpush.msrb.mxu3 %v5224_v46 }
 0x528   :  { %1736 = vmatpush.msrb.mxu0 %v4866_v15  ;;  %1756 = vmatpush.msrb.mxu1 %v4869_v30  ;;  %v5274_v15 = vld [vmem:[#allocation8 + $0x178] sm:$0xff]  ;;  %v5277_v30 = vld [vmem:[#allocation8 + $0x160] sm:$0xff] }
 0x529   :  { %1670 = vmatpush.msrb.mxu3 %v5229_v60 }
 0x52a   :  { %1737 = vmatpush.msrb.mxu0 %v4873_v56  ;;  %1757 = vmatpush.msrb.mxu1 %v4876_v8  ;;  %v5280_v56 = vld [vmem:[#allocation8 + $0x148] sm:$0xff]  ;;  %v5283_v8 = vld [vmem:[#allocation8 + $0x130] sm:$0xff] }
 0x52b   :  { %1671 = vmatpush.msrb.mxu3 %v5234_v53 }
 0x52c   :  { %1738 = vmatpush.msrb.mxu0 %v4880_v43  ;;  %1758 = vmatpush.msrb.mxu1 %v4883_v50  ;;  %v5286_v43 = vld [vmem:[#allocation8 + $0x118] sm:$0xff]  ;;  %v5289_v50 = vld [vmem:[#allocation8 + $0x100] sm:$0xff] }
 0x52d   :  { %1672 = vmatpush.msrb.mxu3 %v5239_v3 }
 0x52e   :  { %1739 = vmatpush.msrb.mxu0 %v4887_v52  ;;  %1759 = vmatpush.msrb.mxu1 %v4890_v51  ;;  %v5292_v52 = vld [vmem:[#allocation8 + $0xe8] sm:$0xff]  ;;  %v5295_v51 = vld [vmem:[#allocation8 + $0xd0] sm:$0xff] }
 0x52f   :  { %1673 = vmatpush.msrb.mxu3 %v5244_v54 }
 0x530   :  { %1740 = vmatpush.msrb.mxu0 %v4894_v11  ;;  %1760 = vmatpush.msrb.mxu1 %v4897_v42  ;;  %v5298_v11 = vld [vmem:[#allocation8 + $0xb8] sm:$0xff]  ;;  %v5301_v42 = vld [vmem:[#allocation8 + $0xa0] sm:$0xff] }
 0x531   :  { %1674 = vmatpush.msrb.mxu3 %v5249_v58 }
 0x532   :  { %1741 = vmatpush.msrb.mxu0 %v4901_v40  ;;  %1761 = vmatpush.msrb.mxu1 %v4904_v26  ;;  %v5304_v40 = vld [vmem:[#allocation8 + $0x88] sm:$0xff]  ;;  %v5307_v26 = vld [vmem:[#allocation8 + $0x70] sm:$0xff] }
 0x533   :  { %1675 = vmatpush.msrb.mxu3 %v5254_v36 }
 0x534   :  { %1742 = vmatpush.msrb.mxu0 %v4908_v34  ;;  %1762 = vmatpush.msrb.mxu1 %v4911_v19  ;;  %v5310_v34 = vld [vmem:[#allocation8 + $0x58] sm:$0xff]  ;;  %v5313_v19 = vld [vmem:[#allocation8 + $0x40] sm:$0xff] }
 0x535   :  { %1676 = vmatpush.msrb.mxu3 %v5259_v33 }
 0x536   :  { %1743 = vmatpush.msrb.mxu0 %v4915_v62  ;;  %1763 = vmatpush.msrb.mxu1 %v4918_v38  ;;  %v5316_v62 = vld [vmem:[#allocation8 + $0x28] sm:$0xff]  ;;  %v5319_v38 = vld [vmem:[#allocation8 + $0x10] sm:$0xff] }
 0x537   :  { %1677 = vmatpush.msrb.mxu3 %v5264_v49 }
 0x538   :  { %1744 = vmatpush.msrb.mxu0 %v4922_v9  ;;  %1764 = vmatpush.msrb.mxu1 %v4925_v39  ;;  %v1340_v9 = vpop.f32.mrf.mxu3 }
 0x539   :  { %1678 = vmatpush.msrb.mxu3 %v5269_v44 }
 0x53a   :  { %1745 = vmatpush.msrb.mxu0 %v4929_v55  ;;  %1765 = vmatpush.msrb.mxu1 %v4932_v6 }
 0x53c   :  { %1877 = vmatpush.msra.mxu1 %v5274_v15 }
 0x53e   :  { %1878 = vmatpush.msra.mxu1 %v5277_v30 }
 0x540   :  { %1879 = vmatpush.msra.mxu1 %v5280_v56 }
 0x542   :  { %1880 = vmatpush.msra.mxu1 %v5283_v8 }
 0x544   :  { %1881 = vmatpush.msra.mxu1 %v5286_v43 }
 0x546   :  { %1882 = vmatpush.msra.mxu1 %v5289_v50 }
 0x548   :  { %1883 = vmatpush.msra.mxu1 %v5292_v52 }
 0x54a   :  { %1884 = vmatpush.msra.mxu1 %v5295_v51 }
 0x54c   :  { %1885 = vmatpush.msra.mxu1 %v5298_v11 }
 0x54e   :  { %1886 = vmatpush.msra.mxu1 %v5301_v42 }
 0x550   :  { %1887 = vmatpush.msra.mxu1 %v5304_v40 }
 0x552   :  { %1888 = vmatpush.msra.mxu1 %v5307_v26 }
 0x554   :  { %1889 = vmatpush.msra.mxu1 %v5310_v34 }
 0x556   :  { %1890 = vmatpush.msra.mxu1 %v5313_v19 }
 0x558   :  { %1891 = vmatpush.msra.mxu1 %v5316_v62 }
 0x55a   :  { %1892 = vmatpush.msra.mxu1 %v5319_v38 }
 0x597   :  { %v1490_v39 = vpop.f32.mrf.mxu0 }
 0x598   :  { %v1491_v55 = vadd.f32 %v1490_v39, %v4300_v25 }
 0x59a   :  { %v1533_v6 = vadd.f32 %v1491_v55, %v5182_v16  ;;  %v1510_v55 = vpop.f32.mrf.mxu1 }
 0x59c   :  { %v2758_v5 = vmul.f32 -1.442695, %v1533_v6 }
 0x59d   :  { %v1470_v7 = vpop.f32.mrf.mxu3 }
 0x59e   :  { %v1471_v20 = vadd.f32 %v1470_v7, %v6805_v10  ;;  %2854 = vpow2.f32 %v2758_v5  ;;  %v1553_v5 = vadd.f32 %v4958_v28, %v1340_v9 }
 0x5a0   :  { %v1513_v61 = vadd.f32 %v1471_v20, %v5180_v32 }
 0x5a2   :  { %v2757_v14 = vmul.f32 -1.442695, %v1513_v61  ;;  %v1511_v61 = vadd.f32 %v1510_v55, %v4311_v2  ;;  %v5349_v55 = vld [vmem:[#allocation6 + $0x130] sm:$0xff] }
 0x5a4   :  { %2856 = vpow2.f32 %v2757_v14  ;;  %v2855_v4 = vpop.eup %2854 }
 0x5a5   :  { %v1537_v35 = vadd.f32 1.0, %v2855_v4 }
 0x5a7   :  { %vm1543_vm15 = vweird.f32 %v1537_v35 }
 0x5aa   :  { %v2857_v0 = vpop.eup %2856 }
 0x5ab   :  { %v1517_v18 = vadd.f32 1.0, %v2857_v0 }
 0x5ad   :  { %2858 = vrcp.f32 %v1517_v18  ;;  %v1529_v63 = vand.u32 2147483648, %v1517_v18  ;;  %v1527_v48 = vand.u32 2147483647, %v1517_v18  ;;  %vm1523_vm11 = vweird.f32 %v1517_v18 }
 0x5ae   :  { %2860 = vrcp.f32 %v1537_v35 }
 0x5af   :  { %v1530_v6 = vor.u32 1.1754944e-38, %v1529_v63  ;;  %vm1528_vm13 = vcmp.eq.f32.partialorder %v1527_v48, 8.507059e+37 }
 0x5b3   :  { %v2859_v17 = vpop.eup %2858 }
 0x5b4   :  { %v2861_v23 = vpop.eup %2860  ;;  %v1519_v41 = vmul.f32 %v2859_v17, %v1517_v18  ;;  %vm1524_vm10 = vweird.f32 %v2859_v17  ;;  %v1547_v18 = vand.u32 2147483647, %v1537_v35 }
 0x5b5   :  { %v1539_v16 = vmul.f32 %v2861_v23, %v1537_v35  ;;  %vm1525_vm12 = vmor %vm1523_vm11, %vm1524_vm10  ;;  %vm1544_vm14 = vweird.f32 %v2861_v23 }
 0x5b6   :  { %v1520_v21 = vsub.f32 1.0, %v1519_v41  ;;  %vm1545_vm0 = vmor %vm1543_vm15, %vm1544_vm14  ;;  %vm1548_vm1 = vcmp.eq.f32.partialorder %v1547_v18, 8.507059e+37  ;;  %v6822_v18 = vld [vmem:[#allocation37_spill] sm:$0xff] }
 0x5b7   :  { %v1540_v32 = vsub.f32 1.0, %v1539_v16 }
 0x5b8   :  { %v1521_v13 = vmul.f32 %v2859_v17, %v1520_v21  ;;  %v1549_v21 = vand.u32 2147483648, %v1537_v35  ;;  %v5339_v35 = vld [vmem:[#allocation6 + $0x160] sm:$0xff] }
 0x5b9   :  { %v1541_v4 = vmul.f32 %v2861_v23, %v1540_v32  ;;  %v6807_v32 = vld [vmem:[#allocation29_spill] sm:$0xff] }
 0x5ba   :  { %v1522_v39 = vadd.f32 %v2859_v17, %v1521_v13  ;;  %v1550_v63 = vor.u32 1.1754944e-38, %v1549_v21  ;;  %v6821_v21 = vld [vmem:[#allocation35_spill] sm:$0xff] }
 0x5bb   :  { %v1542_v41 = vadd.f32 %v2861_v23, %v1541_v4  ;;  %v6818_v4 = vld [vmem:[#allocation33_spill] sm:$0xff] }
 0x5bc   :  { %v1526_v7 = vsel %vm1525_vm12, %v2859_v17, %v1522_v39  ;;  %v5334_v39 = vld [vmem:[#allocation6 + $0x178] sm:$0xff] }
 0x5bd   :  { %v1531_v20 = vsel %vm1528_vm13, %v1530_v6, %v1526_v7  ;;  %v1546_v16 = vsel %vm1545_vm0, %v2861_v23, %v1542_v41  ;;  %v6806_v23 = vld [vmem:[#allocation28_spill] sm:$0xff]  ;;  %v6812_v6 = vld [vmem:[#allocation73_spill] sm:$0xff]  ;;  %v5374_v41 = vld [vmem:[#allocation6 + $0xb8] sm:$0xff] }
 0x5be   :  { %v1554_v14 = vmul.f32 %v1553_v5, %v1531_v20  ;;  %v1551_v9 = vsel %vm1548_vm1, %v1550_v63, %v1546_v16  ;;  %v6813_v5 = vld [vmem:[#allocation31_spill] sm:$0xff]  ;;  %v5364_v7 = vld [vmem:[#allocation6 + $0xe8] sm:$0xff]  ;;  %v6815_v20 = vld [vmem:[#allocation74_spill] sm:$0xff]  ;;  %6820 = vst [vmem:[#allocation24_spill] sm:$0xff] %v5374_v41 }
 0x5bf   :  { %6814 = vst [vmem:[#allocation22_spill] sm:$0xff] %v5364_v7  ;;  %v5379_v16 = vld [vmem:[#allocation6 + $0xa0] sm:$0xff]  ;;  %v6825_v63 = vld [vmem:[#allocation42_spill] sm:$0xff] }
 0x5c0   :  { %v1555_v0 = vadd.f32 %v1554_v14, %v1511_v61  ;;  %v6816_v61 = vld [vmem:[#allocation32_spill] sm:$0xff]  ;;  %v5369_v14 = vld [vmem:[#allocation6 + $0xd0] sm:$0xff]  ;;  %6823 = vst [vmem:[#allocation25_spill] sm:$0xff] %v5379_v16 }
 0x5c1   :  { %6817 = vst [vmem:[#allocation23_spill] sm:$0xff] %v5369_v14 }
 0x5c2   :  { %2862 = vtanh.f32 %v1555_v0  ;;  %v6819_v0 = vld [vmem:[#allocation34_spill] sm:$0xff] }
 0x5c8   :  { %v2863_v13 = vpop.eup %2862 }
 0x5c9   :  { %v1557_v28 = vsub.f32 %v4963_v12, %v2863_v13  ;;  %v5344_v12 = vld [vmem:[#allocation6 + $0x148] sm:$0xff] }
 0x5cb   :  { %v1558_v17 = vmul.f32 %v1557_v28, %v1551_v9  ;;  %v5384_v28 = vld [vmem:[#allocation6 + $0x88] sm:$0xff]  ;;  %v6827_v9 = vld [vmem:[#allocation45_spill] sm:$0xff] }
 0x5cc   :  { %6826 = vst [vmem:[#allocation26_spill] sm:$0xff] %v5384_v28 }
 0x5cd   :  { %v5329_v48 = vadd.f32 %v2863_v13, %v1558_v17  ;;  %v6824_v13 = vld [vmem:[#allocation41_spill] sm:$0xff]  ;;  %v6828_v17 = vld [vmem:[#allocation75_spill] sm:$0xff] }
 0x5cf   :  { %1576 = vmatmul.f32.vlgmr.msrb.gmra.mxu2 %v5329_v48  ;;  %1596 = vmatmul.f32.vlgmr.msra.gmra.mxu3 %v5329_v48 }
 0x5d0   :  { %1616 = vmatmul.f32.vlgmr.msra.gmra.mxu0 %v5329_v48  ;;  %1770 = vmatpush.msrb.mxu2 %v5334_v39 }
 0x5d1   :  { %1837 = vmatpush.msra.mxu3 %v4969_v1  ;;  %1857 = vmatpush.msra.mxu0 %v4972_v24  ;;  %v5354_v1 = vld [vmem:[#allocation6 + $0x118] sm:$0xff]  ;;  %v6809_v24 = vld [vmem:[#allocation72_spill] sm:$0xff] }
 0x5d2   :  { %1771 = vmatpush.msrb.mxu2 %v5339_v35  ;;  %6808 = vst [vmem:[#allocation20_spill] sm:$0xff] %v5354_v1 }
 0x5d3   :  { %1838 = vmatpush.msra.mxu3 %v4976_v47  ;;  %1858 = vmatpush.msra.mxu0 %v4979_v45  ;;  %v6810_v47 = vld [vmem:[#allocation30_spill] sm:$0xff]  ;;  %v5359_v45 = vld [vmem:[#allocation6 + $0x100] sm:$0xff] }
 0x5d4   :  { %1772 = vmatpush.msrb.mxu2 %v5344_v12  ;;  %6811 = vst [vmem:[#allocation21_spill] sm:$0xff] %v5359_v45 }
 0x5d5   :  { %1839 = vmatpush.msra.mxu3 %v6806_v23  ;;  %1859 = vmatpush.msra.mxu0 %v6807_v32  ;;  %v5389_v23 = vld [vmem:[#allocation6 + $0x70] sm:$0xff]  ;;  %v6830_v32 = vld [vmem:[#allocation76_spill] sm:$0xff] }
 0x5d6   :  { %1773 = vmatpush.msrb.mxu2 %v5349_v55  ;;  %6829 = vst [vmem:[#allocation27_spill] sm:$0xff] %v5389_v23 }
 0x5d7   :  { %1659 = vmatmul.f32.vlgmr.msra.gmra.mxu2 %v5188_v27  ;;  %1679 = vmatmul.f32.vlgmr.msrb.gmra.mxu3 %v5188_v27 }
 0x5d8   :  { %1774 = vmatpush.msrb.mxu2 %v5354_v1  ;;  %1840 = vmatpush.msra.mxu3 %v6809_v24  ;;  %v6831_v24 = vld [vmem:[#allocation46_spill] sm:$0xff] }
 0x5d9   :  { %1860 = vmatpush.msra.mxu0 %v6810_v47  ;;  %v5394_v47 = vld [vmem:[#allocation6 + $0x58] sm:$0xff] }
 0x5da   :  { %1775 = vmatpush.msrb.mxu2 %v5359_v45  ;;  %1841 = vmatpush.msra.mxu3 %v6812_v6  ;;  %6832 = vst [vmem:[#allocation12_spill] sm:$0xff] %v5394_v47  ;;  %v6833_v6 = vld [vmem:[#allocation47_spill] sm:$0xff] }
 0x5db   :  { %1861 = vmatpush.msra.mxu0 %v6813_v5  ;;  %v6834_v5 = vld [vmem:[#allocation48_spill] sm:$0xff] }
 0x5dc   :  { %1776 = vmatpush.msrb.mxu2 %v5364_v7  ;;  %1842 = vmatpush.msra.mxu3 %v6815_v20  ;;  %v5399_v20 = vld [vmem:[#allocation6 + $0x40] sm:$0xff] }
 0x5dd   :  { %1862 = vmatpush.msra.mxu0 %v6816_v61  ;;  %6835 = vst [vmem:[#allocation44_spill] sm:$0xff] %v5399_v20  ;;  %v6836_v61 = vld [vmem:[#allocation50_spill] sm:$0xff] }
 0x5de   :  { %1777 = vmatpush.msrb.mxu2 %v5369_v14  ;;  %1843 = vmatpush.msra.mxu3 %v6818_v4  ;;  %v6837_v4 = vld [vmem:[#allocation52_spill] sm:$0xff] }
 0x5df   :  { %1863 = vmatpush.msra.mxu0 %v6819_v0  ;;  %v5404_v0 = vld [vmem:[#allocation6 + $0x28] sm:$0xff] }
 0x5e0   :  { %1778 = vmatpush.msrb.mxu2 %v5374_v41  ;;  %1844 = vmatpush.msra.mxu3 %v6821_v21  ;;  %6838 = vst [vmem:[#allocation49_spill] sm:$0xff] %v5404_v0  ;;  %v6839_v21 = vld [vmem:[#allocation53_spill] sm:$0xff] }
 0x5e1   :  { %1864 = vmatpush.msra.mxu0 %v6822_v18  ;;  %v6840_v18 = vld [vmem:[#allocation54_spill] sm:$0xff] }
 0x5e2   :  { %1779 = vmatpush.msrb.mxu2 %v5379_v16  ;;  %1845 = vmatpush.msra.mxu3 %v6824_v13  ;;  %v5409_v13 = vld [vmem:[#allocation6 + $0x10] sm:$0xff] }
 0x5e3   :  { %1865 = vmatpush.msra.mxu0 %v6825_v63  ;;  %6841 = vst [vmem:[#allocation17_spill] sm:$0xff] %v5409_v13  ;;  %v6842_v63 = vld [vmem:[#allocation56_spill] sm:$0xff] }
 0x5e4   :  { %1780 = vmatpush.msrb.mxu2 %v5384_v28  ;;  %1846 = vmatpush.msra.mxu3 %v6827_v9  ;;  %v6843_v9 = vld [vmem:[#allocation58_spill] sm:$0xff] }
 0x5e5   :  { %1866 = vmatpush.msra.mxu0 %v6828_v17  ;;  %v6844_v17 = vld [vmem:[#allocation59_spill] sm:$0xff] }
 0x5e6   :  { %1781 = vmatpush.msrb.mxu2 %v5389_v23  ;;  %1847 = vmatpush.msra.mxu3 %v6830_v32  ;;  %v6845_v32 = vld [vmem:[#allocation60_spill] sm:$0xff] }
 0x5e7   :  { %1867 = vmatpush.msra.mxu0 %v6831_v24  ;;  %v6846_v24 = vld [vmem:[#allocation62_spill] sm:$0xff] }
 0x5e8   :  { %1782 = vmatpush.msrb.mxu2 %v5394_v47  ;;  %1848 = vmatpush.msra.mxu3 %v6833_v6  ;;  %v6847_v6 = vld [vmem:[#allocation64_spill] sm:$0xff] }
 0x5e9   :  { %1868 = vmatpush.msra.mxu0 %v6834_v5  ;;  %v6848_v5 = vld [vmem:[#allocation65_spill] sm:$0xff] }
 0x5ea   :  { %1783 = vmatpush.msrb.mxu2 %v5399_v20  ;;  %1849 = vmatpush.msra.mxu3 %v6836_v61  ;;  %v6849_v61 = vld [vmem:[#allocation66_spill] sm:$0xff] }
 0x5eb   :  { %1869 = vmatpush.msra.mxu0 %v6837_v4  ;;  %v6850_v4 = vld [vmem:[#allocation68_spill] sm:$0xff] }
 0x5ec   :  { %1784 = vmatpush.msrb.mxu2 %v5404_v0  ;;  %1850 = vmatpush.msra.mxu3 %v6839_v21  ;;  %v6851_v21 = vld [vmem:[#allocation77_spill] sm:$0xff] }
 0x5ed   :  { %1870 = vmatpush.msra.mxu0 %v6840_v18  ;;  %v6852_v18 = vld [vmem:[#allocation78_spill] sm:$0xff] }
 0x5ee   :  { %1785 = vmatpush.msrb.mxu2 %v5409_v13  ;;  %1851 = vmatpush.msra.mxu3 %v6842_v63  ;;  %v6853_v63 = vld [vmem:[#allocation79_spill] sm:$0xff]  ;;  %v6879_v13 = vld [vmem:[#allocation13_spill] sm:$0xff] }
 0x5ef   :  { %1871 = vmatpush.msra.mxu0 %v6844_v17  ;;  %v6855_v17 = vld [vmem:[#allocation81_spill] sm:$0xff] }
 0x5f0   :  { %1900 = vmatpush.msra.mxu2 %v6843_v9  ;;  %1852 = vmatpush.msra.mxu3 %v6845_v32  ;;  %v6854_v9 = vld [vmem:[#allocation80_spill] sm:$0xff]  ;;  %v6856_v32 = vld [vmem:[#allocation82_spill] sm:$0xff] }
 0x5f1   :  { %1872 = vmatpush.msra.mxu0 %v6847_v6  ;;  %v6858_v6 = vld [vmem:[#allocation84_spill] sm:$0xff] }
 0x5f2   :  { %1901 = vmatpush.msra.mxu2 %v6846_v24  ;;  %1920 = vmatpush.msrb.mxu3 %v6848_v5  ;;  %v6857_v24 = vld [vmem:[#allocation83_spill] sm:$0xff]  ;;  %v6859_v5 = vld [vmem:[#allocation85_spill] sm:$0xff] }
 0x5f4   :  { %1902 = vmatpush.msra.mxu2 %v6849_v61  ;;  %1921 = vmatpush.msrb.mxu3 %v6850_v4  ;;  %v6860_v61 = vld [vmem:[#allocation86_spill] sm:$0xff]  ;;  %v6861_v4 = vld [vmem:[#allocation87_spill] sm:$0xff] }
 0x5f6   :  { %1903 = vmatpush.msra.mxu2 %v6851_v21  ;;  %1922 = vmatpush.msrb.mxu3 %v6852_v18  ;;  %v6862_v21 = vld [vmem:[#allocation88_spill] sm:$0xff]  ;;  %v6863_v18 = vld [vmem:[#allocation89_spill] sm:$0xff] }
 0x5f8   :  { %1904 = vmatpush.msra.mxu2 %v6853_v63  ;;  %1923 = vmatpush.msrb.mxu3 %v6854_v9  ;;  %v6864_v63 = vld [vmem:[#allocation90_spill] sm:$0xff]  ;;  %v6865_v9 = vld [vmem:[#allocation91_spill] sm:$0xff] }
 0x5fa   :  { %1905 = vmatpush.msra.mxu2 %v6855_v17  ;;  %1924 = vmatpush.msrb.mxu3 %v6856_v32  ;;  %v6866_v17 = vld [vmem:[#allocation92_spill] sm:$0xff]  ;;  %v6867_v32 = vld [vmem:[#allocation93_spill] sm:$0xff] }
 0x5fc   :  { %1906 = vmatpush.msra.mxu2 %v6857_v24  ;;  %1925 = vmatpush.msrb.mxu3 %v6858_v6  ;;  %v6868_v24 = vld [vmem:[#allocation94_spill] sm:$0xff]  ;;  %v6869_v6 = vld [vmem:[#allocation95_spill] sm:$0xff] }
 0x5fe   :  { %1907 = vmatpush.msra.mxu2 %v6859_v5  ;;  %1926 = vmatpush.msrb.mxu3 %v6860_v61  ;;  %v6870_v5 = vld [vmem:[#allocation96_spill] sm:$0xff]  ;;  %v6871_v61 = vld [vmem:[#allocation11_spill] sm:$0xff] }
 0x600   :  { %1908 = vmatpush.msra.mxu2 %v6861_v4  ;;  %1927 = vmatpush.msrb.mxu3 %v6862_v21  ;;  %v6872_v4 = vld [vmem:[#allocation40_spill] sm:$0xff]  ;;  %v6873_v21 = vld [vmem:[#allocation43_spill] sm:$0xff] }
 0x602   :  { %1909 = vmatpush.msra.mxu2 %v6863_v18  ;;  %1928 = vmatpush.msrb.mxu3 %v6864_v63  ;;  %v6874_v18 = vld [vmem:[#allocation38_spill] sm:$0xff]  ;;  %v6875_v63 = vld [vmem:[#allocation36_spill] sm:$0xff] }
 0x604   :  { %1910 = vmatpush.msra.mxu2 %v6865_v9  ;;  %1929 = vmatpush.msrb.mxu3 %v6866_v17  ;;  %v6876_v9 = vld [vmem:[#allocation39_spill] sm:$0xff] }
 0x605   :  { %v6877_v17 = vld [vmem:[#allocation19_spill] sm:$0xff] }
 0x606   :  { %1911 = vmatpush.msra.mxu2 %v6867_v32  ;;  %1930 = vmatpush.msrb.mxu3 %v6868_v24  ;;  %v1640_v32 = vpop.f32.mrf.mxu1  ;;  %v6878_v24 = vld [vmem:[#allocation70_spill] sm:$0xff] }
 0x608   :  { %1912 = vmatpush.msra.mxu2 %v6869_v6  ;;  %1931 = vmatpush.msrb.mxu3 %v6870_v5  ;;  %v175_v6 = vadd.f32 %v6879_v13, %v6878_v24 }
 0x60a   :  { %1913 = vmatpush.msra.mxu2 %v6871_v61  ;;  %1932 = vmatpush.msrb.mxu3 %v6872_v4  ;;  %v1683_v0 = vadd.f32 %v1640_v32, %v175_v6 }
 0x60c   :  { %1914 = vmatpush.msra.mxu2 %v6873_v21  ;;  %1933 = vmatpush.msrb.mxu3 %v6874_v18  ;;  %v2759_v5 = vmul.f32 -1.442695, %v1683_v0 }
 0x60e   :  { %1915 = vmatpush.msra.mxu2 %v6875_v63  ;;  %1934 = vmatpush.msrb.mxu3 %v6876_v9  ;;  %2864 = vpow2.f32 %v2759_v5  ;;  %v6880_v5 = vld [vmem:[#allocation51_spill] sm:$0xff] }
 0x610   :  { %1935 = vmatpush.msrb.mxu3 %v6877_v17 }
 0x614   :  { %v2865_v61 = vpop.eup %2864 }
 0x615   :  { %v1687_v20 = vadd.f32 1.0, %v2865_v61 }
 0x617   :  { %2866 = vrcp.f32 %v1687_v20  ;;  %v1699_v17 = vand.u32 2147483648, %v1687_v20  ;;  %vm1693_vm3 = vweird.f32 %v1687_v20  ;;  %v1697_v28 = vand.u32 2147483647, %v1687_v20 }
 0x619   :  { %v1700_v6 = vor.u32 1.1754944e-38, %v1699_v17  ;;  %vm1698_vm5 = vcmp.eq.f32.partialorder %v1697_v28, 8.507059e+37 }
 0x61d   :  { %v2867_v4 = vpop.eup %2866 }
 0x61e   :  { %v1689_v21 = vmul.f32 %v2867_v4, %v1687_v20  ;;  %vm1694_vm2 = vweird.f32 %v2867_v4  ;;  %v6881_v20 = vld [vmem:[#allocation55_spill] sm:$0xff] }
 0x61f   :  { %vm1695_vm4 = vmor %vm1693_vm3, %vm1694_vm2 }
 0x620   :  { %v1690_v47 = vsub.f32 1.0, %v1689_v21 }
 0x622   :  { %v1691_v18 = vmul.f32 %v2867_v4, %v1690_v47  ;;  %v5458_v47 = vld [vmem:[%s6187_s4] ss:$0 sm:$0xff] }
 0x624   :  { %v1692_v9 = vadd.f32 %v2867_v4, %v1691_v18 }
 0x626   :  { %v1696_v13 = vsel %vm1695_vm4, %v2867_v4, %v1692_v9 }
 0x627   :  { %v1701_v18 = vsel %vm1698_vm5, %v1700_v6, %v1696_v13 }
 0x652   :  { %v5450_v23 = vpop.f32.mrf.mxu2  ;;  %v5452_v63 = vpop.f32.mrf.mxu3 }
 0x65a   :  { %v1660_v0 = vpop.f32.mrf.mxu2  ;;  %v1680_v32 = vpop.f32.mrf.mxu3 }
 0x65b   :  { %v1703_v61 = vadd.f32 %v1660_v0, %v6880_v5  ;;  %v1723_v21 = vadd.f32 %v5458_v47, %v1680_v32 }
 0x65d   :  { %v2760_v24 = vmul.f32 -1.442695, %v1703_v61  ;;  %v1724_v16 = vmul.f32 %v1723_v21, %v1701_v18  ;;  %v5501_v21 = vld [vmem:[#allocation6 + $0x110] sm:$0xff]  ;;  %v5508_v18 = vld [vmem:[#allocation6 + $0xf8] sm:$0xff] }
 0x65f   :  { %2868 = vpow2.f32 %v2760_v24  ;;  %v1725_v41 = vadd.f32 %v1724_v16, %v6881_v20  ;;  %v5515_v20 = vld [vmem:[#allocation6 + $0xe0] sm:$0xff] }
 0x665   :  { %v2869_v4 = vpop.eup %2868 }
 0x666   :  { %v1707_v9 = vadd.f32 1.0, %v2869_v4  ;;  %v5522_v4 = vld [vmem:[#allocation6 + $0xc8] sm:$0xff] }
 0x668   :  { %2870 = vrcp.f32 %v1707_v9  ;;  %v1719_v5 = vand.u32 2147483648, %v1707_v9  ;;  %v1717_v7 = vand.u32 2147483647, %v1707_v9  ;;  %vm1713_vm7 = vweird.f32 %v1707_v9 }
 0x669   :  { %2872 = vtanh.f32 %v1725_v41  ;;  %v5493_v41 = vld [vmem:[#allocation6 + $0x128] sm:$0xff] }
 0x66a   :  { %v1720_v13 = vor.u32 1.1754944e-38, %v1719_v5  ;;  %vm1718_vm9 = vcmp.eq.f32.partialorder %v1717_v7, 8.507059e+37  ;;  %v5472_v7 = vld [vmem:[#allocation6 + $0x170] sm:$0xff] }
 0x66b   :  { %v5557_v5 = vld [vmem:[#allocation6 + $0x50] sm:$0xff] }
 0x66e   :  { %v2871_v17 = vpop.eup %2870 }
 0x66f   :  { %v1709_v0 = vmul.f32 %v2871_v17, %v1707_v9  ;;  %vm1714_vm6 = vweird.f32 %v2871_v17  ;;  %v2873_v45 = vpop.eup %2872  ;;  %v5529_v9 = vld [vmem:[#allocation6 + $0xb0] sm:$0xff] }
 0x670   :  { %vm1715_vm8 = vmor %vm1713_vm7, %vm1714_vm6  ;;  %v1727_v16 = vsub.f32 %v5188_v27, %v2873_v45  ;;  %v5476_v27 = vld [vmem:[#allocation6 + $0x150] sm:$0xff] }
 0x671   :  { %v1710_v28 = vsub.f32 1.0, %v1709_v0  ;;  %v5543_v0 = vld [vmem:[#allocation6 + $0x80] sm:$0xff] }
 0x673   :  { %v1711_v14 = vmul.f32 %v2871_v17, %v1710_v28  ;;  %v5550_v28 = vld [vmem:[#allocation6 + $0x68] sm:$0xff] }
 0x675   :  { %v1712_v1 = vadd.f32 %v2871_v17, %v1711_v14  ;;  %v5469_v14 = vld [vmem:[#allocation6 + $0x168] sm:$0xff] }
 0x677   :  { %v1716_v24 = vsel %vm1715_vm8, %v2871_v17, %v1712_v1  ;;  %v5479_v1 = vld [vmem:[#allocation6 + $0x158] sm:$0xff] }
 0x678   :  { %v1721_v32 = vsel %vm1718_vm9, %v1720_v13, %v1716_v24  ;;  %v5536_v17 = vld [vmem:[#allocation6 + $0x98] sm:$0xff]  ;;  %v5571_v24 = vld [vmem:[#allocation6 + $0x20] sm:$0xff] }
 0x679   :  { %v1728_v6 = vmul.f32 %v1727_v16, %v1721_v32  ;;  %v5564_v13 = vld [vmem:[#allocation6 + $0x38] sm:$0xff]  ;;  %v5578_v16 = vld [vmem:[#allocation6 + $0x8] sm:$0xff] }
 0x67b   :  { %v5463_v61 = vadd.f32 %v2873_v45, %v1728_v6  ;;  %v5486_v45 = vld [vmem:[#allocation6 + $0x140] sm:$0xff] }
 0x67d   :  { %1746 = vmatmul.f32.vlgmr.msrb.gmra.mxu0 %v5463_v61  ;;  %1766 = vmatmul.f32.vlgmr.msrb.gmra.mxu1 %v5463_v61 }
 0x67e   :  { %1786 = vmatmul.f32.vlgmr.msrb.gmra.mxu2 %v5463_v61  ;;  %1940 = vmatpush.msrb.mxu0 %v5193_v37  ;;  %v5483_v37 = vld [vmem:[#allocation6 + $0x138] sm:$0xff] }
 0x67f   :  { %2007 = vmatpush.msrb.mxu1 %v5469_v14  ;;  %2027 = vmatpush.msrb.mxu2 %v5472_v7 }
 0x680   :  { %1941 = vmatpush.msrb.mxu0 %v5198_v22  ;;  %v5490_v22 = vld [vmem:[#allocation6 + $0x120] sm:$0xff] }
 0x681   :  { %2008 = vmatpush.msrb.mxu1 %v5476_v27  ;;  %2028 = vmatpush.msrb.mxu2 %v5479_v1 }
 0x682   :  { %1942 = vmatpush.msrb.mxu0 %v5203_v57  ;;  %v5498_v57 = vld [vmem:[#allocation6 + $0x108] sm:$0xff] }
 0x683   :  { %2009 = vmatpush.msrb.mxu1 %v5483_v37  ;;  %2029 = vmatpush.msrb.mxu2 %v5486_v45 }
 0x684   :  { %1943 = vmatpush.msrb.mxu0 %v5208_v59  ;;  %v5505_v59 = vld [vmem:[#allocation6 + $0xf0] sm:$0xff] }
 0x685   :  { %2010 = vmatpush.msrb.mxu1 %v5490_v22  ;;  %2030 = vmatpush.msrb.mxu2 %v5493_v41 }
 0x686   :  { %1916 = vmatmul.f32.vlgmr.msra.gmra.mxu2 %v5463_v61  ;;  %1944 = vmatpush.msrb.mxu0 %v5214_v31  ;;  %v5512_v31 = vld [vmem:[#allocation6 + $0xd8] sm:$0xff] }
 0x687   :  { %2011 = vmatpush.msrb.mxu1 %v5498_v57  ;;  %2031 = vmatpush.msrb.mxu2 %v5501_v21 }
 0x688   :  { %1945 = vmatpush.msrb.mxu0 %v5219_v29  ;;  %v5519_v29 = vld [vmem:[#allocation6 + $0xc0] sm:$0xff] }
 0x689   :  { %2012 = vmatpush.msrb.mxu1 %v5505_v59  ;;  %2032 = vmatpush.msrb.mxu2 %v5508_v18 }
 0x68a   :  { %1946 = vmatpush.msrb.mxu0 %v5224_v46  ;;  %v5526_v46 = vld [vmem:[#allocation6 + $0xa8] sm:$0xff] }
 0x68b   :  { %2013 = vmatpush.msrb.mxu1 %v5512_v31  ;;  %2033 = vmatpush.msrb.mxu2 %v5515_v20 }
 0x68c   :  { %1947 = vmatpush.msrb.mxu0 %v5229_v60  ;;  %v5533_v60 = vld [vmem:[#allocation6 + $0x90] sm:$0xff] }
 0x68d   :  { %2014 = vmatpush.msrb.mxu1 %v5519_v29  ;;  %2034 = vmatpush.msrb.mxu2 %v5522_v4 }
 0x68e   :  { %1948 = vmatpush.msrb.mxu0 %v5234_v53  ;;  %v5540_v53 = vld [vmem:[#allocation6 + $0x78] sm:$0xff] }
 0x68f   :  { %2015 = vmatpush.msrb.mxu1 %v5526_v46  ;;  %2035 = vmatpush.msrb.mxu2 %v5529_v9 }
 0x690   :  { %1949 = vmatpush.msrb.mxu0 %v5239_v3  ;;  %v5547_v3 = vld [vmem:[#allocation6 + $0x60] sm:$0xff] }
 0x691   :  { %2016 = vmatpush.msrb.mxu1 %v5533_v60  ;;  %2036 = vmatpush.msrb.mxu2 %v5536_v17 }
 0x692   :  { %1950 = vmatpush.msrb.mxu0 %v5244_v54  ;;  %v5554_v54 = vld [vmem:[#allocation6 + $0x48] sm:$0xff] }
 0x693   :  { %2017 = vmatpush.msrb.mxu1 %v5540_v53  ;;  %2037 = vmatpush.msrb.mxu2 %v5543_v0 }
 0x694   :  { %1951 = vmatpush.msrb.mxu0 %v5249_v58  ;;  %v5561_v58 = vld [vmem:[#allocation6 + $0x30] sm:$0xff] }
 0x695   :  { %2018 = vmatpush.msrb.mxu1 %v5547_v3  ;;  %2038 = vmatpush.msrb.mxu2 %v5550_v28 }
 0x696   :  { %1952 = vmatpush.msrb.mxu0 %v5254_v36  ;;  %v5568_v36 = vld [vmem:[#allocation6 + $0x18] sm:$0xff] }
 0x697   :  { %2019 = vmatpush.msrb.mxu1 %v5554_v54  ;;  %2039 = vmatpush.msrb.mxu2 %v5557_v5 }
 0x698   :  { %1953 = vmatpush.msrb.mxu0 %v5259_v33  ;;  %v5575_v33 = vld [vmem:[#allocation6] sm:$0xff] }
 0x699   :  { %2020 = vmatpush.msrb.mxu1 %v5561_v58  ;;  %2040 = vmatpush.msrb.mxu2 %v5564_v13 }
 0x69a   :  { %1954 = vmatpush.msrb.mxu0 %v5264_v49  ;;  %v1617_v49 = vpop.f32.mrf.mxu0 }
 0x69b   :  { %2021 = vmatpush.msrb.mxu1 %v5568_v36  ;;  %2041 = vmatpush.msrb.mxu2 %v5571_v24 }
 0x69c   :  { %1955 = vmatpush.msrb.mxu0 %v5269_v44 }
 0x69d   :  { %2022 = vmatpush.msrb.mxu1 %v5575_v33  ;;  %2042 = vmatpush.msrb.mxu2 %v5578_v16 }
 0x69f   :  { %2154 = vmatpush.msra.mxu2 %v5274_v15 }
 0x6a1   :  { %2155 = vmatpush.msra.mxu2 %v5277_v30 }
 0x6a3   :  { %2156 = vmatpush.msra.mxu2 %v5280_v56 }
 0x6a5   :  { %2157 = vmatpush.msra.mxu2 %v5283_v8 }
 0x6a7   :  { %2158 = vmatpush.msra.mxu2 %v5286_v43 }
 0x6a9   :  { %2159 = vmatpush.msra.mxu2 %v5289_v50 }
 0x6ab   :  { %2160 = vmatpush.msra.mxu2 %v5292_v52 }
 0x6ad   :  { %2161 = vmatpush.msra.mxu2 %v5295_v51 }
 0x6af   :  { %2162 = vmatpush.msra.mxu2 %v5298_v11 }
 0x6b1   :  { %2163 = vmatpush.msra.mxu2 %v5301_v42 }
 0x6b3   :  { %2164 = vmatpush.msra.mxu2 %v5304_v40 }
 0x6b5   :  { %2165 = vmatpush.msra.mxu2 %v5307_v26 }
 0x6b7   :  { %2166 = vmatpush.msra.mxu2 %v5310_v34 }
 0x6b9   :  { %2167 = vmatpush.msra.mxu2 %v5313_v19 }
 0x6bb   :  { %2168 = vmatpush.msra.mxu2 %v5316_v62 }
 0x6bd   :  { %2169 = vmatpush.msra.mxu2 %v5319_v38 }
 0x6fa   :  { %v1747_v44 = vpop.f32.mrf.mxu0  ;;  %v1767_v15 = vpop.f32.mrf.mxu1 }
 0x6fb   :  { %v1748_v30 = vadd.f32 %v1747_v44, %v6805_v10  ;;  %v1768_v56 = vadd.f32 %v1767_v15, %v4300_v25 }
 0x6fd   :  { %v1790_v8 = vadd.f32 %v1748_v30, %v5450_v23  ;;  %v1810_v43 = vadd.f32 %v1768_v56, %v5452_v63  ;;  %v5604_v56 = vld [vmem:[%s6191_s8] ss:$0 sm:$0xff] }
 0x6ff   :  { %v2761_v50 = vmul.f32 -1.442695, %v1790_v8  ;;  %v2762_v52 = vmul.f32 -1.442695, %v1810_v43  ;;  %v1830_v8 = vadd.f32 %v5604_v56, %v1617_v49 }
 0x701   :  { %2874 = vpow2.f32 %v2761_v50  ;;  %v1787_v15 = vpop.f32.mrf.mxu2 }
 0x702   :  { %2876 = vpow2.f32 %v2762_v52  ;;  %v1788_v52 = vadd.f32 %v1787_v15, %v4311_v2  ;;  %v5639_v15 = vld [vmem:[#allocation8 + $0x120] sm:$0xff] }
 0x703   :  { %6884 = vst [vmem:[#allocation29_spill] sm:$0xff] %v5639_v15 }
 0x707   :  { %v2875_v51 = vpop.eup %2874 }
 0x708   :  { %v2877_v11 = vpop.eup %2876  ;;  %v1794_v42 = vadd.f32 1.0, %v2875_v51 }
 0x709   :  { %v1814_v40 = vadd.f32 1.0, %v2877_v11 }
 0x70a   :  { %2878 = vrcp.f32 %v1794_v42  ;;  %v1806_v32 = vand.u32 2147483648, %v1794_v42  ;;  %v1804_v23 = vand.u32 2147483647, %v1794_v42  ;;  %vm1800_vm11 = vweird.f32 %v1794_v42 }
 0x70b   :  { %2880 = vrcp.f32 %v1814_v40  ;;  %vm1820_vm15 = vweird.f32 %v1814_v40 }
 0x70c   :  { %v1807_v30 = vor.u32 1.1754944e-38, %v1806_v32  ;;  %vm1805_vm13 = vcmp.eq.f32.partialorder %v1804_v23, 8.507059e+37 }
 0x710   :  { %v2879_v26 = vpop.eup %2878 }
 0x711   :  { %v2881_v34 = vpop.eup %2880  ;;  %v1796_v19 = vmul.f32 %v2879_v26, %v1794_v42  ;;  %vm1801_vm10 = vweird.f32 %v2879_v26 }
 0x712   :  { %v1816_v38 = vmul.f32 %v2881_v34, %v1814_v40  ;;  %vm1802_vm12 = vmor %vm1800_vm11, %vm1801_vm10  ;;  %vm1821_vm14 = vweird.f32 %v2881_v34 }
 0x713   :  { %v1797_v62 = vsub.f32 1.0, %v1796_v19  ;;  %vm1822_vm0 = vmor %vm1820_vm15, %vm1821_vm14 }
 0x714   :  { %v1817_v44 = vsub.f32 1.0, %v1816_v38  ;;  %v1824_v38 = vand.u32 2147483647, %v1814_v40 }
 0x715   :  { %v1798_v6 = vmul.f32 %v2879_v26, %v1797_v62  ;;  %v1826_v62 = vand.u32 2147483648, %v1814_v40  ;;  %v5615_v40 = vld [vmem:[#allocation8 + $0x168] sm:$0xff] }
 0x716   :  { %v1818_v11 = vmul.f32 %v2881_v34, %v1817_v44  ;;  %vm1825_vm1 = vcmp.eq.f32.partialorder %v1824_v38, 8.507059e+37  ;;  %v5632_v44 = vld [vmem:[#allocation8 + $0x140] sm:$0xff]  ;;  %v5670_v38 = vld [vmem:[#allocation8 + $0xc8] sm:$0xff] }
 0x717   :  { %v1799_v63 = vadd.f32 %v2879_v26, %v1798_v6  ;;  %v1827_v25 = vor.u32 1.1754944e-38, %v1826_v62  ;;  %6882 = vst [vmem:[#allocation28_spill] sm:$0xff] %v5632_v44  ;;  %v5667_v62 = vld [vmem:[#allocation8 + $0xc0] sm:$0xff] }
 0x718   :  { %v1819_v42 = vadd.f32 %v2881_v34, %v1818_v11  ;;  %v5660_v11 = vld [vmem:[#allocation8 + $0xd8] sm:$0xff]  ;;  %6896 = vst [vmem:[#allocation34_spill] sm:$0xff] %v5667_v62 }
 0x719   :  { %v1803_v43 = vsel %vm1802_vm12, %v2879_v26, %v1799_v63  ;;  %6893 = vst [vmem:[#allocation32_spill] sm:$0xff] %v5660_v11 }
 0x71a   :  { %v1808_v50 = vsel %vm1805_vm13, %v1807_v30, %v1803_v43  ;;  %v1823_v32 = vsel %vm1822_vm0, %v2881_v34, %v1819_v42  ;;  %v5618_v34 = vld [vmem:[#allocation8 + $0x170] sm:$0xff]  ;;  %v6889_v43 = vld [vmem:[#allocation22_spill] sm:$0xff]  ;;  %v6895_v42 = vld [vmem:[#allocation24_spill] sm:$0xff]  ;;  %6897 = vst [vmem:[#allocation35_spill] sm:$0xff] %v5670_v38 }
 0x71b   :  { %v1831_v51 = vmul.f32 %v1830_v8, %v1808_v50  ;;  %v1828_v26 = vsel %vm1825_vm1, %v1827_v25, %v1823_v32  ;;  %v5622_v25 = vld [vmem:[#allocation8 + $0x150] sm:$0xff]  ;;  %v5646_v8 = vld [vmem:[#allocation8 + $0x108] sm:$0xff] }
 0x71c   :  { %v6886_v30 = vld [vmem:[#allocation21_spill] sm:$0xff]  ;;  %6887 = vst [vmem:[#allocation30_spill] sm:$0xff] %v5646_v8 }
 0x71d   :  { %v1832_v19 = vadd.f32 %v1831_v51, %v1788_v52  ;;  %v5653_v50 = vld [vmem:[#allocation8 + $0xf0] sm:$0xff]  ;;  %v5656_v52 = vld [vmem:[#allocation8 + $0xf8] sm:$0xff]  ;;  %v6892_v51 = vld [vmem:[#allocation23_spill] sm:$0xff] }
 0x71e   :  { %6890 = vst [vmem:[#allocation31_spill] sm:$0xff] %v5653_v50  ;;  %v6898_v32 = vld [vmem:[#allocation25_spill] sm:$0xff] }
 0x71f   :  { %2882 = vtanh.f32 %v1832_v19  ;;  %6891 = vst [vmem:[#allocation74_spill] sm:$0xff] %v5656_v52  ;;  %v5663_v19 = vld [vmem:[#allocation8 + $0xe0] sm:$0xff] }
 0x720   :  { %6894 = vst [vmem:[#allocation33_spill] sm:$0xff] %v5663_v19 }
 0x725   :  { %v2883_v6 = vpop.eup %2882 }
 0x726   :  { %v1834_v49 = vsub.f32 %v5329_v48, %v2883_v6  ;;  %v5625_v48 = vld [vmem:[#allocation8 + $0x158] sm:$0xff] }
 0x728   :  { %v1835_v23 = vmul.f32 %v1834_v49, %v1828_v26  ;;  %v5677_v49 = vld [vmem:[#allocation8 + $0xb0] sm:$0xff]  ;;  %v6901_v26 = vld [vmem:[#allocation26_spill] sm:$0xff] }
 0x729   :  { %6900 = vst [vmem:[#allocation41_spill] sm:$0xff] %v5677_v49 }
 0x72a   :  { %v5609_v63 = vadd.f32 %v2883_v6, %v1835_v23  ;;  %v5674_v6 = vld [vmem:[#allocation8 + $0xa8] sm:$0xff]  ;;  %v5681_v23 = vld [vmem:[#allocation8 + $0x90] sm:$0xff] }
 0x72b   :  { %6899 = vst [vmem:[#allocation37_spill] sm:$0xff] %v5674_v6 }
 0x72c   :  { %1853 = vmatmul.f32.vlgmr.msra.gmra.mxu3 %v5609_v63  ;;  %1873 = vmatmul.f32.vlgmr.msra.gmra.mxu0 %v5609_v63  ;;  %6902 = vst [vmem:[#allocation42_spill] sm:$0xff] %v5681_v23 }
 0x72d   :  { %1893 = vmatmul.f32.vlgmr.msra.gmra.mxu1 %v5609_v63  ;;  %2047 = vmatpush.msra.mxu3 %v5334_v39  ;;  %v5629_v39 = vld [vmem:[#allocation8 + $0x138] sm:$0xff] }
 0x72e   :  { %2114 = vmatpush.msra.mxu0 %v5615_v40  ;;  %2134 = vmatpush.msra.mxu1 %v5618_v34 }
 0x72f   :  { %2048 = vmatpush.msra.mxu3 %v5339_v35  ;;  %v6883_v35 = vld [vmem:[#allocation20_spill] sm:$0xff] }
 0x730   :  { %2115 = vmatpush.msra.mxu0 %v5622_v25  ;;  %2135 = vmatpush.msra.mxu1 %v5625_v48 }
 0x731   :  { %2049 = vmatpush.msra.mxu3 %v5344_v12  ;;  %v5642_v12 = vld [vmem:[#allocation8 + $0x128] sm:$0xff] }
 0x732   :  { %2116 = vmatpush.msra.mxu0 %v5629_v39  ;;  %2136 = vmatpush.msra.mxu1 %v5632_v44  ;;  %6885 = vst [vmem:[#allocation72_spill] sm:$0xff] %v5642_v12 }
 0x733   :  { %2050 = vmatpush.msra.mxu3 %v5349_v55  ;;  %v5649_v55 = vld [vmem:[#allocation8 + $0x110] sm:$0xff] }
 0x734   :  { %1936 = vmatmul.f32.vlgmr.msrb.gmra.mxu3 %v5463_v61  ;;  %1956 = vmatmul.f32.vlgmr.msrb.gmra.mxu0 %v5463_v61  ;;  %6888 = vst [vmem:[#allocation73_spill] sm:$0xff] %v5649_v55 }
 0x735   :  { %2051 = vmatpush.msra.mxu3 %v6883_v35  ;;  %2117 = vmatpush.msra.mxu0 %v5639_v15  ;;  %v5684_v35 = vld [vmem:[#allocation8 + $0x98] sm:$0xff] }
 0x736   :  { %2137 = vmatpush.msra.mxu1 %v5642_v12  ;;  %6903 = vst [vmem:[#allocation45_spill] sm:$0xff] %v5684_v35 }
 0x737   :  { %2052 = vmatpush.msra.mxu3 %v6886_v30  ;;  %2118 = vmatpush.msra.mxu0 %v5646_v8  ;;  %v6904_v30 = vld [vmem:[#allocation27_spill] sm:$0xff]  ;;  %v6956_v8 = vld [vmem:[#allocation57_spill] sm:$0xff] }
 0x738   :  { %2138 = vmatpush.msra.mxu1 %v5649_v55 }
 0x739   :  { %2053 = vmatpush.msra.mxu3 %v6889_v43  ;;  %2119 = vmatpush.msra.mxu0 %v5653_v50  ;;  %v5688_v43 = vld [vmem:[#allocation8 + $0x78] sm:$0xff] }
 0x73a   :  { %2139 = vmatpush.msra.mxu1 %v5656_v52  ;;  %6905 = vst [vmem:[#allocation75_spill] sm:$0xff] %v5688_v43 }
 0x73b   :  { %2054 = vmatpush.msra.mxu3 %v6892_v51  ;;  %2120 = vmatpush.msra.mxu0 %v5660_v11  ;;  %v5691_v51 = vld [vmem:[#allocation8 + $0x80] sm:$0xff] }
 0x73c   :  { %2140 = vmatpush.msra.mxu1 %v5663_v19  ;;  %6906 = vst [vmem:[#allocation76_spill] sm:$0xff] %v5691_v51 }
 0x73d   :  { %2055 = vmatpush.msra.mxu3 %v6895_v42  ;;  %2121 = vmatpush.msra.mxu0 %v5667_v62  ;;  %v6907_v42 = vld [vmem:[#allocation12_spill] sm:$0xff] }
 0x73e   :  { %2141 = vmatpush.msra.mxu1 %v5670_v38 }
 0x73f   :  { %2056 = vmatpush.msra.mxu3 %v6898_v32  ;;  %2122 = vmatpush.msra.mxu0 %v5674_v6  ;;  %v5695_v32 = vld [vmem:[#allocation8 + $0x60] sm:$0xff] }
 0x740   :  { %2142 = vmatpush.msra.mxu1 %v5677_v49  ;;  %6908 = vst [vmem:[#allocation46_spill] sm:$0xff] %v5695_v32 }
 0x741   :  { %2057 = vmatpush.msra.mxu3 %v6901_v26  ;;  %2123 = vmatpush.msra.mxu0 %v5681_v23  ;;  %v5698_v26 = vld [vmem:[#allocation8 + $0x68] sm:$0xff]  ;;  %v6954_v23 = vld [vmem:[#allocation14_spill] sm:$0xff] }
 0x742   :  { %2143 = vmatpush.msra.mxu1 %v5684_v35  ;;  %6909 = vst [vmem:[#allocation47_spill] sm:$0xff] %v5698_v26  ;;  %v6910_v35 = vld [vmem:[#allocation44_spill] sm:$0xff] }
 0x743   :  { %2058 = vmatpush.msra.mxu3 %v6904_v30  ;;  %2124 = vmatpush.msra.mxu0 %v5688_v43  ;;  %v5702_v30 = vld [vmem:[#allocation8 + $0x48] sm:$0xff]  ;;  %v5705_v43 = vld [vmem:[#allocation8 + $0x50] sm:$0xff] }
 0x744   :  { %2144 = vmatpush.msra.mxu1 %v5691_v51  ;;  %6911 = vst [vmem:[#allocation48_spill] sm:$0xff] %v5702_v30  ;;  %v6913_v51 = vld [vmem:[#allocation49_spill] sm:$0xff] }
 0x745   :  { %2059 = vmatpush.msra.mxu3 %v6907_v42  ;;  %2125 = vmatpush.msra.mxu0 %v5695_v32  ;;  %6912 = vst [vmem:[#allocation50_spill] sm:$0xff] %v5705_v43  ;;  %v5709_v42 = vld [vmem:[#allocation8 + $0x30] sm:$0xff]  ;;  %v5712_v32 = vld [vmem:[#allocation8 + $0x38] sm:$0xff] }
 0x746   :  { %2145 = vmatpush.msra.mxu1 %v5698_v26  ;;  %6914 = vst [vmem:[#allocation52_spill] sm:$0xff] %v5709_v42  ;;  %v6916_v26 = vld [vmem:[#allocation17_spill] sm:$0xff] }
 0x747   :  { %2060 = vmatpush.msra.mxu3 %v6910_v35  ;;  %2126 = vmatpush.msra.mxu0 %v5702_v30  ;;  %6915 = vst [vmem:[#allocation53_spill] sm:$0xff] %v5712_v32  ;;  %v5716_v35 = vld [vmem:[#allocation8 + $0x18] sm:$0xff]  ;;  %v5719_v30 = vld [vmem:[#allocation4 + $0x168] sm:$0xff] }
 0x748   :  { %2146 = vmatpush.msra.mxu1 %v5705_v43  ;;  %6917 = vst [vmem:[#allocation54_spill] sm:$0xff] %v5716_v35  ;;  %v5722_v43 = vld [vmem:[#allocation8 + $0x20] sm:$0xff] }
 0x749   :  { %2061 = vmatpush.msra.mxu3 %v6913_v51  ;;  %2127 = vmatpush.msra.mxu0 %v5709_v42  ;;  %6918 = vst [vmem:[#allocation56_spill] sm:$0xff] %v5719_v30  ;;  %v5725_v51 = vld [vmem:[#allocation8] sm:$0xff]  ;;  %v5728_v42 = vld [vmem:[#allocation4 + $0x150] sm:$0xff] }
 0x74a   :  { %2147 = vmatpush.msra.mxu1 %v5712_v32  ;;  %6919 = vst [vmem:[#allocation58_spill] sm:$0xff] %v5722_v43  ;;  %v6953_v32 = vld [vmem:[#allocation70_spill] sm:$0xff] }
 0x74b   :  { %2062 = vmatpush.msra.mxu3 %v6916_v26  ;;  %2128 = vmatpush.msra.mxu0 %v5716_v35  ;;  %6920 = vst [vmem:[#allocation59_spill] sm:$0xff] %v5725_v51  ;;  %v5731_v26 = vld [vmem:[#allocation8 + $0x8] sm:$0xff]  ;;  %v5734_v35 = vld [vmem:[#allocation4 + $0x170] sm:$0xff] }
 0x74c   :  { %2148 = vmatpush.msra.mxu1 %v5722_v43  ;;  %6921 = vst [vmem:[#allocation60_spill] sm:$0xff] %v5728_v42  ;;  %v5740_v43 = vld [vmem:[#allocation4 + $0x158] sm:$0xff] }
 0x74d   :  { %2177 = vmatpush.msrb.mxu3 %v5719_v30  ;;  %2129 = vmatpush.msra.mxu0 %v5725_v51  ;;  %6922 = vst [vmem:[#allocation62_spill] sm:$0xff] %v5731_v26  ;;  %v5737_v30 = vld [vmem:[#allocation4 + $0x138] sm:$0xff]  ;;  %v5743_v51 = vld [vmem:[#allocation4 + $0x120] sm:$0xff] }
 0x74e   :  { %2149 = vmatpush.msra.mxu1 %v5731_v26  ;;  %6923 = vst [vmem:[#allocation64_spill] sm:$0xff] %v5734_v35  ;;  %v5749_v26 = vld [vmem:[#allocation4 + $0x108] sm:$0xff] }
 0x74f   :  { %2178 = vmatpush.msrb.mxu3 %v5728_v42  ;;  %2197 = vmatpush.msrb.mxu0 %v5734_v35  ;;  %6924 = vst [vmem:[#allocation65_spill] sm:$0xff] %v5737_v30  ;;  %v5746_v42 = vld [vmem:[#allocation4 + $0x140] sm:$0xff]  ;;  %v5752_v35 = vld [vmem:[#allocation4 + $0x128] sm:$0xff] }
 0x750   :  { %6925 = vst [vmem:[#allocation66_spill] sm:$0xff] %v5740_v43 }
 0x751   :  { %2179 = vmatpush.msrb.mxu3 %v5737_v30  ;;  %2198 = vmatpush.msrb.mxu0 %v5740_v43  ;;  %6926 = vst [vmem:[#allocation68_spill] sm:$0xff] %v5743_v51  ;;  %v5755_v30 = vld [vmem:[#allocation4 + $0xf0] sm:$0xff] }
 0x752   :  { %6927 = vst [vmem:[#allocation77_spill] sm:$0xff] %v5746_v42  ;;  %v5758_v43 = vld [vmem:[#allocation4 + $0x110] sm:$0xff] }
 0x753   :  { %2180 = vmatpush.msrb.mxu3 %v5743_v51  ;;  %2199 = vmatpush.msrb.mxu0 %v5746_v42  ;;  %6928 = vst [vmem:[#allocation78_spill] sm:$0xff] %v5749_v26  ;;  %v5761_v51 = vld [vmem:[#allocation4 + $0xd8] sm:$0xff] }
 0x754   :  { %6929 = vst [vmem:[#allocation79_spill] sm:$0xff] %v5752_v35  ;;  %v5764_v42 = vld [vmem:[#allocation4 + $0xf8] sm:$0xff] }
 0x755   :  { %2181 = vmatpush.msrb.mxu3 %v5749_v26  ;;  %2200 = vmatpush.msrb.mxu0 %v5752_v35  ;;  %6930 = vst [vmem:[#allocation80_spill] sm:$0xff] %v5755_v30  ;;  %v5767_v26 = vld [vmem:[#allocation4 + $0xc0] sm:$0xff] }
 0x756   :  { %6931 = vst [vmem:[#allocation81_spill] sm:$0xff] %v5758_v43  ;;  %v5770_v35 = vld [vmem:[#allocation4 + $0xe0] sm:$0xff] }
 0x757   :  { %2182 = vmatpush.msrb.mxu3 %v5755_v30  ;;  %2201 = vmatpush.msrb.mxu0 %v5758_v43  ;;  %6932 = vst [vmem:[#allocation82_spill] sm:$0xff] %v5761_v51  ;;  %v5773_v30 = vld [vmem:[#allocation4 + $0xa8] sm:$0xff] }
 0x758   :  { %6933 = vst [vmem:[#allocation83_spill] sm:$0xff] %v5764_v42  ;;  %v5776_v43 = vld [vmem:[#allocation4 + $0xc8] sm:$0xff] }
 0x759   :  { %2183 = vmatpush.msrb.mxu3 %v5761_v51  ;;  %2202 = vmatpush.msrb.mxu0 %v5764_v42  ;;  %6934 = vst [vmem:[#allocation84_spill] sm:$0xff] %v5767_v26  ;;  %v5779_v51 = vld [vmem:[#allocation4 + $0x90] sm:$0xff] }
 0x75a   :  { %6935 = vst [vmem:[#allocation85_spill] sm:$0xff] %v5770_v35  ;;  %v5782_v42 = vld [vmem:[#allocation4 + $0xb0] sm:$0xff] }
 0x75b   :  { %2184 = vmatpush.msrb.mxu3 %v5767_v26  ;;  %2203 = vmatpush.msrb.mxu0 %v5770_v35  ;;  %6936 = vst [vmem:[#allocation86_spill] sm:$0xff] %v5773_v30  ;;  %v5785_v26 = vld [vmem:[#allocation4 + $0x78] sm:$0xff] }
 0x75c   :  { %6937 = vst [vmem:[#allocation87_spill] sm:$0xff] %v5776_v43  ;;  %v5788_v35 = vld [vmem:[#allocation4 + $0x98] sm:$0xff] }
 0x75d   :  { %2185 = vmatpush.msrb.mxu3 %v5773_v30  ;;  %2204 = vmatpush.msrb.mxu0 %v5776_v43  ;;  %6938 = vst [vmem:[#allocation88_spill] sm:$0xff] %v5779_v51  ;;  %v5791_v30 = vld [vmem:[#allocation4 + $0x60] sm:$0xff] }
 0x75e   :  { %6939 = vst [vmem:[#allocation89_spill] sm:$0xff] %v5782_v42  ;;  %v5794_v43 = vld [vmem:[#allocation4 + $0x80] sm:$0xff] }
 0x75f   :  { %2186 = vmatpush.msrb.mxu3 %v5779_v51  ;;  %2205 = vmatpush.msrb.mxu0 %v5782_v42  ;;  %6940 = vst [vmem:[#allocation90_spill] sm:$0xff] %v5785_v26  ;;  %v5797_v51 = vld [vmem:[#allocation4 + $0x48] sm:$0xff] }
 0x760   :  { %6941 = vst [vmem:[#allocation91_spill] sm:$0xff] %v5788_v35  ;;  %v5800_v42 = vld [vmem:[#allocation4 + $0x68] sm:$0xff] }
 0x761   :  { %2187 = vmatpush.msrb.mxu3 %v5785_v26  ;;  %2206 = vmatpush.msrb.mxu0 %v5788_v35  ;;  %6942 = vst [vmem:[#allocation92_spill] sm:$0xff] %v5791_v30  ;;  %v5803_v26 = vld [vmem:[#allocation4 + $0x30] sm:$0xff] }
 0x762   :  { %6943 = vst [vmem:[#allocation93_spill] sm:$0xff] %v5794_v43  ;;  %v5806_v35 = vld [vmem:[#allocation4 + $0x50] sm:$0xff] }
 0x763   :  { %2188 = vmatpush.msrb.mxu3 %v5791_v30  ;;  %2207 = vmatpush.msrb.mxu0 %v5794_v43  ;;  %6944 = vst [vmem:[#allocation94_spill] sm:$0xff] %v5797_v51  ;;  %v5809_v30 = vld [vmem:[#allocation4 + $0x18] sm:$0xff] }
 0x764   :  { %6945 = vst [vmem:[#allocation95_spill] sm:$0xff] %v5800_v42  ;;  %v5812_v43 = vld [vmem:[#allocation4 + $0x38] sm:$0xff] }
 0x765   :  { %2189 = vmatpush.msrb.mxu3 %v5797_v51  ;;  %2208 = vmatpush.msrb.mxu0 %v5800_v42  ;;  %6946 = vst [vmem:[#allocation96_spill] sm:$0xff] %v5803_v26  ;;  %v5815_v51 = vld [vmem:[#allocation4] sm:$0xff] }
 0x766   :  { %6947 = vst [vmem:[#allocation11_spill] sm:$0xff] %v5806_v35  ;;  %v5818_v42 = vld [vmem:[#allocation4 + $0x20] sm:$0xff] }
 0x767   :  { %2190 = vmatpush.msrb.mxu3 %v5803_v26  ;;  %2209 = vmatpush.msrb.mxu0 %v5806_v35  ;;  %6948 = vst [vmem:[#allocation40_spill] sm:$0xff] %v5809_v30  ;;  %v5821_v26 = vld [vmem:[#allocation4 + $0x8] sm:$0xff]  ;;  %v1917_v35 = vpop.f32.mrf.mxu2 }
 0x768   :  { %6949 = vst [vmem:[#allocation43_spill] sm:$0xff] %v5812_v43 }
 0x769   :  { %2191 = vmatpush.msrb.mxu3 %v5809_v30  ;;  %2210 = vmatpush.msrb.mxu0 %v5812_v43  ;;  %6950 = vst [vmem:[#allocation38_spill] sm:$0xff] %v5815_v51  ;;  %v178_v30 = vadd.f32 %v6954_v23, %v6953_v32 }
 0x76a   :  { %6951 = vst [vmem:[#allocation36_spill] sm:$0xff] %v5818_v42 }
 0x76b   :  { %2192 = vmatpush.msrb.mxu3 %v5815_v51  ;;  %2211 = vmatpush.msrb.mxu0 %v5818_v42  ;;  %6952 = vst [vmem:[#allocation39_spill] sm:$0xff] %v5821_v26  ;;  %v1960_v49 = vadd.f32 %v1917_v35, %v178_v30 }
 0x76d   :  { %2212 = vmatpush.msrb.mxu0 %v5821_v26  ;;  %v2763_v6 = vmul.f32 -1.442695, %v1960_v49 }
 0x76f   :  { %2884 = vpow2.f32 %v2763_v6 }
 0x775   :  { %v2885_v43 = vpop.eup %2884 }
 0x776   :  { %v1964_v38 = vadd.f32 1.0, %v2885_v43 }
 0x778   :  { %2886 = vrcp.f32 %v1964_v38  ;;  %v1976_v50 = vand.u32 2147483648, %v1964_v38  ;;  %vm1970_vm3 = vweird.f32 %v1964_v38  ;;  %v1974_v26 = vand.u32 2147483647, %v1964_v38 }
 0x77a   :  { %v1977_v6 = vor.u32 1.1754944e-38, %v1976_v50  ;;  %vm1975_vm5 = vcmp.eq.f32.partialorder %v1974_v26, 8.507059e+37 }
 0x77e   :  { %v2887_v62 = vpop.eup %2886 }
 0x77f   :  { %v1966_v51 = vmul.f32 %v2887_v62, %v1964_v38  ;;  %vm1971_vm2 = vweird.f32 %v2887_v62 }
 0x780   :  { %vm1972_vm4 = vmor %vm1970_vm3, %vm1971_vm2 }
 0x781   :  { %v1967_v19 = vsub.f32 1.0, %v1966_v51  ;;  %v6955_v51 = vld [vmem:[#allocation61_spill] sm:$0xff] }
 0x783   :  { %v1968_v11 = vmul.f32 %v2887_v62, %v1967_v19 }
 0x785   :  { %v1969_v42 = vadd.f32 %v2887_v62, %v1968_v11 }
 0x787   :  { %v1973_v23 = vsel %vm1972_vm4, %v2887_v62, %v1969_v42 }
 0x788   :  { %v1978_v30 = vsel %vm1975_vm5, %v1977_v6, %v1973_v23 }
 0x7a9   :  { %v5826_v52 = vpop.f32.mrf.mxu0 }
 0x7af   :  { %v5828_v55 = vpop.f32.mrf.mxu3 }
 0x7b1   :  { %v1957_v49 = vpop.f32.mrf.mxu0 }
 0x7b2   :  { %v2000_v43 = vadd.f32 %v5458_v47, %v1957_v49 }
 0x7b4   :  { %v2001_v35 = vmul.f32 %v2000_v43, %v1978_v30  ;;  %v5839_v30 = vld [vmem:[#allocation4 + $0x178] sm:$0xff] }
 0x7b6   :  { %v2002_v19 = vadd.f32 %v2001_v35, %v6955_v51  ;;  %v5854_v35 = vld [vmem:[#allocation4 + $0x130] sm:$0xff] }
 0x7b7   :  { %v1937_v32 = vpop.f32.mrf.mxu3 }
 0x7b8   :  { %v1980_v11 = vadd.f32 %v1937_v32, %v6956_v8 }
 0x7ba   :  { %v2764_v12 = vmul.f32 -1.442695, %v1980_v11  ;;  %v6957_v11 = vld [vmem:[#allocation18_spill] sm:$0xff] }
 0x7bc   :  { %2888 = vpow2.f32 %v2764_v12 }
 0x7c2   :  { %v2889_v15 = vpop.eup %2888 }
 0x7c3   :  { %v1984_v38 = vadd.f32 1.0, %v2889_v15 }
 0x7c5   :  { %2890 = vrcp.f32 %v1984_v38  ;;  %v1996_v50 = vand.u32 2147483648, %v1984_v38  ;;  %v1994_v47 = vand.u32 2147483647, %v1984_v38  ;;  %vm1990_vm7 = vweird.f32 %v1984_v38 }
 0x7c6   :  { %2892 = vtanh.f32 %v2002_v19 }
 0x7c7   :  { %v1997_v6 = vor.u32 1.1754944e-38, %v1996_v50  ;;  %vm1995_vm9 = vcmp.eq.f32.partialorder %v1994_v47, 8.507059e+37 }
 0x7cb   :  { %v2891_v44 = vpop.eup %2890 }
 0x7cc   :  { %v1986_v62 = vmul.f32 %v2891_v44, %v1984_v38  ;;  %vm1991_vm6 = vweird.f32 %v2891_v44  ;;  %v2893_v23 = vpop.eup %2892 }
 0x7cd   :  { %vm1992_vm8 = vmor %vm1990_vm7, %vm1991_vm6  ;;  %v2004_v8 = vsub.f32 %v5463_v61, %v2893_v23  ;;  %v5844_v61 = vld [vmem:[#allocation4 + $0x160] sm:$0xff] }
 0x7ce   :  { %v1987_v42 = vsub.f32 1.0, %v1986_v62 }
 0x7d0   :  { %v1988_v26 = vmul.f32 %v2891_v44, %v1987_v42 }
 0x7d2   :  { %v1989_v49 = vadd.f32 %v2891_v44, %v1988_v26 }
 0x7d4   :  { %v1993_v32 = vsel %vm1992_vm8, %v2891_v44, %v1989_v49  ;;  %v5849_v44 = vld [vmem:[#allocation4 + $0x148] sm:$0xff] }
 0x7d5   :  { %v1998_v12 = vsel %vm1995_vm9, %v1997_v6, %v1993_v32 }
 0x7d6   :  { %v2005_v15 = vmul.f32 %v2004_v8, %v1998_v12 }
 0x7d8   :  { %v5834_v43 = vadd.f32 %v2893_v23, %v2005_v15 }
 0x7da   :  { %2023 = vmatmul.f32.vlgmr.msrb.gmra.mxu1 %v5834_v43  ;;  %2043 = vmatmul.f32.vlgmr.msrb.gmra.mxu2 %v5834_v43 }
 0x7db   :  { %2063 = vmatmul.f32.vlgmr.msra.gmra.mxu3 %v5834_v43  ;;  %2217 = vmatpush.msrb.mxu1 %v5839_v30 }
 0x7dc   :  { %2284 = vmatpush.msrb.mxu2 %v5469_v14  ;;  %2304 = vmatpush.msra.mxu3 %v5472_v7  ;;  %v5860_v14 = vld [vmem:[#allocation4 + $0x118] sm:$0xff]  ;;  %v5865_v7 = vld [vmem:[#allocation4 + $0x100] sm:$0xff] }
 0x7dd   :  { %2218 = vmatpush.msrb.mxu1 %v5844_v61 }
 0x7de   :  { %2285 = vmatpush.msrb.mxu2 %v5476_v27  ;;  %2305 = vmatpush.msra.mxu3 %v5479_v1  ;;  %v5870_v27 = vld [vmem:[#allocation4 + $0xe8] sm:$0xff]  ;;  %v5875_v1 = vld [vmem:[#allocation4 + $0xd0] sm:$0xff] }
 0x7df   :  { %2219 = vmatpush.msrb.mxu1 %v5849_v44 }
 0x7e0   :  { %2286 = vmatpush.msrb.mxu2 %v5483_v37  ;;  %2306 = vmatpush.msra.mxu3 %v5486_v45  ;;  %v5880_v37 = vld [vmem:[#allocation4 + $0xb8] sm:$0xff]  ;;  %v5885_v45 = vld [vmem:[#allocation4 + $0xa0] sm:$0xff] }
 0x7e1   :  { %2220 = vmatpush.msrb.mxu1 %v5854_v35 }
 0x7e2   :  { %2287 = vmatpush.msrb.mxu2 %v5490_v22  ;;  %2307 = vmatpush.msra.mxu3 %v5493_v41  ;;  %v5890_v22 = vld [vmem:[#allocation4 + $0x88] sm:$0xff]  ;;  %v5895_v41 = vld [vmem:[#allocation4 + $0x70] sm:$0xff] }
 0x7e3   :  { %2193 = vmatmul.f32.vlgmr.msrb.gmra.mxu3 %v5834_v43  ;;  %2221 = vmatpush.msrb.mxu1 %v5860_v14 }
 0x7e4   :  { %2288 = vmatpush.msrb.mxu2 %v5498_v57  ;;  %2308 = vmatpush.msra.mxu3 %v5501_v21  ;;  %v5900_v57 = vld [vmem:[#allocation4 + $0x58] sm:$0xff]  ;;  %v5905_v21 = vld [vmem:[#allocation4 + $0x40] sm:$0xff] }
 0x7e5   :  { %2222 = vmatpush.msrb.mxu1 %v5865_v7 }
 0x7e6   :  { %2289 = vmatpush.msrb.mxu2 %v5505_v59  ;;  %2309 = vmatpush.msra.mxu3 %v5508_v18  ;;  %v5910_v59 = vld [vmem:[#allocation4 + $0x28] sm:$0xff]  ;;  %v5915_v18 = vld [vmem:[#allocation4 + $0x10] sm:$0xff] }
 0x7e7   :  { %2223 = vmatpush.msrb.mxu1 %v5870_v27 }
 0x7e8   :  { %2290 = vmatpush.msrb.mxu2 %v5512_v31  ;;  %2310 = vmatpush.msra.mxu3 %v5515_v20  ;;  %v3316_v31 = vld [vmem:[#allocation8 + $0x178] sm:$0xff]  ;;  %v3317_v20 = vld [vmem:[#allocation8 + $0x160] sm:$0xff] }
 0x7e9   :  { %2224 = vmatpush.msrb.mxu1 %v5875_v1 }
 0x7ea   :  { %2291 = vmatpush.msrb.mxu2 %v5519_v29  ;;  %2311 = vmatpush.msra.mxu3 %v5522_v4  ;;  %v3318_v29 = vld [vmem:[#allocation8 + $0x148] sm:$0xff]  ;;  %v3319_v4 = vld [vmem:[#allocation8 + $0x130] sm:$0xff] }
 0x7eb   :  { %2225 = vmatpush.msrb.mxu1 %v5880_v37 }
 0x7ec   :  { %2292 = vmatpush.msrb.mxu2 %v5526_v46  ;;  %2312 = vmatpush.msra.mxu3 %v5529_v9  ;;  %v3320_v46 = vld [vmem:[#allocation8 + $0x118] sm:$0xff]  ;;  %v3321_v9 = vld [vmem:[#allocation8 + $0x100] sm:$0xff] }
 0x7ed   :  { %2226 = vmatpush.msrb.mxu1 %v5885_v45 }
 0x7ee   :  { %2293 = vmatpush.msrb.mxu2 %v5533_v60  ;;  %2313 = vmatpush.msra.mxu3 %v5536_v17  ;;  %v3322_v60 = vld [vmem:[#allocation8 + $0xe8] sm:$0xff]  ;;  %v3323_v17 = vld [vmem:[#allocation8 + $0xd0] sm:$0xff] }
 0x7ef   :  { %2227 = vmatpush.msrb.mxu1 %v5890_v22 }
 0x7f0   :  { %2294 = vmatpush.msrb.mxu2 %v5540_v53  ;;  %2314 = vmatpush.msra.mxu3 %v5543_v0  ;;  %v3324_v53 = vld [vmem:[#allocation8 + $0xb8] sm:$0xff]  ;;  %v3325_v0 = vld [vmem:[#allocation8 + $0xa0] sm:$0xff] }
 0x7f1   :  { %2228 = vmatpush.msrb.mxu1 %v5895_v41 }
 0x7f2   :  { %2295 = vmatpush.msrb.mxu2 %v5547_v3  ;;  %2315 = vmatpush.msra.mxu3 %v5550_v28  ;;  %v3326_v3 = vld [vmem:[#allocation8 + $0x88] sm:$0xff]  ;;  %v3327_v28 = vld [vmem:[#allocation8 + $0x70] sm:$0xff] }
 0x7f3   :  { %2229 = vmatpush.msrb.mxu1 %v5900_v57 }
 0x7f4   :  { %2296 = vmatpush.msrb.mxu2 %v5554_v54  ;;  %2316 = vmatpush.msra.mxu3 %v5557_v5  ;;  %v3328_v54 = vld [vmem:[#allocation8 + $0x58] sm:$0xff]  ;;  %v3329_v5 = vld [vmem:[#allocation8 + $0x40] sm:$0xff] }
 0x7f5   :  { %2230 = vmatpush.msrb.mxu1 %v5905_v21 }
 0x7f6   :  { %2297 = vmatpush.msrb.mxu2 %v5561_v58  ;;  %2317 = vmatpush.msra.mxu3 %v5564_v13  ;;  %v3330_v58 = vld [vmem:[#allocation8 + $0x28] sm:$0xff]  ;;  %v3331_v13 = vld [vmem:[#allocation8 + $0x10] sm:$0xff] }
 0x7f7   :  { %2231 = vmatpush.msrb.mxu1 %v5910_v59 }
 0x7f8   :  { %2298 = vmatpush.msrb.mxu2 %v5568_v36  ;;  %2318 = vmatpush.msra.mxu3 %v5571_v24  ;;  %v1894_v36 = vpop.f32.mrf.mxu1 }
 0x7f9   :  { %2232 = vmatpush.msrb.mxu1 %v5915_v18 }
 0x7fa   :  { %2299 = vmatpush.msrb.mxu2 %v5575_v33  ;;  %2319 = vmatpush.msra.mxu3 %v5578_v16 }
 0x7fc   :  { %2431 = vmatpush.msrb.mxu3 %v3316_v31 }
 0x7fe   :  { %2432 = vmatpush.msrb.mxu3 %v3317_v20 }
 0x800   :  { %2433 = vmatpush.msrb.mxu3 %v3318_v29 }
 0x802   :  { %2434 = vmatpush.msrb.mxu3 %v3319_v4  ;;  %v2107_v4 = vadd.f32 %v5604_v56, %v1894_v36 }
 0x804   :  { %2435 = vmatpush.msrb.mxu3 %v3320_v46 }
 0x806   :  { %2436 = vmatpush.msrb.mxu3 %v3321_v9 }
 0x808   :  { %2437 = vmatpush.msrb.mxu3 %v3322_v60 }
 0x80a   :  { %2438 = vmatpush.msrb.mxu3 %v3323_v17 }
 0x80c   :  { %2439 = vmatpush.msrb.mxu3 %v3324_v53 }
 0x80e   :  { %2440 = vmatpush.msrb.mxu3 %v3325_v0 }
 0x810   :  { %2441 = vmatpush.msrb.mxu3 %v3326_v3 }
 0x812   :  { %2442 = vmatpush.msrb.mxu3 %v3327_v28 }
 0x814   :  { %2443 = vmatpush.msrb.mxu3 %v3328_v54 }
 0x816   :  { %2444 = vmatpush.msrb.mxu3 %v3329_v5 }
 0x818   :  { %2445 = vmatpush.msrb.mxu3 %v3330_v58 }
 0x81a   :  { %2446 = vmatpush.msrb.mxu3 %v3331_v13 }
 0x857   :  { %v2024_v24 = vpop.f32.mrf.mxu1 }
 0x858   :  { %v2025_v33 = vadd.f32 %v2024_v24, %v6805_v10 }
 0x85a   :  { %v2067_v16 = vadd.f32 %v2025_v33, %v5828_v55 }
 0x85c   :  { %v2765_v51 = vmul.f32 -1.442695, %v2067_v16 }
 0x85d   :  { %v2044_v19 = vpop.f32.mrf.mxu2 }
 0x85e   :  { %2894 = vpow2.f32 %v2765_v51  ;;  %v2045_v38 = vadd.f32 %v2044_v19, %v6957_v11  ;;  %v5932_v19 = vld [vmem:[#allocation6 + $0x178] sm:$0xff] }
 0x860   :  { %v2087_v62 = vadd.f32 %v2045_v38, %v5826_v52  ;;  %v2064_v52 = vpop.f32.mrf.mxu3  ;;  %v5942_v38 = vld [vmem:[#allocation6 + $0x148] sm:$0xff] }
 0x861   :  { %v2065_v17 = vadd.f32 %v2064_v52, %v4311_v2  ;;  %v5982_v52 = vld [vmem:[#allocation6 + $0x88] sm:$0xff] }
 0x862   :  { %v2766_v42 = vmul.f32 -1.442695, %v2087_v62  ;;  %v6958_v62 = vld [vmem:[#allocation28_spill] sm:$0xff] }
 0x864   :  { %v2895_v50 = vpop.eup %2894  ;;  %2896 = vpow2.f32 %v2766_v42  ;;  %v5947_v42 = vld [vmem:[#allocation6 + $0x130] sm:$0xff] }
 0x865   :  { %v2071_v26 = vadd.f32 1.0, %v2895_v50  ;;  %v6962_v50 = vld [vmem:[#allocation73_spill] sm:$0xff] }
 0x867   :  { %2898 = vrcp.f32 %v2071_v26  ;;  %v2083_v32 = vand.u32 2147483648, %v2071_v26  ;;  %v2081_v12 = vand.u32 2147483647, %v2071_v26  ;;  %vm2077_vm11 = vweird.f32 %v2071_v26 }
 0x869   :  { %v2084_v29 = vor.u32 1.1754944e-38, %v2083_v32  ;;  %vm2082_vm13 = vcmp.eq.f32.partialorder %v2081_v12, 8.507059e+37  ;;  %v5972_v32 = vld [vmem:[#allocation6 + $0xb8] sm:$0xff]  ;;  %v6968_v12 = vld [vmem:[#allocation35_spill] sm:$0xff] }
 0x86a   :  { %v2897_v47 = vpop.eup %2896 }
 0x86b   :  { %v2091_v23 = vadd.f32 1.0, %v2897_v47  ;;  %v6963_v47 = vld [vmem:[#allocation31_spill] sm:$0xff] }
 0x86d   :  { %v2899_v49 = vpop.eup %2898  ;;  %2900 = vrcp.f32 %v2091_v23  ;;  %v2103_v54 = vand.u32 2147483648, %v2091_v23  ;;  %vm2097_vm15 = vweird.f32 %v2091_v23  ;;  %v2101_v5 = vand.u32 2147483647, %v2091_v23 }
 0x86e   :  { %v2073_v6 = vmul.f32 %v2899_v49, %v2071_v26  ;;  %vm2078_vm10 = vweird.f32 %v2899_v49  ;;  %v5962_v26 = vld [vmem:[#allocation6 + $0xe8] sm:$0xff] }
 0x86f   :  { %vm2079_vm12 = vmor %vm2077_vm11, %vm2078_vm10  ;;  %v2104_v24 = vor.u32 1.1754944e-38, %v2103_v54  ;;  %vm2102_vm1 = vcmp.eq.f32.partialorder %v2101_v5, 8.507059e+37  ;;  %v6978_v54 = vld [vmem:[#allocation50_spill] sm:$0xff]  ;;  %v6002_v5 = vld [vmem:[#allocation6 + $0x28] sm:$0xff] }
 0x870   :  { %v2074_v8 = vsub.f32 1.0, %v2073_v6  ;;  %v6965_v6 = vld [vmem:[#allocation32_spill] sm:$0xff] }
 0x872   :  { %v2075_v55 = vmul.f32 %v2899_v49, %v2074_v8  ;;  %v6966_v8 = vld [vmem:[#allocation33_spill] sm:$0xff] }
 0x873   :  { %v2901_v15 = vpop.eup %2900 }
 0x874   :  { %v2093_v31 = vmul.f32 %v2901_v15, %v2091_v23  ;;  %v2076_v20 = vadd.f32 %v2899_v49, %v2075_v55  ;;  %vm2098_vm14 = vweird.f32 %v2901_v15  ;;  %v6964_v23 = vld [vmem:[#allocation74_spill] sm:$0xff] }
 0x875   :  { %vm2099_vm0 = vmor %vm2097_vm15, %vm2098_vm14  ;;  %v6967_v55 = vld [vmem:[#allocation34_spill] sm:$0xff] }
 0x876   :  { %v2094_v46 = vsub.f32 1.0, %v2093_v31  ;;  %v2080_v9 = vsel %vm2079_vm12, %v2899_v49, %v2076_v20  ;;  %v5967_v49 = vld [vmem:[#allocation6 + $0xd0] sm:$0xff] }
 0x877   :  { %v2085_v60 = vsel %vm2082_vm13, %v2084_v29, %v2080_v9  ;;  %v6969_v31 = vld [vmem:[#allocation37_spill] sm:$0xff]  ;;  %v6971_v29 = vld [vmem:[#allocation42_spill] sm:$0xff]  ;;  %v6973_v9 = vld [vmem:[#allocation75_spill] sm:$0xff] }
 0x878   :  { %v2108_v53 = vmul.f32 %v2107_v4, %v2085_v60  ;;  %v2095_v0 = vmul.f32 %v2901_v15, %v2094_v46  ;;  %v6970_v20 = vld [vmem:[#allocation41_spill] sm:$0xff]  ;;  %v6974_v60 = vld [vmem:[#allocation76_spill] sm:$0xff] }
 0x879   :  { %v6972_v4 = vld [vmem:[#allocation45_spill] sm:$0xff] }
 0x87a   :  { %v2109_v3 = vadd.f32 %v2108_v53, %v2065_v17  ;;  %v2096_v28 = vadd.f32 %v2901_v15, %v2095_v0  ;;  %v5987_v46 = vld [vmem:[#allocation6 + $0x70] sm:$0xff]  ;;  %v5992_v17 = vld [vmem:[#allocation6 + $0x58] sm:$0xff]  ;;  %v6976_v0 = vld [vmem:[#allocation47_spill] sm:$0xff] }
 0x87b   :  { %v6975_v53 = vld [vmem:[#allocation46_spill] sm:$0xff] }
 0x87c   :  { %2902 = vtanh.f32 %v2109_v3  ;;  %v2100_v58 = vsel %vm2099_vm0, %v2901_v15, %v2096_v28  ;;  %v5977_v15 = vld [vmem:[#allocation6 + $0xa0] sm:$0xff]  ;;  %v6977_v28 = vld [vmem:[#allocation48_spill] sm:$0xff] }
 0x87d   :  { %v2105_v33 = vsel %vm2102_vm1, %v2104_v24, %v2100_v58  ;;  %v5997_v3 = vld [vmem:[#allocation6 + $0x40] sm:$0xff]  ;;  %v6979_v58 = vld [vmem:[#allocation52_spill] sm:$0xff]  ;;  %v6007_v24 = vld [vmem:[#allocation6 + $0x10] sm:$0xff] }
 0x882   :  { %v2903_v13 = vpop.eup %2902 }
 0x883   :  { %v2111_v36 = vsub.f32 %v5609_v63, %v2903_v13  ;;  %v5937_v63 = vld [vmem:[#allocation6 + $0x160] sm:$0xff] }
 0x885   :  { %v2112_v16 = vmul.f32 %v2111_v36, %v2105_v33  ;;  %v6981_v36 = vld [vmem:[#allocation54_spill] sm:$0xff]  ;;  %v6982_v33 = vld [vmem:[#allocation56_spill] sm:$0xff] }
 0x887   :  { %v5927_v51 = vadd.f32 %v2903_v13, %v2112_v16  ;;  %v6980_v13 = vld [vmem:[#allocation53_spill] sm:$0xff]  ;;  %v6983_v16 = vld [vmem:[#allocation58_spill] sm:$0xff] }
 0x889   :  { %2130 = vmatmul.f32.vlgmr.msra.gmra.mxu0 %v5927_v51  ;;  %2150 = vmatmul.f32.vlgmr.msra.gmra.mxu1 %v5927_v51 }
 0x88a   :  { %2170 = vmatmul.f32.vlgmr.msra.gmra.mxu2 %v5927_v51  ;;  %2324 = vmatpush.msra.mxu0 %v5932_v19 }
 0x88b   :  { %2391 = vmatpush.msra.mxu1 %v5615_v40  ;;  %2411 = vmatpush.msra.mxu2 %v5618_v34  ;;  %v5952_v40 = vld [vmem:[#allocation6 + $0x118] sm:$0xff]  ;;  %v6959_v34 = vld [vmem:[#allocation29_spill] sm:$0xff] }
 0x88c   :  { %2325 = vmatpush.msra.mxu0 %v5937_v63 }
 0x88d   :  { %2392 = vmatpush.msra.mxu1 %v5622_v25  ;;  %2412 = vmatpush.msra.mxu2 %v5625_v48  ;;  %v6960_v25 = vld [vmem:[#allocation72_spill] sm:$0xff]  ;;  %v5957_v48 = vld [vmem:[#allocation6 + $0x100] sm:$0xff] }
 0x88e   :  { %2326 = vmatpush.msra.mxu0 %v5942_v38 }
 0x88f   :  { %2393 = vmatpush.msra.mxu1 %v5629_v39  ;;  %2413 = vmatpush.msra.mxu2 %v6958_v62  ;;  %v6961_v39 = vld [vmem:[#allocation30_spill] sm:$0xff]  ;;  %v6984_v62 = vld [vmem:[#allocation59_spill] sm:$0xff] }
 0x890   :  { %2327 = vmatpush.msra.mxu0 %v5947_v42 }
 0x891   :  { %2213 = vmatmul.f32.vlgmr.msrb.gmra.mxu0 %v5834_v43  ;;  %2233 = vmatmul.f32.vlgmr.msrb.gmra.mxu1 %v5834_v43 }
 0x892   :  { %2328 = vmatpush.msra.mxu0 %v5952_v40  ;;  %2394 = vmatpush.msra.mxu1 %v6959_v34  ;;  %v6985_v34 = vld [vmem:[#allocation60_spill] sm:$0xff] }
 0x893   :  { %2414 = vmatpush.msra.mxu2 %v6960_v25  ;;  %v6986_v25 = vld [vmem:[#allocation62_spill] sm:$0xff] }
 0x894   :  { %2329 = vmatpush.msra.mxu0 %v5957_v48  ;;  %2395 = vmatpush.msra.mxu1 %v6961_v39  ;;  %v6987_v39 = vld [vmem:[#allocation64_spill] sm:$0xff] }
 0x895   :  { %2415 = vmatpush.msra.mxu2 %v6962_v50  ;;  %v6988_v50 = vld [vmem:[#allocation65_spill] sm:$0xff] }
 0x896   :  { %2330 = vmatpush.msra.mxu0 %v5962_v26  ;;  %2396 = vmatpush.msra.mxu1 %v6963_v47  ;;  %v6989_v47 = vld [vmem:[#allocation66_spill] sm:$0xff] }
 0x897   :  { %2416 = vmatpush.msra.mxu2 %v6964_v23  ;;  %v6990_v23 = vld [vmem:[#allocation68_spill] sm:$0xff] }
 0x898   :  { %2331 = vmatpush.msra.mxu0 %v5967_v49  ;;  %2397 = vmatpush.msra.mxu1 %v6965_v6  ;;  %v6991_v6 = vld [vmem:[#allocation77_spill] sm:$0xff] }
 0x899   :  { %2417 = vmatpush.msra.mxu2 %v6966_v8  ;;  %v6992_v8 = vld [vmem:[#allocation78_spill] sm:$0xff] }
 0x89a   :  { %2332 = vmatpush.msra.mxu0 %v5972_v32  ;;  %2398 = vmatpush.msra.mxu1 %v6967_v55  ;;  %v6993_v55 = vld [vmem:[#allocation79_spill] sm:$0xff] }
 0x89b   :  { %2418 = vmatpush.msra.mxu2 %v6968_v12  ;;  %v6994_v12 = vld [vmem:[#allocation80_spill] sm:$0xff] }
 0x89c   :  { %2333 = vmatpush.msra.mxu0 %v5977_v15  ;;  %2399 = vmatpush.msra.mxu1 %v6969_v31  ;;  %v6995_v31 = vld [vmem:[#allocation81_spill] sm:$0xff] }
 0x89d   :  { %2419 = vmatpush.msra.mxu2 %v6970_v20  ;;  %v6996_v20 = vld [vmem:[#allocation82_spill] sm:$0xff] }
 0x89e   :  { %2334 = vmatpush.msra.mxu0 %v5982_v52  ;;  %2400 = vmatpush.msra.mxu1 %v6971_v29  ;;  %v6997_v29 = vld [vmem:[#allocation83_spill] sm:$0xff] }
 0x89f   :  { %2420 = vmatpush.msra.mxu2 %v6972_v4  ;;  %v6998_v4 = vld [vmem:[#allocation84_spill] sm:$0xff] }
 0x8a0   :  { %2335 = vmatpush.msra.mxu0 %v5987_v46  ;;  %2401 = vmatpush.msra.mxu1 %v6973_v9  ;;  %v6999_v9 = vld [vmem:[#allocation85_spill] sm:$0xff] }
 0x8a1   :  { %2421 = vmatpush.msra.mxu2 %v6974_v60  ;;  %v7000_v60 = vld [vmem:[#allocation86_spill] sm:$0xff] }
 0x8a2   :  { %2336 = vmatpush.msra.mxu0 %v5992_v17  ;;  %2402 = vmatpush.msra.mxu1 %v6975_v53  ;;  %v7001_v53 = vld [vmem:[#allocation87_spill] sm:$0xff] }
 0x8a3   :  { %2422 = vmatpush.msra.mxu2 %v6976_v0  ;;  %v7002_v0 = vld [vmem:[#allocation88_spill] sm:$0xff] }
 0x8a4   :  { %2337 = vmatpush.msra.mxu0 %v5997_v3  ;;  %2403 = vmatpush.msra.mxu1 %v6977_v28  ;;  %v7003_v28 = vld [vmem:[#allocation89_spill] sm:$0xff] }
 0x8a5   :  { %2423 = vmatpush.msra.mxu2 %v6978_v54  ;;  %v7004_v54 = vld [vmem:[#allocation90_spill] sm:$0xff] }
 0x8a6   :  { %2338 = vmatpush.msra.mxu0 %v6002_v5  ;;  %2404 = vmatpush.msra.mxu1 %v6979_v58  ;;  %v7005_v58 = vld [vmem:[#allocation91_spill] sm:$0xff] }
 0x8a7   :  { %2424 = vmatpush.msra.mxu2 %v6980_v13  ;;  %v7006_v13 = vld [vmem:[#allocation92_spill] sm:$0xff] }
 0x8a8   :  { %2339 = vmatpush.msra.mxu0 %v6007_v24  ;;  %2405 = vmatpush.msra.mxu1 %v6981_v36  ;;  %v7007_v36 = vld [vmem:[#allocation93_spill] sm:$0xff] }
 0x8a9   :  { %2425 = vmatpush.msra.mxu2 %v6983_v16  ;;  %v7009_v16 = vld [vmem:[#allocation95_spill] sm:$0xff] }
 0x8aa   :  { %2454 = vmatpush.msrb.mxu0 %v6982_v33  ;;  %2406 = vmatpush.msra.mxu1 %v6984_v62  ;;  %v7008_v33 = vld [vmem:[#allocation94_spill] sm:$0xff]  ;;  %v7010_v62 = vld [vmem:[#allocation96_spill] sm:$0xff] }
 0x8ab   :  { %2426 = vmatpush.msra.mxu2 %v6986_v25  ;;  %v7012_v25 = vld [vmem:[#allocation40_spill] sm:$0xff] }
 0x8ac   :  { %2455 = vmatpush.msrb.mxu0 %v6985_v34  ;;  %2474 = vmatpush.msrb.mxu1 %v6987_v39  ;;  %v7011_v34 = vld [vmem:[#allocation11_spill] sm:$0xff] }
 0x8ad   :  { %v7013_v39 = vld [vmem:[#allocation43_spill] sm:$0xff] }
 0x8ae   :  { %2456 = vmatpush.msrb.mxu0 %v6988_v50  ;;  %2475 = vmatpush.msrb.mxu1 %v6989_v47  ;;  %v7014_v50 = vld [vmem:[#allocation38_spill] sm:$0xff]  ;;  %v7015_v47 = vld [vmem:[#allocation36_spill] sm:$0xff] }
 0x8b0   :  { %2457 = vmatpush.msrb.mxu0 %v6990_v23  ;;  %2476 = vmatpush.msrb.mxu1 %v6991_v6  ;;  %v7016_v23 = vld [vmem:[#allocation39_spill] sm:$0xff]  ;;  %v2194_v6 = vpop.f32.mrf.mxu3 }
 0x8b2   :  { %2458 = vmatpush.msrb.mxu0 %v6992_v8  ;;  %2477 = vmatpush.msrb.mxu1 %v6993_v55  ;;  %v7017_v8 = vld [vmem:[#allocation70_spill] sm:$0xff]  ;;  %v7018_v55 = vld [vmem:[#allocation15_spill] sm:$0xff] }
 0x8b4   :  { %2459 = vmatpush.msrb.mxu0 %v6994_v12  ;;  %2478 = vmatpush.msrb.mxu1 %v6995_v31  ;;  %v181_v12 = vadd.f32 %v7018_v55, %v7017_v8 }
 0x8b6   :  { %2460 = vmatpush.msrb.mxu0 %v6996_v20  ;;  %2479 = vmatpush.msrb.mxu1 %v6997_v29  ;;  %v2237_v31 = vadd.f32 %v2194_v6, %v181_v12  ;;  %v7020_v12 = vld [vmem:[#allocation67_spill] sm:$0xff] }
 0x8b8   :  { %2461 = vmatpush.msrb.mxu0 %v6998_v4  ;;  %2480 = vmatpush.msrb.mxu1 %v6999_v9  ;;  %v2767_v20 = vmul.f32 -1.442695, %v2237_v31 }
 0x8ba   :  { %2462 = vmatpush.msrb.mxu0 %v7000_v60  ;;  %2481 = vmatpush.msrb.mxu1 %v7001_v53  ;;  %2904 = vpow2.f32 %v2767_v20 }
 0x8bc   :  { %2463 = vmatpush.msrb.mxu0 %v7002_v0  ;;  %2482 = vmatpush.msrb.mxu1 %v7003_v28 }
 0x8be   :  { %2464 = vmatpush.msrb.mxu0 %v7004_v54  ;;  %2483 = vmatpush.msrb.mxu1 %v7005_v58 }
 0x8c0   :  { %2465 = vmatpush.msrb.mxu0 %v7006_v13  ;;  %2484 = vmatpush.msrb.mxu1 %v7007_v36  ;;  %v2905_v29 = vpop.eup %2904 }
 0x8c1   :  { %v2241_v4 = vadd.f32 1.0, %v2905_v29 }
 0x8c2   :  { %2466 = vmatpush.msrb.mxu0 %v7008_v33  ;;  %2485 = vmatpush.msrb.mxu1 %v7009_v16 }
 0x8c3   :  { %2906 = vrcp.f32 %v2241_v4  ;;  %v2253_v13 = vand.u32 2147483648, %v2241_v4  ;;  %vm2247_vm3 = vweird.f32 %v2241_v4  ;;  %v2251_v36 = vand.u32 2147483647, %v2241_v4 }
 0x8c4   :  { %2467 = vmatpush.msrb.mxu0 %v7010_v62  ;;  %2486 = vmatpush.msrb.mxu1 %v7011_v34 }
 0x8c5   :  { %v2254_v34 = vor.u32 1.1754944e-38, %v2253_v13  ;;  %vm2252_vm5 = vcmp.eq.f32.partialorder %v2251_v36, 8.507059e+37 }
 0x8c6   :  { %2468 = vmatpush.msrb.mxu0 %v7012_v25  ;;  %2487 = vmatpush.msrb.mxu1 %v7013_v39  ;;  %v7019_v25 = vld [vmem:[#allocation63_spill] sm:$0xff] }
 0x8c8   :  { %2469 = vmatpush.msrb.mxu0 %v7014_v50  ;;  %2488 = vmatpush.msrb.mxu1 %v7015_v47  ;;  %v6056_v50 = vld [vmem:[%s6187_s4] ss:$0 sm:$0xff] }
 0x8c9   :  { %v2907_v9 = vpop.eup %2906 }
 0x8ca   :  { %2489 = vmatpush.msrb.mxu1 %v7016_v23  ;;  %v2243_v60 = vmul.f32 %v2907_v9, %v2241_v4  ;;  %vm2248_vm2 = vweird.f32 %v2907_v9 }
 0x8cb   :  { %vm2249_vm4 = vmor %vm2247_vm3, %vm2248_vm2 }
 0x8cc   :  { %v2244_v53 = vsub.f32 1.0, %v2243_v60 }
 0x8ce   :  { %v2245_v0 = vmul.f32 %v2907_v9, %v2244_v53 }
 0x8d0   :  { %v2246_v58 = vadd.f32 %v2907_v9, %v2245_v0 }
 0x8d2   :  { %v2250_v33 = vsel %vm2249_vm4, %v2907_v9, %v2246_v58 }
 0x8d3   :  { %v2255_v23 = vsel %vm2252_vm5, %v2254_v34, %v2250_v33 }
 0x906   :  { %v6048_v28 = vpop.f32.mrf.mxu0  ;;  %v6050_v54 = vpop.f32.mrf.mxu1 }
 0x90e   :  { %v2214_v16 = vpop.f32.mrf.mxu0  ;;  %v2234_v62 = vpop.f32.mrf.mxu1 }
 0x90f   :  { %v2257_v39 = vadd.f32 %v2214_v16, %v7019_v25  ;;  %v2277_v47 = vadd.f32 %v6056_v50, %v2234_v62 }
 0x911   :  { %v2768_v6 = vmul.f32 -1.442695, %v2257_v39  ;;  %v2278_v55 = vmul.f32 %v2277_v47, %v2255_v23  ;;  %v3349_v47 = vld [vmem:[#allocation6 + $0x168] sm:$0xff]  ;;  %v3350_v23 = vld [vmem:[#allocation6 + $0x170] sm:$0xff] }
 0x913   :  { %2908 = vpow2.f32 %v2768_v6  ;;  %v2279_v31 = vadd.f32 %v2278_v55, %v7020_v12  ;;  %v3351_v6 = vld [vmem:[#allocation6 + $0x150] sm:$0xff]  ;;  %v3353_v55 = vld [vmem:[#allocation6 + $0x138] sm:$0xff]  ;;  %v3354_v12 = vld [vmem:[#allocation6 + $0x140] sm:$0xff] }
 0x919   :  { %v2909_v20 = vpop.eup %2908 }
 0x91a   :  { %v2261_v29 = vadd.f32 1.0, %v2909_v20  ;;  %v3358_v20 = vld [vmem:[#allocation6 + $0x110] sm:$0xff] }
 0x91c   :  { %2910 = vrcp.f32 %v2261_v29  ;;  %v2273_v53 = vand.u32 2147483648, %v2261_v29  ;;  %v2271_v58 = vand.u32 2147483647, %v2261_v29  ;;  %vm2267_vm7 = vweird.f32 %v2261_v29 }
 0x91d   :  { %2912 = vtanh.f32 %v2279_v31  ;;  %v3355_v31 = vld [vmem:[#allocation6 + $0x120] sm:$0xff] }
 0x91e   :  { %v2274_v33 = vor.u32 1.1754944e-38, %v2273_v53  ;;  %vm2272_vm9 = vcmp.eq.f32.partialorder %v2271_v58, 8.507059e+37  ;;  %v3367_v53 = vld [vmem:[#allocation6 + $0x90] sm:$0xff]  ;;  %v3371_v58 = vld [vmem:[#allocation6 + $0x60] sm:$0xff] }
 0x922   :  { %v2911_v4 = vpop.eup %2910 }
 0x923   :  { %v2263_v9 = vmul.f32 %v2911_v4, %v2261_v29  ;;  %vm2268_vm6 = vweird.f32 %v2911_v4  ;;  %v2913_v13 = vpop.eup %2912  ;;  %v3360_v29 = vld [vmem:[#allocation6 + $0xf8] sm:$0xff] }
 0x924   :  { %vm2269_vm8 = vmor %vm2267_vm7, %vm2268_vm6  ;;  %v2281_v62 = vsub.f32 %v5834_v43, %v2913_v13  ;;  %v3352_v43 = vld [vmem:[#allocation6 + $0x158] sm:$0xff] }
 0x925   :  { %v2264_v60 = vsub.f32 1.0, %v2263_v9  ;;  %v3363_v9 = vld [vmem:[#allocation6 + $0xc0] sm:$0xff] }
 0x927   :  { %v2265_v0 = vmul.f32 %v2911_v4, %v2264_v60  ;;  %v3365_v60 = vld [vmem:[#allocation6 + $0xa8] sm:$0xff] }
 0x929   :  { %v2266_v36 = vadd.f32 %v2911_v4, %v2265_v0  ;;  %v3369_v0 = vld [vmem:[#allocation6 + $0x78] sm:$0xff] }
 0x92b   :  { %v2270_v16 = vsel %vm2269_vm8, %v2911_v4, %v2266_v36  ;;  %v3362_v4 = vld [vmem:[#allocation6 + $0xe0] sm:$0xff]  ;;  %v3375_v36 = vld [vmem:[#allocation6 + $0x30] sm:$0xff] }
 0x92c   :  { %v2275_v34 = vsel %vm2272_vm9, %v2274_v33, %v2270_v16  ;;  %v3377_v33 = vld [vmem:[#allocation6 + $0x18] sm:$0xff]  ;;  %v3379_v16 = vld [vmem:[#allocation6] sm:$0xff] }
 0x92d   :  { %v2282_v25 = vmul.f32 %v2281_v62, %v2275_v34  ;;  %v2171_v62 = vpop.f32.mrf.mxu2 }
 0x92f   :  { %v6061_v39 = vadd.f32 %v2913_v13, %v2282_v25  ;;  %v3373_v13 = vld [vmem:[#allocation6 + $0x48] sm:$0xff] }
 0x931   :  { %2300 = vmatmul.f32.vlgmr.msrb.gmra.mxu2 %v6061_v39  ;;  %2320 = vmatmul.f32.vlgmr.msra.gmra.mxu3 %v6061_v39 }
 0x932   :  { %2340 = vmatmul.f32.vlgmr.msra.gmra.mxu0 %v6061_v39  ;;  %2494 = vmatpush.msrb.mxu2 %v5839_v30  ;;  %v3356_v30 = vld [vmem:[#allocation6 + $0x128] sm:$0xff] }
 0x933   :  { %2561 = vmatpush.msra.mxu3 %v3349_v47  ;;  %2581 = vmatpush.msra.mxu0 %v3350_v23 }
 0x934   :  { %2495 = vmatpush.msrb.mxu2 %v5844_v61  ;;  %v3357_v61 = vld [vmem:[#allocation6 + $0x108] sm:$0xff] }
 0x935   :  { %2562 = vmatpush.msra.mxu3 %v3351_v6  ;;  %2582 = vmatpush.msra.mxu0 %v3352_v43 }
 0x936   :  { %2496 = vmatpush.msrb.mxu2 %v5849_v44  ;;  %v3359_v44 = vld [vmem:[#allocation6 + $0xf0] sm:$0xff] }
 0x937   :  { %2563 = vmatpush.msra.mxu3 %v3353_v55  ;;  %2583 = vmatpush.msra.mxu0 %v3354_v12 }
 0x938   :  { %2497 = vmatpush.msrb.mxu2 %v5854_v35  ;;  %v3361_v35 = vld [vmem:[#allocation6 + $0xd8] sm:$0xff] }
 0x939   :  { %2564 = vmatpush.msra.mxu3 %v3355_v31  ;;  %2584 = vmatpush.msra.mxu0 %v3356_v30 }
 0x93a   :  { %2470 = vmatmul.f32.vlgmr.msrb.gmra.mxu0 %v6061_v39  ;;  %2498 = vmatpush.msrb.mxu2 %v5860_v14  ;;  %v3364_v14 = vld [vmem:[#allocation6 + $0xc8] sm:$0xff] }
 0x93b   :  { %2565 = vmatpush.msra.mxu3 %v3357_v61  ;;  %2585 = vmatpush.msra.mxu0 %v3358_v20 }
 0x93c   :  { %2499 = vmatpush.msrb.mxu2 %v5865_v7  ;;  %v3366_v7 = vld [vmem:[#allocation6 + $0xb0] sm:$0xff] }
 0x93d   :  { %2566 = vmatpush.msra.mxu3 %v3359_v44  ;;  %2586 = vmatpush.msra.mxu0 %v3360_v29 }
 0x93e   :  { %2500 = vmatpush.msrb.mxu2 %v5870_v27  ;;  %v3368_v27 = vld [vmem:[#allocation6 + $0x98] sm:$0xff] }
 0x93f   :  { %2567 = vmatpush.msra.mxu3 %v3361_v35  ;;  %2587 = vmatpush.msra.mxu0 %v3362_v4 }
 0x940   :  { %2501 = vmatpush.msrb.mxu2 %v5875_v1  ;;  %v3370_v1 = vld [vmem:[#allocation6 + $0x80] sm:$0xff] }
 0x941   :  { %2568 = vmatpush.msra.mxu3 %v3363_v9  ;;  %2588 = vmatpush.msra.mxu0 %v3364_v14 }
 0x942   :  { %2502 = vmatpush.msrb.mxu2 %v5880_v37  ;;  %v3372_v37 = vld [vmem:[#allocation6 + $0x68] sm:$0xff] }
 0x943   :  { %2569 = vmatpush.msra.mxu3 %v3365_v60  ;;  %2589 = vmatpush.msra.mxu0 %v3366_v7  ;;  %v2384_v7 = vadd.f32 %v5604_v56, %v2171_v62 }
 0x944   :  { %2503 = vmatpush.msrb.mxu2 %v5885_v45  ;;  %v3374_v45 = vld [vmem:[#allocation6 + $0x50] sm:$0xff] }
 0x945   :  { %2570 = vmatpush.msra.mxu3 %v3367_v53  ;;  %2590 = vmatpush.msra.mxu0 %v3368_v27 }
 0x946   :  { %2504 = vmatpush.msrb.mxu2 %v5890_v22  ;;  %v3376_v22 = vld [vmem:[#allocation6 + $0x38] sm:$0xff] }
 0x947   :  { %2571 = vmatpush.msra.mxu3 %v3369_v0  ;;  %2591 = vmatpush.msra.mxu0 %v3370_v1 }
 0x948   :  { %2505 = vmatpush.msrb.mxu2 %v5895_v41  ;;  %v3378_v41 = vld [vmem:[#allocation6 + $0x20] sm:$0xff] }
 0x949   :  { %2572 = vmatpush.msra.mxu3 %v3371_v58  ;;  %2592 = vmatpush.msra.mxu0 %v3372_v37 }
 0x94a   :  { %2506 = vmatpush.msrb.mxu2 %v5900_v57  ;;  %v3380_v57 = vld [vmem:[#allocation6 + $0x8] sm:$0xff] }
 0x94b   :  { %2573 = vmatpush.msra.mxu3 %v3373_v13  ;;  %2593 = vmatpush.msra.mxu0 %v3374_v45 }
 0x94c   :  { %2507 = vmatpush.msrb.mxu2 %v5905_v21 }
 0x94d   :  { %2574 = vmatpush.msra.mxu3 %v3375_v36  ;;  %2594 = vmatpush.msra.mxu0 %v3376_v22 }
 0x94e   :  { %2508 = vmatpush.msrb.mxu2 %v5910_v59 }
 0x94f   :  { %2575 = vmatpush.msra.mxu3 %v3377_v33  ;;  %2595 = vmatpush.msra.mxu0 %v3378_v41 }
 0x950   :  { %2509 = vmatpush.msrb.mxu2 %v5915_v18 }
 0x951   :  { %2576 = vmatpush.msra.mxu3 %v3379_v16  ;;  %2596 = vmatpush.msra.mxu0 %v3380_v57 }
 0x9af   :  { %v2341_v9 = vpop.f32.mrf.mxu0 }
 0x9b0   :  { %v2342_v0 = vadd.f32 %v2341_v9, %v4311_v2 }
 0x9b4   :  { %v2301_v34 = vpop.f32.mrf.mxu2  ;;  %v2321_v25 = vpop.f32.mrf.mxu3 }
 0x9b5   :  { %v2302_v21 = vadd.f32 %v2301_v34, %v6805_v10  ;;  %v2322_v47 = vadd.f32 %v2321_v25, %v6957_v11 }
 0x9b7   :  { %v2344_v23 = vadd.f32 %v2302_v21, %v6048_v28  ;;  %v2364_v59 = vadd.f32 %v2322_v47, %v6050_v54 }
 0x9b9   :  { %v2769_v6 = vmul.f32 -1.442695, %v2344_v23  ;;  %v2770_v43 = vmul.f32 -1.442695, %v2364_v59 }
 0x9bb   :  { %2914 = vpow2.f32 %v2769_v6 }
 0x9bc   :  { %2916 = vpow2.f32 %v2770_v43 }
 0x9c1   :  { %v2915_v18 = vpop.eup %2914 }
 0x9c2   :  { %v2917_v55 = vpop.eup %2916  ;;  %v2348_v12 = vadd.f32 1.0, %v2915_v18 }
 0x9c3   :  { %v2368_v31 = vadd.f32 1.0, %v2917_v55  ;;  %v7023_v55 = vld [vmem:[#allocation71_spill] sm:$0xff] }
 0x9c4   :  { %2918 = vrcp.f32 %v2348_v12  ;;  %v2360_v29 = vand.u32 2147483648, %v2348_v12  ;;  %v2358_v28 = vand.u32 2147483647, %v2348_v12  ;;  %vm2354_vm11 = vweird.f32 %v2348_v12 }
 0x9c5   :  { %2920 = vrcp.f32 %v2368_v31  ;;  %v2380_v45 = vand.u32 2147483648, %v2368_v31  ;;  %vm2374_vm15 = vweird.f32 %v2368_v31  ;;  %v2378_v36 = vand.u32 2147483647, %v2368_v31 }
 0x9c6   :  { %v2361_v14 = vor.u32 1.1754944e-38, %v2360_v29  ;;  %vm2359_vm13 = vcmp.eq.f32.partialorder %v2358_v28, 8.507059e+37 }
 0x9c7   :  { %v2381_v41 = vor.u32 1.1754944e-38, %v2380_v45  ;;  %vm2379_vm1 = vcmp.eq.f32.partialorder %v2378_v36, 8.507059e+37  ;;  %v2679_v45 = vld [vmem:[%s6192_s9 + $0x58] sm:$0xff] }
 0x9ca   :  { %v2919_v30 = vpop.eup %2918 }
 0x9cb   :  { %v2921_v61 = vpop.eup %2920  ;;  %v2350_v20 = vmul.f32 %v2919_v30, %v2348_v12  ;;  %vm2355_vm10 = vweird.f32 %v2919_v30 }
 0x9cc   :  { %v2370_v35 = vmul.f32 %v2921_v61, %v2368_v31  ;;  %vm2356_vm12 = vmor %vm2354_vm11, %vm2355_vm10  ;;  %vm2375_vm14 = vweird.f32 %v2921_v61 }
 0x9cd   :  { %v2351_v44 = vsub.f32 1.0, %v2350_v20  ;;  %vm2376_vm0 = vmor %vm2374_vm15, %vm2375_vm14 }
 0x9ce   :  { %v2371_v60 = vsub.f32 1.0, %v2370_v35 }
 0x9cf   :  { %v2352_v4 = vmul.f32 %v2919_v30, %v2351_v44 }
 0x9d0   :  { %v2372_v58 = vmul.f32 %v2921_v61, %v2371_v60 }
 0x9d1   :  { %v2353_v54 = vadd.f32 %v2919_v30, %v2352_v4 }
 0x9d2   :  { %v2373_v13 = vadd.f32 %v2921_v61, %v2372_v58 }
 0x9d3   :  { %v2357_v53 = vsel %vm2356_vm12, %v2919_v30, %v2353_v54 }
 0x9d4   :  { %v2362_v27 = vsel %vm2359_vm13, %v2361_v14, %v2357_v53  ;;  %v2377_v22 = vsel %vm2376_vm0, %v2921_v61, %v2373_v13  ;;  %v2683_v53 = vld [vmem:[%s6192_s9 + $0x78] sm:$0xff] }
 0x9d5   :  { %v2385_v1 = vmul.f32 %v2384_v7, %v2362_v27  ;;  %v2382_v16 = vsel %vm2379_vm1, %v2381_v41, %v2377_v22 }
 0x9d7   :  { %v2386_v37 = vadd.f32 %v2385_v1, %v2342_v0  ;;  %v2682_v0 = vld [vmem:[%s6192_s9 + $0x70] sm:$0xff] }
 0x9d9   :  { %2922 = vtanh.f32 %v2386_v37  ;;  %v2680_v37 = vld [vmem:[%s6192_s9 + $0x60] sm:$0xff] }
 0x9df   :  { %v2923_v33 = vpop.eup %2922 }
 0x9e0   :  { %v2388_v56 = vsub.f32 %v5927_v51, %v2923_v33  ;;  %v2471_v51 = vpop.f32.mrf.mxu0 }
 0x9e2   :  { %v2389_v57 = vmul.f32 %v2388_v56, %v2382_v16  ;;  %v2676_v56 = vld [vmem:[%s6192_s9 + $0x40] sm:$0xff] }
 0x9e4   :  { %v6090_v62 = vadd.f32 %v2923_v33, %v2389_v57  ;;  %v2678_v33 = vld [vmem:[%s6192_s9 + $0x50] sm:$0xff]  ;;  %v2675_v57 = vld [vmem:[%s6192_s9 + $0x38] sm:$0xff] }
 0x9e6   :  { %2407 = vmatmul.f32.vlgmr.msra.gmra.mxu1 %v6090_v62  ;;  %2427 = vmatmul.f32.vlgmr.msra.gmra.mxu2 %v6090_v62 }
 0x9e7   :  { %2447 = vmatmul.f32.vlgmr.msrb.gmra.mxu3 %v6090_v62  ;;  %2601 = vmatpush.msra.mxu1 %v5932_v19  ;;  %v7021_v19 = vld [vmem:[#allocation16_spill] sm:$0xff] }
 0x9e8   :  { %2688 = vmatpush.msra.mxu2 %v2683_v53 }
 0x9e9   :  { %2602 = vmatpush.msra.mxu1 %v5937_v63  ;;  %v184_v63 = vadd.f32 %v7021_v19, %v7017_v8  ;;  %v2674_v19 = vld [vmem:[%s6192_s9 + $0x30] sm:$0xff] }
 0x9ea   :  { %2689 = vmatpush.msra.mxu2 %v2682_v0 }
 0x9eb   :  { %2603 = vmatpush.msra.mxu1 %v5942_v38  ;;  %v2514_v38 = vadd.f32 %v2471_v51, %v184_v63 }
 0x9ed   :  { %2604 = vmatpush.msra.mxu1 %v5947_v42  ;;  %v2771_v42 = vmul.f32 -1.442695, %v2514_v38  ;;  %v2672_v38 = vld [vmem:[%s6192_s9 + $0x20] sm:$0xff] }
 0x9ee   :  { %2490 = vmatmul.f32.vlgmr.msrb.gmra.mxu1 %v6061_v39  ;;  %2510 = vmatmul.f32.vlgmr.msrb.gmra.mxu2 %v6061_v39 }
 0x9ef   :  { %2605 = vmatpush.msra.mxu1 %v5952_v40  ;;  %2924 = vpow2.f32 %v2771_v42  ;;  %v2671_v42 = vld [vmem:[%s6192_s9 + $0x18] sm:$0xff] }
 0x9f1   :  { %2606 = vmatpush.msra.mxu1 %v5957_v48 }
 0x9f3   :  { %2607 = vmatpush.msra.mxu1 %v5962_v26 }
 0x9f5   :  { %2608 = vmatpush.msra.mxu1 %v5967_v49  ;;  %v2925_v40 = vpop.eup %2924 }
 0x9f6   :  { %v2518_v48 = vadd.f32 1.0, %v2925_v40 }
 0x9f7   :  { %2609 = vmatpush.msra.mxu1 %v5972_v32 }
 0x9f8   :  { %2926 = vrcp.f32 %v2518_v48  ;;  %v2530_v34 = vand.u32 2147483648, %v2518_v48  ;;  %vm2524_vm3 = vweird.f32 %v2518_v48  ;;  %v2528_v25 = vand.u32 2147483647, %v2518_v48 }
 0x9f9   :  { %2610 = vmatpush.msra.mxu1 %v5977_v15 }
 0x9fa   :  { %v2531_v23 = vor.u32 1.1754944e-38, %v2530_v34  ;;  %vm2529_vm5 = vcmp.eq.f32.partialorder %v2528_v25, 8.507059e+37 }
 0x9fb   :  { %2611 = vmatpush.msra.mxu1 %v5982_v52 }
 0x9fd   :  { %2612 = vmatpush.msra.mxu1 %v5987_v46 }
 0x9fe   :  { %v2927_v26 = vpop.eup %2926 }
 0x9ff   :  { %2613 = vmatpush.msra.mxu1 %v5992_v17  ;;  %v2520_v49 = vmul.f32 %v2927_v26, %v2518_v48  ;;  %vm2525_vm2 = vweird.f32 %v2927_v26 }
 0xa00   :  { %vm2526_vm4 = vmor %vm2524_vm3, %vm2525_vm2  ;;  %vm2708_vm2 = vcmask 7168  }
 0xa01   :  { %2614 = vmatpush.msra.mxu1 %v5997_v3  ;;  %v2521_v15 = vsub.f32 1.0, %v2520_v49  ;;  %v7022_v3 = vld [vmem:[#allocation69_spill] sm:$0xff]  ;;  %v2670_v49 = vld [vmem:[%s6192_s9 + $0x10] sm:$0xff] }
 0xa03   :  { %2615 = vmatpush.msra.mxu1 %v6002_v5  ;;  %v2522_v52 = vmul.f32 %v2927_v26, %v2521_v15  ;;  %v2668_v15 = vld [vmem:[%s6192_s9] sm:$0xff] }
 0xa05   :  { %2616 = vmatpush.msra.mxu1 %v6007_v24  ;;  %v2523_v24 = vadd.f32 %v2927_v26, %v2522_v52 }
 0xa07   :  { %v2527_v21 = vsel %vm2526_vm4, %v2927_v26, %v2523_v24 }
 0xa08   :  { %v2532_v6 = vsel %vm2529_vm5, %v2531_v23, %v2527_v21 }
 0xa63   :  { %v6115_v32 = vpop.f32.mrf.mxu1 }
 0xa69   :  { %v2428_v46 = vpop.f32.mrf.mxu2 }
 0xa6a   :  { %v6124_v27 = vpop.f32.mrf.mxu3 }
 0xa6b   :  { %v2491_v17 = vpop.f32.mrf.mxu1 }
 0xa6c   :  { %v2534_v5 = vadd.f32 %v2491_v17, %v7022_v3 }
 0xa6e   :  { %v2772_v8 = vmul.f32 -1.442695, %v2534_v5 }
 0xa70   :  { %2928 = vpow2.f32 %v2772_v8 }
 0xa71   :  { %v2511_v47 = vpop.f32.mrf.mxu2 }
 0xa72   :  { %v2554_v59 = vadd.f32 %v6056_v50, %v2511_v47 }
 0xa74   :  { %v2555_v43 = vmul.f32 %v2554_v59, %v2532_v6  ;;  %v3381_v59 = vld [vmem:[%s6191_s8] ss:$0 sm:$0xff] }
 0xa75   :  { %v2661_v6 = vadd.f32 %v3381_v59, %v6124_v27 }
 0xa76   :  { %v2929_v18 = vpop.eup %2928  ;;  %v2556_v12 = vadd.f32 %v2555_v43, %v7023_v55 }
 0xa77   :  { %v2538_v31 = vadd.f32 1.0, %v2929_v18 }
 0xa79   :  { %2930 = vrcp.f32 %v2538_v31  ;;  %v2550_v44 = vand.u32 2147483648, %v2538_v31  ;;  %v2548_v35 = vand.u32 2147483647, %v2538_v31  ;;  %vm2544_vm7 = vweird.f32 %v2538_v31 }
 0xa7a   :  { %2932 = vtanh.f32 %v2556_v12 }
 0xa7b   :  { %v2551_v50 = vor.u32 1.1754944e-38, %v2550_v44  ;;  %vm2549_vm9 = vcmp.eq.f32.partialorder %v2548_v35, 8.507059e+37 }
 0xa7f   :  { %v2931_v30 = vpop.eup %2930 }
 0xa80   :  { %v2540_v61 = vmul.f32 %v2931_v30, %v2538_v31  ;;  %vm2545_vm6 = vweird.f32 %v2931_v30  ;;  %v2933_v4 = vpop.eup %2932 }
 0xa81   :  { %vm2546_vm8 = vmor %vm2544_vm7, %vm2545_vm6  ;;  %v2558_v9 = vsub.f32 %v6061_v39, %v2933_v4  ;;  %v2681_v39 = vld [vmem:[%s6192_s9 + $0x68] sm:$0xff] }
 0xa82   :  { %v2541_v20 = vsub.f32 1.0, %v2540_v61  ;;  %2690 = vmatpush.msra.mxu2 %v2681_v39 }
 0xa84   :  { %v2542_v29 = vmul.f32 %v2931_v30, %v2541_v20  ;;  %2691 = vmatpush.msra.mxu2 %v2680_v37 }
 0xa86   :  { %v2543_v28 = vadd.f32 %v2931_v30, %v2542_v29  ;;  %2692 = vmatpush.msra.mxu2 %v2679_v45 }
 0xa88   :  { %v2547_v54 = vsel %vm2546_vm8, %v2931_v30, %v2543_v28  ;;  %2693 = vmatpush.msra.mxu2 %v2678_v33 }
 0xa89   :  { %v2552_v14 = vsel %vm2549_vm9, %v2551_v50, %v2547_v54 }
 0xa8a   :  { %v2559_v60 = vmul.f32 %v2558_v9, %v2552_v14 }
 0xa8c   :  { %v2560_v7 = vadd.f32 %v2933_v4, %v2559_v60 }
 0xa8e   :  { %2577 = vmatmul.f32.vlgmr.msra.gmra.mxu3 %v2560_v7  ;;  %2597 = vmatmul.f32.vlgmr.msra.gmra.mxu0 %v2560_v7 }
 0xa8f   :  { %2617 = vmatmul.f32.vlgmr.msra.gmra.mxu1 %v2560_v7 }
 0xb0b   :  { %v2598_v1 = vpop.f32.mrf.mxu0 }
 0xb0c   :  { %v2599_v58 = vadd.f32 %v2598_v1, %v6957_v11  ;;  %v2677_v11 = vld [vmem:[%s6192_s9 + $0x48] sm:$0xff]  ;;  %v2618_v47 = vpop.f32.mrf.mxu1 }
 0xb0d   :  { %2694 = vmatpush.msra.mxu2 %v2677_v11  ;;  %v2619_v55 = vadd.f32 %v2618_v47, %v4311_v2  ;;  %v2783_v2 = vld [vmem:[#allocation3] ss:$0 sm:$0xff] }
 0xb0e   :  { %v2641_v13 = vadd.f32 %v2599_v58, %v2428_v46 }
 0xb0f   :  { %2695 = vmatpush.msra.mxu2 %v2676_v56 }
 0xb10   :  { %v2774_v36 = vmul.f32 -1.442695, %v2641_v13 }
 0xb11   :  { %v2578_v22 = vpop.f32.mrf.mxu3  ;;  %2696 = vmatpush.msra.mxu2 %v2675_v57 }
 0xb12   :  { %v2579_v41 = vadd.f32 %v2578_v22, %v6805_v10  ;;  %2934 = vpow2.f32 %v2774_v36  ;;  %v2673_v10 = vld [vmem:[%s6192_s9 + $0x28] sm:$0xff] }
 0xb13   :  { %2697 = vmatpush.msra.mxu2 %v2674_v19 }
 0xb14   :  { %v2621_v16 = vadd.f32 %v2579_v41, %v6115_v32  ;;  %v2669_v32 = vld [vmem:[%s6192_s9 + $0x8] sm:$0xff] }
 0xb15   :  { %2698 = vmatpush.msra.mxu2 %v2673_v10 }
 0xb16   :  { %v2773_v51 = vmul.f32 -1.442695, %v2621_v16 }
 0xb17   :  { %2699 = vmatpush.msra.mxu2 %v2672_v38 }
 0xb18   :  { %2936 = vpow2.f32 %v2773_v51  ;;  %v2935_v63 = vpop.eup %2934 }
 0xb19   :  { %v2645_v48 = vadd.f32 1.0, %v2935_v63  ;;  %2700 = vmatpush.msra.mxu2 %v2671_v42 }
 0xb1b   :  { %2701 = vmatpush.msra.mxu2 %v2670_v49  ;;  %v2657_v20 = vand.u32 2147483648, %v2645_v48  ;;  %vm2651_vm15 = vweird.f32 %v2645_v48  ;;  %v2655_v44 = vand.u32 2147483647, %v2645_v48 }
 0xb1d   :  { %2702 = vmatpush.msra.mxu2 %v2669_v32  ;;  %v2658_v4 = vor.u32 1.1754944e-38, %v2657_v20  ;;  %vm2656_vm1 = vcmp.eq.f32.partialorder %v2655_v44, 8.507059e+37 }
 0xb1e   :  { %v2937_v40 = vpop.eup %2936 }
 0xb1f   :  { %v2625_v26 = vadd.f32 1.0, %v2937_v40  ;;  %2703 = vmatpush.msra.mxu2 %v2668_v15 }
 0xb21   :  { %2938 = vrcp.f32 %v2625_v26  ;;  %v2637_v24 = vand.u32 2147483648, %v2625_v26  ;;  %v2635_v8 = vand.u32 2147483647, %v2625_v26  ;;  %vm2631_vm11 = vweird.f32 %v2625_v26 }
 0xb22   :  { %2940 = vrcp.f32 %v2645_v48 }
 0xb23   :  { %v2638_v23 = vor.u32 1.1754944e-38, %v2637_v24  ;;  %vm2636_vm13 = vcmp.eq.f32.partialorder %v2635_v8, 8.507059e+37 }
 0xb27   :  { %v2939_v52 = vpop.eup %2938 }
 0xb28   :  { %v2941_v46 = vpop.eup %2940  ;;  %v2627_v17 = vmul.f32 %v2939_v52, %v2625_v26  ;;  %vm2632_vm10 = vweird.f32 %v2939_v52 }
 0xb29   :  { %v2647_v5 = vmul.f32 %v2941_v46, %v2645_v48  ;;  %vm2633_vm12 = vmor %vm2631_vm11, %vm2632_vm10  ;;  %vm2652_vm14 = vweird.f32 %v2941_v46 }
 0xb2a   :  { %v2628_v3 = vsub.f32 1.0, %v2627_v17  ;;  %vm2653_vm0 = vmor %vm2651_vm15, %vm2652_vm14 }
 0xb2b   :  { %v2648_v21 = vsub.f32 1.0, %v2647_v5 }
 0xb2c   :  { %v2629_v34 = vmul.f32 %v2939_v52, %v2628_v3 }
 0xb2d   :  { %v2649_v31 = vmul.f32 %v2941_v46, %v2648_v21 }
 0xb2e   :  { %v2630_v25 = vadd.f32 %v2939_v52, %v2629_v34 }
 0xb2f   :  { %v2650_v61 = vadd.f32 %v2941_v46, %v2649_v31 }
 0xb30   :  { %v2634_v43 = vsel %vm2633_vm12, %v2939_v52, %v2630_v25 }
 0xb31   :  { %v2639_v18 = vsel %vm2636_vm13, %v2638_v23, %v2634_v43  ;;  %v2654_v29 = vsel %vm2653_vm0, %v2941_v46, %v2650_v61 }
 0xb32   :  { %v2662_v12 = vmul.f32 %v2661_v6, %v2639_v18  ;;  %v2659_v50 = vsel %vm2656_vm1, %v2658_v4, %v2654_v29 }
 0xb34   :  { %v2663_v30 = vadd.f32 %v2662_v12, %v2619_v55 }
 0xb36   :  { %2942 = vtanh.f32 %v2663_v30 }
 0xb3c   :  { %v2943_v35 = vpop.eup %2942 }
 0xb3d   :  { %v2665_v28 = vsub.f32 %v6090_v62, %v2943_v35 }
 0xb3f   :  { %v2666_v54 = vmul.f32 %v2665_v28, %v2659_v50 }
 0xb41   :  { %v2667_v9 = vadd.f32 %v2943_v35, %v2666_v54 }
 0xb43   :  { %2704 = vmatmul.f32.vlgmr.msra.gmra.mxu2 %v2667_v9 }
 0xbc6   :  { %v2705_v14 = vpop.f32.mrf.mxu2 }
 0xbc7   :  { %v2706_v60 = vadd.f32 %v2783_v2, %v2705_v14 }
 0xbc9   :  { %2709 = vst.msk [vmem:[%s6194_s11] sm:$0xff] %vm2708_vm2, %v2706_v60 }
 0xbca   :  { %2714 = vsyncpa [#allocation5], 1 }
 0xbcb   :  { %2715 = vsyncpa [#allocation7], 1 }

</bundles_post_ra>
